<compile_context>
chip_gen: v7x
topology: tpu7x:2x2x1
jax: 0.10.0
libtpu: 0.0.40
codegen_flags: <defaults>
</compile_context>

<pallas_src>
import functools

import jax
import jax.numpy as jnp
from jax import lax
from jax.experimental import pallas as pl
from jax.experimental.pallas import tpu as pltpu


def _round_up(x, m):
    return ((x + m - 1) // m) * m


def _vmem_limit_bytes():
    # ~96 MiB on 128 MiB parts (v5e/v6e), ~48 MiB on v7x (64 MiB/TC).
    try:
        cap = int(pltpu.get_tpu_info().vmem_capacity_bytes)
        return min((cap * 3) // 4, 96 * 1024 * 1024)
    except Exception:
        return 48 * 1024 * 1024


# ---------------------------------------------------------------------------
# BatchNorm (eval mode) folded into conv weight (last axis = C_out) + bias
# ---------------------------------------------------------------------------
def _fold_bn(w, gamma, beta, mean, var, eps=1e-5):
    s = gamma / jnp.sqrt(var + eps)
    wf = (w * s).astype(jnp.bfloat16)
    bias = (beta - mean * s).astype(jnp.float32)[None, :]
    return wf, bias


# ---------------------------------------------------------------------------
# Fully fused Bottleneck kernel (one image per grid step)
# ---------------------------------------------------------------------------
def _bottleneck_kernel(x_ref, w1_ref, b1_ref, w2_ref, b2_ref, w3_ref, b3_ref,
                       o_ref, hp_ref, *, H, W, Wp, Cmid):
    """x_ref: (1, H*W, Cin) bf16; w1: (Cin, Cmid); w2: (9, Cmid, Cmid) with
    tap index kh*3+kw; w3: (Cmid, Cexp); b*: (1, C) f32; o_ref: (1, H*W, Cexp);
    hp_ref: (H+3, Wp, Cmid) bf16 VMEM scratch (zero-padded h1)."""
    x = x_ref[0]                                           # (H*W, Cin) bf16

    # ---- conv1 (1x1) + bn1 + relu -------------------------------------
    h1 = jnp.dot(x, w1_ref[...], preferred_element_type=jnp.float32)
    h1 = jnp.maximum(h1 + b1_ref[...], 0.0).astype(jnp.bfloat16)

    # ---- embed h1 into the zero-padded (H+3, Wp) spatial scratch -------
    hp_ref[...] = jnp.zeros_like(hp_ref)
    hp_ref[1:H + 1, 1:W + 1, :] = h1.reshape(H, W, Cmid)
    hp = hp_ref[...].reshape((H + 3) * Wp, Cmid)           # Wp % 8 == 0

    # ---- conv2 (3x3, padding=1) as 9 shifted matmuls --------------------
    # Output pixel (r, w) lives at accumulator row r*Wp + w; tap (kh, kw)
    # contributes hp[(r+kh)*Wp + (w+kw)] @ W2[kh, kw].  Only the kw pre-shift
    # is sublane-unaligned; the per-kh slices below are 8-sublane aligned.
    L = H * Wp
    nA = (H + 2) * Wp
    acc = jnp.zeros((L, Cmid), jnp.float32)
    for kw in range(3):
        a_kw = hp[kw:kw + nA]
        for kh in range(3):
            patch = a_kw[kh * Wp:kh * Wp + L]
            acc = acc + jnp.dot(patch, w2_ref[kh * 3 + kw],
                                preferred_element_type=jnp.float32)

    # ---- bn2 + relu, drop the (Wp - W) pad/garbage columns --------------
    h2 = jnp.maximum(acc + b2_ref[...], 0.0).astype(jnp.bfloat16)
    h2 = h2.reshape(H, Wp, Cmid)[:, :W, :].reshape(H * W, Cmid)

    # ---- conv3 (1x1) + bn3 + residual + relu ----------------------------
    y = jnp.dot(h2, w3_ref[...], preferred_element_type=jnp.float32)
    y = y + b3_ref[...] + x.astype(jnp.float32)            # identity == x
    o_ref[0] = jnp.maximum(y, 0.0).astype(o_ref.dtype)


def bottleneck_forward(x_nchw, params):
    # TODO(synk): eval-mode BatchNorm only (running stats folded into convs).
    # TODO(synk): stride=1 / downsample=None path only (needs Cin == 4*Cout).
    # TODO(synk): when chaining blocks, keep activations NHWC/bf16 end-to-end
    #             and hoist the NCHW<->NHWC transposes to the model boundary.
    # TODO(synk): on v7x, pipeline_mode=pl.Buffered(1) on the constant weight
    #             blocks would reclaim their second VMEM buffer, and batch=1
    #             leaves one TensorCore idle (split the row axis if needed).
    N, Cin, H, W = x_nchw.shape
    Cmid = params["w1"].shape[0]
    Cexp = params["w3"].shape[0]
    assert Cin == Cexp, "downsample=None requires in_channels == 4*out_channels"

    # One fused XLA pass: NCHW -> NHWC transpose + f32 -> bf16 cast.
    x2d = jnp.transpose(x_nchw, (0, 2, 3, 1)).astype(jnp.bfloat16)
    x2d = x2d.reshape(N, H * W, Cin)                       # metadata-only

    # Fold BN into conv weights once (tiny tensors).
    w1 = jnp.transpose(params["w1"][:, :, 0, 0], (1, 0))           # (Cin, Cmid)
    w1f, b1 = _fold_bn(w1, params["g1"], params["b1"], params["m1"], params["v1"])
    w2 = jnp.transpose(params["w2"], (2, 3, 1, 0))                 # (3,3,Ci,Co)
    w2f, b2 = _fold_bn(w2, params["g2"], params["b2"], params["m2"], params["v2"])
    w2f = w2f.reshape(9, Cmid, Cmid)                               # tap = kh*3+kw
    w3 = jnp.transpose(params["w3"][:, :, 0, 0], (1, 0))           # (Cmid, Cexp)
    w3f, b3 = _fold_bn(w3, params["g3"], params["b3"], params["m3"], params["v3"])

    Wp = _round_up(W + 2, 8)          # padded width; keeps tap slices aligned
    out_dtype = x_nchw.dtype

    kernel = functools.partial(_bottleneck_kernel, H=H, W=W, Wp=Wp, Cmid=Cmid)
    cost = pl.CostEstimate(
        flops=2 * N * H * W * (Cin * Cmid + 9 * Cmid * Cmid + Cmid * Cexp),
        transcendentals=0,
        bytes_accessed=(x2d.size * 2 + w1f.size * 2 + w2f.size * 2
                        + w3f.size * 2 + (2 * Cmid + Cexp) * 4
                        + N * H * W * Cexp * jnp.dtype(out_dtype).itemsize),
    )
    out2d = pl.pallas_call(
        kernel,
        out_shape=jax.ShapeDtypeStruct((N, H * W, Cexp), out_dtype),
        grid=(N,),
        in_specs=[
            pl.BlockSpec((1, H * W, Cin), lambda n: (n, 0, 0)),
            pl.BlockSpec((Cin, Cmid), lambda n: (0, 0)),
            pl.BlockSpec((1, Cmid), lambda n: (0, 0)),
            pl.BlockSpec((9, Cmid, Cmid), lambda n: (0, 0, 0)),
            pl.BlockSpec((1, Cmid), lambda n: (0, 0)),
            pl.BlockSpec((Cmid, Cexp), lambda n: (0, 0)),
            pl.BlockSpec((1, Cexp), lambda n: (0, 0)),
        ],
        out_specs=pl.BlockSpec((1, H * W, Cexp), lambda n: (n, 0, 0)),
        scratch_shapes=[pltpu.VMEM((H + 3, Wp, Cmid), jnp.bfloat16)],
        compiler_params=pltpu.CompilerParams(
            dimension_semantics=("parallel",),
            vmem_limit_bytes=_vmem_limit_bytes(),
        ),
        cost_estimate=cost,
    )(x2d, w1f, b1, w2f, b2, w3f, b3)

    out = out2d.reshape(N, H, W, Cexp)
    return jnp.transpose(out, (0, 3, 1, 2))                # back to NCHW


# ---------------------------------------------------------------------------
# Pure-JAX reference (eval-mode BN, f32) for a correctness check
# ---------------------------------------------------------------------------
def _reference_forward(x, p, eps=1e-5):
    def bn(h, g, b, m, v):
        inv = (g / jnp.sqrt(v + eps))[None, :, None, None]
        return (h - m[None, :, None, None]) * inv + b[None, :, None, None]

    dn = ("NCHW", "OIHW", "NCHW")
    h = lax.conv_general_dilated(x, p["w1"], (1, 1), "VALID", dimension_numbers=dn)
    h = jnp.maximum(bn(h, p["g1"], p["b1"], p["m1"], p["v1"]), 0.0)
    h = lax.conv_general_dilated(h, p["w2"], (1, 1), ((1, 1), (1, 1)),
                                 dimension_numbers=dn)
    h = jnp.maximum(bn(h, p["g2"], p["b2"], p["m2"], p["v2"]), 0.0)
    h = lax.conv_general_dilated(h, p["w3"], (1, 1), "VALID", dimension_numbers=dn)
    h = bn(h, p["g3"], p["b3"], p["m3"], p["v3"])
    return jnp.maximum(h + x, 0.0)


# ---------------------------------------------------------------------------
# Deterministic parameter construction (shapes from Bottleneck.__init__)
# ---------------------------------------------------------------------------
def make_params(key, in_channels, out_channels, expansion=4):
    cexp = out_channels * expansion
    keys = jax.random.split(key, 15)
    f32 = jnp.float32

    def nrm(k, shape, s=0.1):
        return (s * jax.random.normal(k, shape)).astype(f32)

    params = {
        "w1": nrm(keys[0], (out_channels, in_channels, 1, 1)),
        "w2": nrm(keys[1], (out_channels, out_channels, 3, 3)),
        "w3": nrm(keys[2], (cexp, out_channels, 1, 1)),
    }
    k = 3
    for i, c in zip((1, 2, 3), (out_channels, out_channels, cexp)):
        params[f"g{i}"] = (1.0 + 0.05 * jax.random.normal(keys[k], (c,))).astype(f32)
        params[f"b{i}"] = nrm(keys[k + 1], (c,))
        params[f"m{i}"] = nrm(keys[k + 2], (c,))
        params[f"v{i}"] = jax.random.uniform(keys[k + 3], (c,), minval=0.5,
                                             maxval=1.5).astype(f32)
        k += 4
    return params


if __name__ == "__main__":
    # downsample=None requires in_channels == out_channels * expansion.
    N, H, W = 2, 16, 16
    out_channels = 4
    in_channels = out_channels * 4            # 16

    key = jax.random.PRNGKey(0)
    kx, kp = jax.random.split(key)
    x = jax.random.normal(kx, (N, in_channels, H, W), dtype=jnp.float32)
    params = make_params(kp, in_channels, out_channels)

    out = jax.jit(bottleneck_forward)(x, params)
    jax.block_until_ready(out)

    assert out.shape == (N, in_channels, H, W)
    assert bool(jnp.all(out >= 0.0))          # final ReLU
    ref = _reference_forward(x, params)
    err = float(jnp.max(jnp.abs(out - ref)))
    assert err < 1e-1, f"max abs error vs reference: {err}"  # bf16 tolerance
    print("KERNEL_OK")
</pallas_src>

<mosaic_0001>
module attributes {stable_mosaic.version = 11 : i64} {
  func.func @_bottleneck_kernel(%arg0: i32, %arg1: memref<1x256x16xbf16, #tpu.memory_space<vmem>>, %arg2: memref<16x4xbf16, #tpu.memory_space<vmem>>, %arg3: memref<1x4xf32, #tpu.memory_space<vmem>>, %arg4: memref<9x4x4xbf16, #tpu.memory_space<vmem>>, %arg5: memref<1x4xf32, #tpu.memory_space<vmem>>, %arg6: memref<4x16xbf16, #tpu.memory_space<vmem>>, %arg7: memref<1x16xf32, #tpu.memory_space<vmem>>, %arg8: memref<1x256x16xf32, #tpu.memory_space<vmem>>, %arg9: memref<19x24x4xbf16, #tpu.memory_space<vmem>>) attributes {dimension_semantics = [#tpu.dimension_semantics<parallel>], iteration_bounds = array<i64: 2>, scalar_prefetch = 0 : i64, scratch_operands = 1 : i64, tpu.core_type = #tpu.core_type<tc>, window_params = [{transform_indices = @transform_0, window_bounds = array<i64: 1, 256, 16>}, {pipeline_mode = #tpu.pipeline_mode<synchronous>, transform_indices = @transform_1, window_bounds = array<i64: 16, 4>}, {pipeline_mode = #tpu.pipeline_mode<synchronous>, transform_indices = @transform_2, window_bounds = array<i64: 1, 4>}, {pipeline_mode = #tpu.pipeline_mode<synchronous>, transform_indices = @transform_3, window_bounds = array<i64: 9, 4, 4>}, {pipeline_mode = #tpu.pipeline_mode<synchronous>, transform_indices = @transform_4, window_bounds = array<i64: 1, 4>}, {pipeline_mode = #tpu.pipeline_mode<synchronous>, transform_indices = @transform_5, window_bounds = array<i64: 4, 16>}, {pipeline_mode = #tpu.pipeline_mode<synchronous>, transform_indices = @transform_6, window_bounds = array<i64: 1, 16>}, {transform_indices = @transform_7, window_bounds = array<i64: 1, 256, 16>}]} {
    %c0 = arith.constant 0 : index
    %c0_0 = arith.constant 0 : index
    %c0_1 = arith.constant 0 : index
    %0 = vector.load %arg1[%c0, %c0_0, %c0_1] : memref<1x256x16xbf16, #tpu.memory_space<vmem>>, vector<1x256x16xbf16>
    %1 = vector.shape_cast %0 : vector<1x256x16xbf16> to vector<256x16xbf16>
    %c0_2 = arith.constant 0 : index
    %c0_3 = arith.constant 0 : index
    %2 = vector.load %arg2[%c0_2, %c0_3] : memref<16x4xbf16, #tpu.memory_space<vmem>>, vector<16x4xbf16>
    %cst = arith.constant dense<0.000000e+00> : vector<256x4xf32>
    %3 = tpu.matmul %1, %2, %cst {dimension_numbers = #tpu.dot_dimension_numbers<[1], [0], [0], [1], [0, 0, 1, 1], [], []>} : vector<256x16xbf16>, vector<16x4xbf16>, vector<256x4xf32> -> vector<256x4xf32>
    %c0_4 = arith.constant 0 : index
    %c0_5 = arith.constant 0 : index
    %4 = vector.load %arg3[%c0_4, %c0_5] : memref<1x4xf32, #tpu.memory_space<vmem>>, vector<1x4xf32>
    %5 = vector.broadcast %4 : vector<1x4xf32> to vector<256x4xf32>
    %6 = arith.addf %3, %5 : vector<256x4xf32>
    %cst_6 = arith.constant 0.000000e+00 : f32
    %7 = vector.broadcast %cst_6 : f32 to vector<256x4xf32>
    %8 = arith.maximumf %6, %7 : vector<256x4xf32>
    %9 = arith.truncf %8 : vector<256x4xf32> to vector<256x4xbf16>
    %cst_7 = arith.constant 0.000000e+00 : bf16
    %10 = vector.broadcast %cst_7 : bf16 to vector<19x24x4xbf16>
    %c0_8 = arith.constant 0 : index
    %c0_9 = arith.constant 0 : index
    %c0_10 = arith.constant 0 : index
    %11 = vector.load %arg9[%c0_8, %c0_9, %c0_10] : memref<19x24x4xbf16, #tpu.memory_space<vmem>>, vector<19x24x4xbf16>
    tpu.vector_store %arg9[%c0_8, %c0_9, %c0_10], %10 {strides = array<i32>} : memref<19x24x4xbf16, #tpu.memory_space<vmem>>, vector<19x24x4xbf16>,
    %12 = vector.shape_cast %9 : vector<256x4xbf16> to vector<16x16x4xbf16>
    %c1 = arith.constant 1 : index
    %c1_11 = arith.constant 1 : index
    %c0_12 = arith.constant 0 : index
    %13 = vector.load %arg9[%c1, %c1_11, %c0_12] : memref<19x24x4xbf16, #tpu.memory_space<vmem>>, vector<16x16x4xbf16>
    tpu.vector_store %arg9[%c1, %c1_11, %c0_12], %12 {strides = array<i32>} : memref<19x24x4xbf16, #tpu.memory_space<vmem>>, vector<16x16x4xbf16>,
    %c0_13 = arith.constant 0 : index
    %c0_14 = arith.constant 0 : index
    %c0_15 = arith.constant 0 : index
    %14 = vector.load %arg9[%c0_13, %c0_14, %c0_15] : memref<19x24x4xbf16, #tpu.memory_space<vmem>>, vector<19x24x4xbf16>
    %15 = vector.shape_cast %14 : vector<19x24x4xbf16> to vector<456x4xbf16>
    %cst_16 = arith.constant 0.000000e+00 : f32
    %16 = vector.broadcast %cst_16 : f32 to vector<384x4xf32>
    %17 = vector.extract_strided_slice %15 {offsets = [0, 0], sizes = [432, 4], strides = [1, 1]} : vector<456x4xbf16> to vector<432x4xbf16>
    %18 = vector.extract_strided_slice %17 {offsets = [0, 0], sizes = [384, 4], strides = [1, 1]} : vector<432x4xbf16> to vector<384x4xbf16>
    %c0_17 = arith.constant 0 : index
    %c0_18 = arith.constant 0 : index
    %c0_19 = arith.constant 0 : index
    %19 = vector.load %arg4[%c0_17, %c0_18, %c0_19] : memref<9x4x4xbf16, #tpu.memory_space<vmem>>, vector<1x4x4xbf16>
    %20 = vector.shape_cast %19 : vector<1x4x4xbf16> to vector<4x4xbf16>
    %cst_20 = arith.constant dense<0.000000e+00> : vector<384x4xf32>
    %21 = tpu.matmul %18, %20, %cst_20 {dimension_numbers = #tpu.dot_dimension_numbers<[1], [0], [0], [1], [0, 0, 1, 1], [], []>} : vector<384x4xbf16>, vector<4x4xbf16>, vector<384x4xf32> -> vector<384x4xf32>
    %22 = arith.addf %16, %21 : vector<384x4xf32>
    %23 = vector.extract_strided_slice %17 {offsets = [24, 0], sizes = [384, 4], strides = [1, 1]} : vector<432x4xbf16> to vector<384x4xbf16>
    %c3 = arith.constant 3 : index
    %c0_21 = arith.constant 0 : index
    %c0_22 = arith.constant 0 : index
    %24 = vector.load %arg4[%c3, %c0_21, %c0_22] : memref<9x4x4xbf16, #tpu.memory_space<vmem>>, vector<1x4x4xbf16>
    %25 = vector.shape_cast %24 : vector<1x4x4xbf16> to vector<4x4xbf16>
    %cst_23 = arith.constant dense<0.000000e+00> : vector<384x4xf32>
    %26 = tpu.matmul %23, %25, %cst_23 {dimension_numbers = #tpu.dot_dimension_numbers<[1], [0], [0], [1], [0, 0, 1, 1], [], []>} : vector<384x4xbf16>, vector<4x4xbf16>, vector<384x4xf32> -> vector<384x4xf32>
    %27 = arith.addf %22, %26 : vector<384x4xf32>
    %28 = vector.extract_strided_slice %17 {offsets = [48, 0], sizes = [384, 4], strides = [1, 1]} : vector<432x4xbf16> to vector<384x4xbf16>
    %c6 = arith.constant 6 : index
    %c0_24 = arith.constant 0 : index
    %c0_25 = arith.constant 0 : index
    %29 = vector.load %arg4[%c6, %c0_24, %c0_25] : memref<9x4x4xbf16, #tpu.memory_space<vmem>>, vector<1x4x4xbf16>
    %30 = vector.shape_cast %29 : vector<1x4x4xbf16> to vector<4x4xbf16>
    %cst_26 = arith.constant dense<0.000000e+00> : vector<384x4xf32>
    %31 = tpu.matmul %28, %30, %cst_26 {dimension_numbers = #tpu.dot_dimension_numbers<[1], [0], [0], [1], [0, 0, 1, 1], [], []>} : vector<384x4xbf16>, vector<4x4xbf16>, vector<384x4xf32> -> vector<384x4xf32>
    %32 = arith.addf %27, %31 : vector<384x4xf32>
    %33 = vector.extract_strided_slice %15 {offsets = [1, 0], sizes = [432, 4], strides = [1, 1]} : vector<456x4xbf16> to vector<432x4xbf16>
    %34 = vector.extract_strided_slice %33 {offsets = [0, 0], sizes = [384, 4], strides = [1, 1]} : vector<432x4xbf16> to vector<384x4xbf16>
    %c1_27 = arith.constant 1 : index
    %c0_28 = arith.constant 0 : index
    %c0_29 = arith.constant 0 : index
    %35 = vector.load %arg4[%c1_27, %c0_28, %c0_29] : memref<9x4x4xbf16, #tpu.memory_space<vmem>>, vector<1x4x4xbf16>
    %36 = vector.shape_cast %35 : vector<1x4x4xbf16> to vector<4x4xbf16>
    %cst_30 = arith.constant dense<0.000000e+00> : vector<384x4xf32>
    %37 = tpu.matmul %34, %36, %cst_30 {dimension_numbers = #tpu.dot_dimension_numbers<[1], [0], [0], [1], [0, 0, 1, 1], [], []>} : vector<384x4xbf16>, vector<4x4xbf16>, vector<384x4xf32> -> vector<384x4xf32>
    %38 = arith.addf %32, %37 : vector<384x4xf32>
    %39 = vector.extract_strided_slice %33 {offsets = [24, 0], sizes = [384, 4], strides = [1, 1]} : vector<432x4xbf16> to vector<384x4xbf16>
    %c4 = arith.constant 4 : index
    %c0_31 = arith.constant 0 : index
    %c0_32 = arith.constant 0 : index
    %40 = vector.load %arg4[%c4, %c0_31, %c0_32] : memref<9x4x4xbf16, #tpu.memory_space<vmem>>, vector<1x4x4xbf16>
    %41 = vector.shape_cast %40 : vector<1x4x4xbf16> to vector<4x4xbf16>
    %cst_33 = arith.constant dense<0.000000e+00> : vector<384x4xf32>
    %42 = tpu.matmul %39, %41, %cst_33 {dimension_numbers = #tpu.dot_dimension_numbers<[1], [0], [0], [1], [0, 0, 1, 1], [], []>} : vector<384x4xbf16>, vector<4x4xbf16>, vector<384x4xf32> -> vector<384x4xf32>
    %43 = arith.addf %38, %42 : vector<384x4xf32>
    %44 = vector.extract_strided_slice %33 {offsets = [48, 0], sizes = [384, 4], strides = [1, 1]} : vector<432x4xbf16> to vector<384x4xbf16>
    %c7 = arith.constant 7 : index
    %c0_34 = arith.constant 0 : index
    %c0_35 = arith.constant 0 : index
    %45 = vector.load %arg4[%c7, %c0_34, %c0_35] : memref<9x4x4xbf16, #tpu.memory_space<vmem>>, vector<1x4x4xbf16>
    %46 = vector.shape_cast %45 : vector<1x4x4xbf16> to vector<4x4xbf16>
    %cst_36 = arith.constant dense<0.000000e+00> : vector<384x4xf32>
    %47 = tpu.matmul %44, %46, %cst_36 {dimension_numbers = #tpu.dot_dimension_numbers<[1], [0], [0], [1], [0, 0, 1, 1], [], []>} : vector<384x4xbf16>, vector<4x4xbf16>, vector<384x4xf32> -> vector<384x4xf32>
    %48 = arith.addf %43, %47 : vector<384x4xf32>
    %49 = vector.extract_strided_slice %15 {offsets = [2, 0], sizes = [432, 4], strides = [1, 1]} : vector<456x4xbf16> to vector<432x4xbf16>
    %50 = vector.extract_strided_slice %49 {offsets = [0, 0], sizes = [384, 4], strides = [1, 1]} : vector<432x4xbf16> to vector<384x4xbf16>
    %c2 = arith.constant 2 : index
    %c0_37 = arith.constant 0 : index
    %c0_38 = arith.constant 0 : index
    %51 = vector.load %arg4[%c2, %c0_37, %c0_38] : memref<9x4x4xbf16, #tpu.memory_space<vmem>>, vector<1x4x4xbf16>
    %52 = vector.shape_cast %51 : vector<1x4x4xbf16> to vector<4x4xbf16>
    %cst_39 = arith.constant dense<0.000000e+00> : vector<384x4xf32>
    %53 = tpu.matmul %50, %52, %cst_39 {dimension_numbers = #tpu.dot_dimension_numbers<[1], [0], [0], [1], [0, 0, 1, 1], [], []>} : vector<384x4xbf16>, vector<4x4xbf16>, vector<384x4xf32> -> vector<384x4xf32>
    %54 = arith.addf %48, %53 : vector<384x4xf32>
    %55 = vector.extract_strided_slice %49 {offsets = [24, 0], sizes = [384, 4], strides = [1, 1]} : vector<432x4xbf16> to vector<384x4xbf16>
    %c5 = arith.constant 5 : index
    %c0_40 = arith.constant 0 : index
    %c0_41 = arith.constant 0 : index
    %56 = vector.load %arg4[%c5, %c0_40, %c0_41] : memref<9x4x4xbf16, #tpu.memory_space<vmem>>, vector<1x4x4xbf16>
    %57 = vector.shape_cast %56 : vector<1x4x4xbf16> to vector<4x4xbf16>
    %cst_42 = arith.constant dense<0.000000e+00> : vector<384x4xf32>
    %58 = tpu.matmul %55, %57, %cst_42 {dimension_numbers = #tpu.dot_dimension_numbers<[1], [0], [0], [1], [0, 0, 1, 1], [], []>} : vector<384x4xbf16>, vector<4x4xbf16>, vector<384x4xf32> -> vector<384x4xf32>
    %59 = arith.addf %54, %58 : vector<384x4xf32>
    %60 = vector.extract_strided_slice %49 {offsets = [48, 0], sizes = [384, 4], strides = [1, 1]} : vector<432x4xbf16> to vector<384x4xbf16>
    %c8 = arith.constant 8 : index
    %c0_43 = arith.constant 0 : index
    %c0_44 = arith.constant 0 : index
    %61 = vector.load %arg4[%c8, %c0_43, %c0_44] : memref<9x4x4xbf16, #tpu.memory_space<vmem>>, vector<1x4x4xbf16>
    %62 = vector.shape_cast %61 : vector<1x4x4xbf16> to vector<4x4xbf16>
    %cst_45 = arith.constant dense<0.000000e+00> : vector<384x4xf32>
    %63 = tpu.matmul %60, %62, %cst_45 {dimension_numbers = #tpu.dot_dimension_numbers<[1], [0], [0], [1], [0, 0, 1, 1], [], []>} : vector<384x4xbf16>, vector<4x4xbf16>, vector<384x4xf32> -> vector<384x4xf32>
    %64 = arith.addf %59, %63 : vector<384x4xf32>
    %c0_46 = arith.constant 0 : index
    %c0_47 = arith.constant 0 : index
    %65 = vector.load %arg5[%c0_46, %c0_47] : memref<1x4xf32, #tpu.memory_space<vmem>>, vector<1x4xf32>
    %66 = vector.broadcast %65 : vector<1x4xf32> to vector<384x4xf32>
    %67 = arith.addf %64, %66 : vector<384x4xf32>
    %cst_48 = arith.constant 0.000000e+00 : f32
    %68 = vector.broadcast %cst_48 : f32 to vector<384x4xf32>
    %69 = arith.maximumf %67, %68 : vector<384x4xf32>
    %70 = arith.truncf %69 : vector<384x4xf32> to vector<384x4xbf16>
    %71 = vector.shape_cast %70 : vector<384x4xbf16> to vector<16x24x4xbf16>
    %72 = vector.extract_strided_slice %71 {offsets = [0, 0, 0], sizes = [16, 16, 4], strides = [1, 1, 1]} : vector<16x24x4xbf16> to vector<16x16x4xbf16>
    %73 = vector.shape_cast %72 : vector<16x16x4xbf16> to vector<256x4xbf16>
    %c0_49 = arith.constant 0 : index
    %c0_50 = arith.constant 0 : index
    %74 = vector.load %arg6[%c0_49, %c0_50] : memref<4x16xbf16, #tpu.memory_space<vmem>>, vector<4x16xbf16>
    %cst_51 = arith.constant dense<0.000000e+00> : vector<256x16xf32>
    %75 = tpu.matmul %73, %74, %cst_51 {dimension_numbers = #tpu.dot_dimension_numbers<[1], [0], [0], [1], [0, 0, 1, 1], [], []>} : vector<256x4xbf16>, vector<4x16xbf16>, vector<256x16xf32> -> vector<256x16xf32>
    %c0_52 = arith.constant 0 : index
    %c0_53 = arith.constant 0 : index
    %76 = vector.load %arg7[%c0_52, %c0_53] : memref<1x16xf32, #tpu.memory_space<vmem>>, vector<1x16xf32>
    %77 = vector.broadcast %76 : vector<1x16xf32> to vector<256x16xf32>
    %78 = arith.addf %75, %77 : vector<256x16xf32>
    %79 = arith.extf %1 : vector<256x16xbf16> to vector<256x16xf32>
    %80 = arith.addf %78, %79 : vector<256x16xf32>
    %cst_54 = arith.constant 0.000000e+00 : f32
    %81 = vector.broadcast %cst_54 : f32 to vector<256x16xf32>
    %82 = arith.maximumf %80, %81 : vector<256x16xf32>
    %c0_55 = arith.constant 0 : index
    %c0_56 = arith.constant 0 : index
    %c0_57 = arith.constant 0 : index
    %83 = vector.load %arg8[%c0_55, %c0_56, %c0_57] : memref<1x256x16xf32, #tpu.memory_space<vmem>>, vector<1x256x16xf32>
    %84 = vector.shape_cast %83 : vector<1x256x16xf32> to vector<256x16xf32>
    %85 = vector.shape_cast %82 : vector<256x16xf32> to vector<1x256x16xf32>
    tpu.vector_store %arg8[%c0_55, %c0_56, %c0_57], %85 {strides = array<i32>} : memref<1x256x16xf32, #tpu.memory_space<vmem>>, vector<1x256x16xf32>,
    return
  }
  func.func @transform_0(%arg0: i32) -> (i32, i32, i32) {
    %c0_i32 = arith.constant 0 : i32
    %c0_i32_0 = arith.constant 0 : i32
    %c0_i32_1 = arith.constant 0 : i32
    return %arg0, %c0_i32, %c0_i32_0 : i32, i32, i32
  }
  func.func @transform_1(%arg0: i32) -> (i32, i32) {
    %c0_i32 = arith.constant 0 : i32
    %c0_i32_0 = arith.constant 0 : i32
    %c0_i32_1 = arith.constant 0 : i32
    return %c0_i32, %c0_i32_0 : i32, i32
  }
  func.func @transform_2(%arg0: i32) -> (i32, i32) {
    %c0_i32 = arith.constant 0 : i32
    %c0_i32_0 = arith.constant 0 : i32
    %c0_i32_1 = arith.constant 0 : i32
    return %c0_i32, %c0_i32_0 : i32, i32
  }
  func.func @transform_3(%arg0: i32) -> (i32, i32, i32) {
    %c0_i32 = arith.constant 0 : i32
    %c0_i32_0 = arith.constant 0 : i32
    %c0_i32_1 = arith.constant 0 : i32
    %c0_i32_2 = arith.constant 0 : i32
    return %c0_i32, %c0_i32_0, %c0_i32_1 : i32, i32, i32
  }
  func.func @transform_4(%arg0: i32) -> (i32, i32) {
    %c0_i32 = arith.constant 0 : i32
    %c0_i32_0 = arith.constant 0 : i32
    %c0_i32_1 = arith.constant 0 : i32
    return %c0_i32, %c0_i32_0 : i32, i32
  }
  func.func @transform_5(%arg0: i32) -> (i32, i32) {
    %c0_i32 = arith.constant 0 : i32
    %c0_i32_0 = arith.constant 0 : i32
    %c0_i32_1 = arith.constant 0 : i32
    return %c0_i32, %c0_i32_0 : i32, i32
  }
  func.func @transform_6(%arg0: i32) -> (i32, i32) {
    %c0_i32 = arith.constant 0 : i32
    %c0_i32_0 = arith.constant 0 : i32
    %c0_i32_1 = arith.constant 0 : i32
    return %c0_i32, %c0_i32_0 : i32, i32
  }
  func.func @transform_7(%arg0: i32) -> (i32, i32, i32) {
    %c0_i32 = arith.constant 0 : i32
    %c0_i32_0 = arith.constant 0 : i32
    %c0_i32_1 = arith.constant 0 : i32
    return %arg0, %c0_i32, %c0_i32_0 : i32, i32, i32
  }
}

</mosaic_0001>

<bundles_post_ra>
// kernel: bottleneck_forward.1
= control target key start
LH: loop header
LB: loop body
LE: loop exit
PB: predicated region body
PF: predicated region fallthrough
CT: control target
= control target key end

     0   :  { %s7154_s24 = smov 0   ;;  %s8847_s0 = inlined_call_operand.vmem [shape: bf16[2,256,16], index: 0, kind: input, shape index: {}]   ;;  %s8848_s1 = inlined_call_operand.vmem [shape: bf16[16,4], index: 1, kind: input, shape index: {}]   ;;  %s8849_s2 = inlined_call_operand.vmem [shape: f32[1,4], index: 2, kind: input, shape index: {}]   ;;  %s8850_s3 = inlined_call_operand.vmem [shape: bf16[9,4,4], index: 3, kind: input, shape index: {}]   ;;  %s8851_s4 = inlined_call_operand.vmem [shape: f32[1,4], index: 4, kind: input, shape index: {}]   ;;  %s8852_s5 = inlined_call_operand.vmem [shape: bf16[4,16], index: 5, kind: input, shape index: {}]   ;;  %s8853_s6 = inlined_call_operand.vmem [shape: f32[1,16], index: 6, kind: input, shape index: {}]   ;;  %s8854_s7 = inlined_call_operand.vmem [shape: f32[2,256,16], index: 7, kind: output, shape index: {}]  }
   0x1 LB: > { %s5415_s25 = sadd.s32 4294967295, %s7111_s24   ;;  %p5419_p0 = scmp.ge.s32.totalorder %s7111_s24, 1  ;;  %s7111_s24 = sphi %s7154_s24, %s17_s24  }
   0x2   : > { %p237_p1 = scmp.lt.s32.totalorder %s7111_s24, 3 }
   0x4   : > { %p238_p2 = pnand %p5419_p0, %p237_p1 }
   0x6   : > { %241 = sbr.rel (%p238_p2) target bundleno = 1271 (0x4f7), region = 48 }
   0xd   : > { %v7005_v0 = vld [vmem:[%s8848_s1] sm:$0xff]   ;;  %p269_p3 = scmp.lt.s32.totalorder %s5415_s25, 1  ;;  %vm407_vm0 = vcmask 130048   ;;  %vm665_vm1 = vcmask 27648   ;;  %v7113_v17 = vmov 0   ;;  %vm1495_vm2 = vcmask 1041408  }
   0xe   : > { %6081 = vmatprep.subr.bf16.mxu0 %v7005_v0  ;;  %672 = vst.msk [vmem:[#allocation2 + $0x18] sm:$0xf] %vm665_vm1, %v7113_v17  ;;  %666 = vst.msk [vmem:[#allocation2] sm:$0xf] %vm665_vm1, %v7113_v17  ;;  %v5490_v18 = vld [vmem:[%s8850_s3 + $0x6] sm:$0x3] }
   0xf   : > { %s8982_s25 = smov (!%p269_p3, %s5415_s25), 1  ;;  %6082 = vmatpush3.bf16.msra.mxu0 %v7005_v0  ;;  %667 = vst.msk [vmem:[#allocation2 + $0x4] sm:$0xf] %vm665_vm1, %v7113_v17  ;;  %668 = vst.msk [vmem:[#allocation2 + $0x8] sm:$0xf] %vm665_vm1, %v7113_v17  ;;  %v1497_v19 = vsel %vm1495_vm2, %v5490_v18, 0 }
  0x10   : > { %s5788_s28 = sshll.u32 %s8982_s25, 7  ;;  %669 = vst.msk [vmem:[#allocation2 + $0xc] sm:$0xf] %vm665_vm1, %v7113_v17  ;;  %670 = vst.msk [vmem:[#allocation2 + $0x10] sm:$0xf] %vm665_vm1, %v7113_v17  ;;  %6985 = vmatprep.subr.msk.bf16.mxu0 %vm1495_vm2, %v5490_v18  ;;  %vm1134_vm6 = vcmask 24576  }
  0x11   : > { %s7171_s8 = scalar_lea.vmem %s8847_s0, %s5788_s28  ;;  %671 = vst.msk [vmem:[#allocation2 + $0x14] sm:$0xf] %vm665_vm1, %v7113_v17  ;;  %673 = vst.msk [vmem:[#allocation2 + $0x1c] sm:$0xf] %vm665_vm1, %v7113_v17  ;;  %v5615_v20 = vld [vmem:[%s8850_s3 + $0x2] sm:$0x3] }
  0x12   : > { %v280_v1 = vld [vmem:[%s7171_s8] sm:$0xff]   ;;  %v282_v2 = vld [vmem:[%s7171_s8 + $0x8] sm:$0xff]   ;;  %v284_v3 = vld [vmem:[%s7171_s8 + $0x10] sm:$0xff]   ;;  %674 = vst.msk [vmem:[#allocation2 + $0x20] sm:$0xf] %vm665_vm1, %v7113_v17  ;;  %6989 = vmatprep.subr.msk.bf16.mxu1 %vm1495_vm2, %v5615_v20  ;;  %v7270_v21 = vsel %vm1495_vm2, %v5615_v20, 0 }
  0x13   : > { %6083 = vmatprep.mubr.msk.bf16.mxu0 %vm407_vm0, %v280_v1  ;;  %v286_v4 = vld [vmem:[%s7171_s8 + $0x18] sm:$0xff]   ;;  %v288_v5 = vld [vmem:[%s7171_s8 + $0x20] sm:$0xff]   ;;  %v290_v6 = vld [vmem:[%s7171_s8 + $0x28] sm:$0xff]   ;;  %675 = vst.msk [vmem:[#allocation2 + $0x24] sm:$0xf] %vm665_vm1, %v7113_v17  ;;  %6600 = vmatpush3.bf16.msra.mxu1 %v7270_v21  ;;  %vm1422_vm10 = vcmask 31744  }
  0x14   : > { %6084 = vmatmul.mubr.msk.bf16.vlgmr.msra.gmra.mrb[0].mxu0 %vm407_vm0, %v282_v2  ;;  %v292_v7 = vld [vmem:[%s7171_s8 + $0x30] sm:$0xff]   ;;  %v294_v8 = vld [vmem:[%s7171_s8 + $0x38] sm:$0xff]   ;;  %v296_v9 = vld [vmem:[%s7171_s8 + $0x40] sm:$0xff]   ;;  %676 = vst.msk [vmem:[#allocation2 + $0x28] sm:$0xf] %vm665_vm1, %v7113_v17  ;;  %vm3718_vm12 = vcmask 1046528  }
  0x15   : > { %6087 = vmatprep.mubr.msk.bf16.mxu0 %vm407_vm0, %v284_v3  ;;  %v298_v10 = vld [vmem:[%s7171_s8 + $0x48] sm:$0xff]   ;;  %v300_v11 = vld [vmem:[%s7171_s8 + $0x50] sm:$0xff]   ;;  %v302_v12 = vld [vmem:[%s7171_s8 + $0x58] sm:$0xff]   ;;  %677 = vst.msk [vmem:[#allocation2 + $0x2c] sm:$0xf] %vm665_vm1, %v7113_v17  ;;  %6116 = vmatpush3.bf16.msra.mxu0 %v1497_v19  ;;  %s5789_s19 = sshll.u32 %s8982_s25, 8 }
  0x16   : > { %v304_v13 = vld [vmem:[%s7171_s8 + $0x60] sm:$0xff]   ;;  %v306_v14 = vld [vmem:[%s7171_s8 + $0x68] sm:$0xff]   ;;  %v308_v15 = vld [vmem:[%s7171_s8 + $0x70] sm:$0xff]   ;;  %678 = vst.msk [vmem:[#allocation2 + $0x30] sm:$0xf] %vm665_vm1, %v7113_v17  ;;  %s8735_s22 = scalar_lea.vmem %s8854_s7, %s5789_s19 }
  0x17   : > { %v310_v16 = vld [vmem:[%s7171_s8 + $0x78] sm:$0xff]   ;;  %679 = vst.msk [vmem:[#allocation2 + $0x34] sm:$0xf] %vm665_vm1, %v7113_v17  ;;  %680 = vst.msk [vmem:[#allocation2 + $0x38] sm:$0xf] %vm665_vm1, %v7113_v17 }
  0x18   : > { %681 = vst.msk [vmem:[#allocation2 + $0x3c] sm:$0xf] %vm665_vm1, %v7113_v17  ;;  %682 = vst.msk [vmem:[#allocation2 + $0x40] sm:$0xf] %vm665_vm1, %v7113_v17  ;;  %v5641_v22 = vld [vmem:[%s8850_s3 + $0x8] sm:$0x3] }
  0x19   : > { %683 = vst.msk [vmem:[#allocation2 + $0x44] sm:$0xf] %vm665_vm1, %v7113_v17  ;;  %684 = vst.msk [vmem:[#allocation2 + $0x48] sm:$0xf] %vm665_vm1, %v7113_v17  ;;  %6990 = vmatprep.subr.msk.bf16.mxu1 %vm1495_vm2, %v5641_v22  ;;  %v7280_v23 = vld [vmem:[%s8849_s2] ss:$0 sm:$0xff] }
  0x1a   : > { %685 = vst.msk [vmem:[#allocation2 + $0x4c] sm:$0xf] %vm665_vm1, %v7113_v17  ;;  %686 = vst.msk [vmem:[#allocation2 + $0x50] sm:$0xf] %vm665_vm1, %v7113_v17  ;;  %vm1128_vm3 = vsmask.f32 7938 }
  0x1b   : > { %687 = vst.msk [vmem:[#allocation2 + $0x54] sm:$0xf] %vm665_vm1, %v7113_v17  ;;  %688 = vst.msk [vmem:[#allocation2 + $0x58] sm:$0xf] %vm665_vm1, %v7113_v17  ;;  %vm803_vm4 = vsmask.f32 256 }
  0x1c   : > { %6088 = vmatmul.mubr.msk.bf16.gmra.mrb[4].mxu0 %vm407_vm0, %v286_v4  ;;  %689 = vst.msk [vmem:[#allocation2 + $0x5c] sm:$0xf] %vm665_vm1, %v7113_v17  ;;  %690 = vst.msk [vmem:[#allocation2 + $0x60] sm:$0xf] %vm665_vm1, %v7113_v17  ;;  %vm804_vm5 = vsmask.f32 4368 }
  0x1d   : > { %6091 = vmatprep.mubr.msk.bf16.mxu0 %vm407_vm0, %v288_v5  ;;  %691 = vst.msk [vmem:[#allocation2 + $0x64] sm:$0xf] %vm665_vm1, %v7113_v17  ;;  %692 = vst.msk [vmem:[#allocation2 + $0x68] sm:$0xf] %vm665_vm1, %v7113_v17  ;;  %v7290_v50 = vld [vmem:[%s8850_s3] sm:$0x3] }
  0x1e   : > { %693 = vst.msk [vmem:[#allocation2 + $0x6c] sm:$0xf] %vm665_vm1, %v7113_v17  ;;  %694 = vst.msk [vmem:[#allocation2 + $0x70] sm:$0xf] %vm665_vm1, %v7113_v17  ;;  %v1139_v52 = vld [vmem:[#allocation2 + $0x18] sm:$0xf]  ;;  %6986 = vmatprep.subr.msk.bf16.mxu0 %vm1495_vm2, %v7290_v50 }
  0x1f   : > { %695 = vst.msk [vmem:[#allocation2 + $0x74] sm:$0xf] %vm665_vm1, %v7113_v17  ;;  %696 = vst.msk [vmem:[#allocation2 + $0x78] sm:$0xf] %vm665_vm1, %v7113_v17  ;;  %v1130_v60 = vld [vmem:[#allocation2 + $0xc] sm:$0xf] }
  0x20   : > { %697 = vst.msk [vmem:[#allocation2 + $0x7c] sm:$0xf] %vm665_vm1, %v7113_v17  ;;  %698 = vst.msk [vmem:[#allocation2 + $0x80] sm:$0xf] %vm665_vm1, %v7113_v17  ;;  %v1143_v4 = vld [vmem:[#allocation2 + $0x20] sm:$0x1] }
  0x21   : > { %699 = vst.msk [vmem:[#allocation2 + $0x84] sm:$0xf] %vm665_vm1, %v7113_v17  ;;  %700 = vst.msk [vmem:[#allocation2 + $0x88] sm:$0xf] %vm665_vm1, %v7113_v17  ;;  %vm2353_vm11 = vsmask.f32 7424 }
  0x22   : > { %701 = vst.msk [vmem:[#allocation2 + $0x8c] sm:$0xf] %vm665_vm1, %v7113_v17  ;;  %702 = vst.msk [vmem:[#allocation2 + $0x90] sm:$0xf] %vm665_vm1, %v7113_v17 }
  0x23   : > { %703 = vst.msk [vmem:[#allocation2 + $0x94] sm:$0xf] %vm665_vm1, %v7113_v17  ;;  %704 = vst.msk [vmem:[#allocation2 + $0x98] sm:$0xf] %vm665_vm1, %v7113_v17 }
  0x24   : > { %6092 = vmatmul.mubr.msk.bf16.gmra.mrb[8].mxu0 %vm407_vm0, %v290_v6  ;;  %705 = vst.msk [vmem:[#allocation2 + $0x9c] sm:$0xf] %vm665_vm1, %v7113_v17  ;;  %706 = vst.msk [vmem:[#allocation2 + $0xa0] sm:$0xf] %vm665_vm1, %v7113_v17 }
  0x25   : > { %6095 = vmatprep.mubr.msk.bf16.mxu0 %vm407_vm0, %v292_v7  ;;  %707 = vst.msk [vmem:[#allocation2 + $0xa4] sm:$0xf] %vm665_vm1, %v7113_v17  ;;  %708 = vst.msk [vmem:[#allocation2 + $0xa8] sm:$0xf] %vm665_vm1, %v7113_v17 }
  0x26   : > { %709 = vst.msk [vmem:[#allocation2 + $0xac] sm:$0xf] %vm665_vm1, %v7113_v17  ;;  %710 = vst.msk [vmem:[#allocation2 + $0xb0] sm:$0xf] %vm665_vm1, %v7113_v17 }
  0x27   : > { %711 = vst.msk [vmem:[#allocation2 + $0xb4] sm:$0xf] %vm665_vm1, %v7113_v17  ;;  %712 = vst.msk [vmem:[#allocation2 + $0xb8] sm:$0xf] %vm665_vm1, %v7113_v17 }
  0x28   : > { %713 = vst.msk [vmem:[#allocation2 + $0xbc] sm:$0xf] %vm665_vm1, %v7113_v17  ;;  %714 = vst.msk [vmem:[#allocation2 + $0xc0] sm:$0xf] %vm665_vm1, %v7113_v17 }
  0x29   : > { %715 = vst.msk [vmem:[#allocation2 + $0xc4] sm:$0xf] %vm665_vm1, %v7113_v17  ;;  %716 = vst.msk [vmem:[#allocation2 + $0xc8] sm:$0xf] %vm665_vm1, %v7113_v17 }
  0x2a   : > { %717 = vst.msk [vmem:[#allocation2 + $0xcc] sm:$0xf] %vm665_vm1, %v7113_v17  ;;  %718 = vst.msk [vmem:[#allocation2 + $0xd0] sm:$0xf] %vm665_vm1, %v7113_v17 }
  0x2b   : > { %719 = vst.msk [vmem:[#allocation2 + $0xd4] sm:$0xf] %vm665_vm1, %v7113_v17  ;;  %720 = vst.msk [vmem:[#allocation2 + $0xd8] sm:$0xf] %vm665_vm1, %v7113_v17 }
  0x2c   : > { %6096 = vmatmul.mubr.msk.bf16.gmra.mrb[12].mxu0 %vm407_vm0, %v294_v8  ;;  %8894 = vst [vmem:[#allocation3_spill] sm:$0xff] %v7270_v21  ;;  %vm7294_vm7 = vmand %vm665_vm1, %vm1128_vm3 }
  0x2d   : > { %6099 = vmatprep.mubr.msk.bf16.mxu0 %vm407_vm0, %v296_v9  ;;  %vm7303_vm8 = vmor %vm803_vm4, %vm804_vm5 }
  0x2e   : > { %vm7309_vm9 = vmand %vm1134_vm6, %vm803_vm4 }
  0x34   : > { %6100 = vmatmul.mubr.msk.bf16.gmra.mrb[16].mxu0 %vm407_vm0, %v298_v10  ;;  %v1136_v10 = vld [vmem:[#allocation2 + $0x14] sm:$0x1] }
  0x35   : > { %6103 = vmatprep.mubr.msk.bf16.mxu0 %vm407_vm0, %v300_v11 }
  0x3c   : > { %6104 = vmatmul.mubr.msk.bf16.gmra.mrb[20].mxu0 %vm407_vm0, %v302_v12 }
  0x3d   : > { %6107 = vmatprep.mubr.msk.bf16.mxu0 %vm407_vm0, %v304_v13 }
  0x44   : > { %6108 = vmatmul.mubr.msk.bf16.gmra.mrb[24].mxu0 %vm407_vm0, %v306_v14 }
  0x45   : > { %6111 = vmatprep.mubr.msk.bf16.mxu0 %vm407_vm0, %v308_v15 }
  0x4c   : > { %6112 = vmatmul.mubr.msk.bf16.gmra.mrb[28].mxu0 %vm407_vm0, %v310_v16 }
  0xe7   : > { %v6085_v24 = vpop.f32.mrb[0].mxu0 }
  0xe8   : > { %v499_v25 = vadd.f32 %v6085_v24, %v7280_v23  ;;  %v490_v26 = vpop.f32.mrb[1].mxu0 }
  0xe9   : > { %v491_v27 = vadd.f32 %v7280_v23, %v490_v26  ;;  %v6086_v28 = vpop.f32.mrb[2].mxu0 }
  0xea   : > { %v619_v29 = vmax.f32 %v499_v25, 0.0  ;;  %v502_v30 = vadd.f32 %v6086_v28, %v7280_v23  ;;  %v493_v31 = vpop.f32.mrb[3].mxu0 }
  0xeb   : > { %v617_v32 = vmax.f32 %v491_v27, 0.0  ;;  %v494_v33 = vadd.f32 %v7280_v23, %v493_v31  ;;  %v1153_v31 = vld [vmem:[#allocation2 + $0x30] sm:$0xf] }
  0xec   : > { %v5792_v34 = vpack.c.bf16 %v619_v29, %v619_v29  ;;  %v620_v35 = vmax.f32 %v502_v30, 0.0 }
  0xed   : > { %v5790_v36 = vpack.c.bf16 %v617_v32, %v617_v32  ;;  %v618_v37 = vmax.f32 %v494_v33, 0.0 }
  0xee   : > { %v824_v38 = vshrl.u32 %v5792_v34, 16  ;;  %v5793_v39 = vpack.c.bf16 %v620_v35, %v620_v35  ;;  %v827_v40 = vshll.u32 %v5792_v34, 16 }
  0xef   : > { %v807_v41 = vshrl.u32 %v5790_v36, 16  ;;  %v810_v42 = vshll.u32 %v5790_v36, 16  ;;  %v5791_v43 = vpack.c.bf16 %v618_v37, %v618_v37  ;;  %v6089_v44 = vpop.f32.mrb[4].mxu0 }
  0xf0   : > { %v826_v45 = vrot.slane %v824_v38, 7  ;;  %v832_v46 = vshrl.u32 %v5793_v39, 16  ;;  %v835_v47 = vshll.u32 %v5793_v39, 16  ;;  %v515_v48 = vadd.f32 %v6089_v44, %v7280_v23  ;;  %v506_v49 = vpop.f32.mrb[5].mxu0  ;;  %v1146_v38 = vld [vmem:[#allocation2 + $0x24] sm:$0xf] }
  0xf1   : > { %v809_v53 = vrot.slane %v807_v41, 7  ;;  %v815_v54 = vshrl.u32 %v5791_v43, 16  ;;  %v818_v55 = vshll.u32 %v5791_v43, 16  ;;  %v507_v56 = vadd.f32 %v7280_v23, %v506_v49  ;;  %v6090_v57 = vpop.f32.mrb[6].mxu0 }
  0xf2   : > { %v829_v58 = vor.u32 %v827_v40, %v826_v45  ;;  %v830_v59 = vrot.slane %v826_v45, 4  ;;  %v834_v62 = vrot.slane %v832_v46, 7  ;;  %v623_v63 = vmax.f32 %v515_v48, 0.0  ;;  %v509_v0 = vpop.f32.mrb[7].mxu0 }
  0xf3   : > { %v812_v1 = vor.u32 %v810_v42, %v809_v53  ;;  %v813_v2 = vrot.slane %v809_v53, 4  ;;  %v817_v5 = vrot.slane %v815_v54, 7  ;;  %v621_v6 = vmax.f32 %v507_v56, 0.0 }
  0xf4   : > { %v1140_v7 = vsel %vm7294_vm7, %v829_v58, %v1139_v52  ;;  %v837_v8 = vor.u32 %v835_v47, %v834_v62  ;;  %v839_v9 = vrot.slane %v834_v62, 4  ;;  %v5796_v11 = vpack.c.bf16 %v623_v63, %v623_v63  ;;  %v1150_v62 = vld [vmem:[#allocation2 + $0x2c] sm:$0x1] }
  0xf5   : > { %1141 = vst [vmem:[#allocation2 + $0x18] sm:$0xf] %v1140_v7  ;;  %v1131_v12 = vsel %vm7294_vm7, %v812_v1, %v1130_v60  ;;  %v820_v13 = vor.u32 %v818_v55, %v817_v5  ;;  %v822_v14 = vrot.slane %v817_v5, 4  ;;  %v5794_v15 = vpack.c.bf16 %v621_v6, %v621_v6  ;;  %v1157_v60 = vld [vmem:[#allocation2 + $0x38] sm:$0x1] }
  0xf6   : > { %1132 = vst [vmem:[#allocation2 + $0xc] sm:$0xf] %v1131_v12  ;;  %v838_v16 = vsel %vm7303_vm8, %v830_v59, %v837_v8  ;;  %v1144_v17 = vsel %vm7309_vm9, %v839_v9, %v1143_v4  ;;  %v858_v18 = vshrl.u32 %v5796_v11, 16  ;;  %v861_v22 = vshll.u32 %v5796_v11, 16  ;;  %v1167_v11 = vld [vmem:[#allocation2 + $0x48] sm:$0xf] }
  0xf7   : > { %1142 = vst.msk [vmem:[#allocation2 + $0x1c] sm:$0xf] %vm665_vm1, %v838_v16  ;;  %1145 = vst [vmem:[#allocation2 + $0x20] sm:$0x1] %v1144_v17  ;;  %v821_v19 = vsel %vm7303_vm8, %v813_v2, %v820_v13  ;;  %v1137_v20 = vsel %vm7309_vm9, %v822_v14, %v1136_v10  ;;  %v841_v24 = vshrl.u32 %v5794_v15, 16  ;;  %v6093_v25 = vpop.f32.mrb[8].mxu0  ;;  %v518_v27 = vadd.f32 %v6090_v57, %v7280_v23 }
  0xf8   : > { %1133 = vst.msk [vmem:[#allocation2 + $0x10] sm:$0xf] %vm665_vm1, %v821_v19  ;;  %1138 = vst [vmem:[#allocation2 + $0x14] sm:$0x1] %v1137_v20  ;;  %v7327_v26 = vrot.slane %v858_v18, 7  ;;  %v510_v28 = vadd.f32 %v7280_v23, %v509_v0  ;;  %v531_v29 = vadd.f32 %v6093_v25, %v7280_v23  ;;  %v522_v30 = vpop.f32.mrb[9].mxu0 }
  0xf9   : > { %v843_v32 = vrot.slane %v841_v24, 7  ;;  %v844_v33 = vshll.u32 %v5794_v15, 16  ;;  %v523_v34 = vadd.f32 %v7280_v23, %v522_v30  ;;  %v6094_v35 = vpop.f32.mrb[10].mxu0  ;;  %v624_v39 = vmax.f32 %v518_v27, 0.0  ;;  %v1160_v20 = vld [vmem:[#allocation2 + $0x3c] sm:$0xf] }
  0xfa   : > { %v863_v36 = vor.u32 %v861_v22, %v7327_v26  ;;  %v864_v37 = vrot.slane %v7327_v26, 4  ;;  %v622_v40 = vmax.f32 %v510_v28, 0.0  ;;  %v525_v41 = vpop.f32.mrb[11].mxu0  ;;  %v627_v44 = vmax.f32 %v531_v29, 0.0 }
  0xfb   : > { %v846_v42 = vor.u32 %v844_v33, %v843_v32  ;;  %v847_v43 = vrot.slane %v843_v32, 4  ;;  %v625_v45 = vmax.f32 %v523_v34, 0.0  ;;  %v5797_v47 = vpack.c.bf16 %v624_v39, %v624_v39 }
  0xfc   : > { %v1154_v46 = vsel %vm7294_vm7, %v863_v36, %v1153_v31  ;;  %v5795_v48 = vpack.c.bf16 %v622_v40, %v622_v40  ;;  %v534_v49 = vadd.f32 %v6094_v35, %v7280_v23  ;;  %v5800_v53 = vpack.c.bf16 %v627_v44, %v627_v44 }
  0xfd   : > { %1155 = vst [vmem:[#allocation2 + $0x30] sm:$0xf] %v1154_v46  ;;  %v1147_v52 = vsel %vm7294_vm7, %v846_v42, %v1146_v38  ;;  %v5798_v54 = vpack.c.bf16 %v625_v45, %v625_v45  ;;  %v526_v55 = vadd.f32 %v7280_v23, %v525_v41  ;;  %v866_v56 = vshrl.u32 %v5797_v47, 16  ;;  %v1171_v45 = vld [vmem:[#allocation2 + $0x50] sm:$0x1] }
  0xfe   : > { %1148 = vst [vmem:[#allocation2 + $0x24] sm:$0xf] %v1147_v52  ;;  %v869_v57 = vshll.u32 %v5797_v47, 16  ;;  %v849_v58 = vshrl.u32 %v5795_v48, 16  ;;  %v852_v59 = vshll.u32 %v5795_v48, 16  ;;  %v892_v63 = vshrl.u32 %v5800_v53, 16 }
  0xff   : > { %v895_v0 = vshll.u32 %v5800_v53, 16  ;;  %v875_v1 = vshrl.u32 %v5798_v54, 16  ;;  %v878_v2 = vshll.u32 %v5798_v54, 16  ;;  %v6097_v4 = vpop.f32.mrb[12].mxu0  ;;  %v868_v5 = vrot.slane %v866_v56, 7 }
 0x100   : > { %v851_v6 = vrot.slane %v849_v58, 7  ;;  %v628_v7 = vmax.f32 %v534_v49, 0.0  ;;  %v626_v8 = vmax.f32 %v526_v55, 0.0  ;;  %v538_v9 = vpop.f32.mrb[13].mxu0  ;;  %v7341_v10 = vrot.slane %v892_v63, 7 }
 0x101   : > { %v7343_v12 = vrot.slane %v875_v1, 7  ;;  %v547_v13 = vadd.f32 %v6097_v4, %v7280_v23  ;;  %v539_v14 = vadd.f32 %v7280_v23, %v538_v9  ;;  %v6098_v15 = vpop.f32.mrb[14].mxu0  ;;  %v871_v16 = vor.u32 %v869_v57, %v868_v5  ;;  %v7370_v39 = vld [vmem:[#allocation2 + $0x10] sm:$0xf]  ;;  %v7373_v52 = vld [vmem:[#allocation2 + $0xc] sm:$0xf] }
 0x102   : > { %v873_v17 = vrot.slane %v868_v5, 4  ;;  %v854_v18 = vor.u32 %v852_v59, %v851_v6  ;;  %v856_v19 = vrot.slane %v851_v6, 4  ;;  %v541_v22 = vpop.f32.mrb[15].mxu0  ;;  %v897_v24 = vor.u32 %v895_v0, %v7341_v10  ;;  %v1164_v57 = vld [vmem:[#allocation2 + $0x44] sm:$0x1] }
 0x103   : > { %v898_v25 = vrot.slane %v7341_v10, 4  ;;  %v880_v26 = vor.u32 %v878_v2, %v7343_v12  ;;  %v7352_v27 = vsel %vm1495_vm2, %v7290_v50, 0  ;;  %v872_v28 = vsel %vm7303_vm8, %v864_v37, %v871_v16  ;;  %v1174_v10 = vld [vmem:[#allocation2 + $0x54] sm:$0xf] }
 0x104   : > { %v1158_v29 = vsel %vm7309_vm9, %v873_v17, %v1157_v60  ;;  %v855_v30 = vsel %vm7303_vm8, %v847_v43, %v854_v18  ;;  %v1151_v31 = vsel %vm7309_vm9, %v856_v19, %v1150_v62  ;;  %1156 = vst.msk [vmem:[#allocation2 + $0x34] sm:$0xf] %vm665_vm1, %v872_v28  ;;  %v1168_v50 = vsel %vm7294_vm7, %v897_v24, %v1167_v11  ;;  %v7389_v17 = vld [vmem:[#allocation2 + $0x14] sm:$0xf]  ;;  %v1251_v18 = vld [vmem:[#allocation2 + $0x1c] sm:$0xf] }
 0x105   : > { %1159 = vst [vmem:[#allocation2 + $0x38] sm:$0x1] %v1158_v29  ;;  %1149 = vst.msk [vmem:[#allocation2 + $0x28] sm:$0xf] %vm665_vm1, %v855_v30  ;;  %v1161_v32 = vsel %vm7294_vm7, %v880_v26, %v1160_v20  ;;  %v5801_v33 = vpack.c.bf16 %v628_v7, %v628_v7  ;;  %v5799_v34 = vpack.c.bf16 %v626_v8, %v626_v8  ;;  %v631_v35 = vmax.f32 %v547_v13, 0.0 }
 0x106   : > { %1152 = vst [vmem:[#allocation2 + $0x2c] sm:$0x1] %v1151_v31  ;;  %1169 = vst [vmem:[#allocation2 + $0x48] sm:$0xf] %v1168_v50  ;;  %v629_v36 = vmax.f32 %v539_v14, 0.0  ;;  %v550_v37 = vadd.f32 %v6098_v15, %v7280_v23  ;;  %v542_v38 = vadd.f32 %v7280_v23, %v541_v22  ;;  %v881_v40 = vrot.slane %v7343_v12, 4 }
 0x107   : > { %1162 = vst [vmem:[#allocation2 + $0x3c] sm:$0xf] %v1161_v32  ;;  %v900_v41 = vshrl.u32 %v5801_v33, 16  ;;  %v903_v42 = vshll.u32 %v5801_v33, 16  ;;  %v883_v43 = vshrl.u32 %v5799_v34, 16  ;;  %v6101_v44 = vpop.f32.mrb[16].mxu0  ;;  %v5804_v46 = vpack.c.bf16 %v631_v35, %v631_v35 }
 0x108   : > { %v5802_v47 = vpack.c.bf16 %v629_v36, %v629_v36  ;;  %v632_v48 = vmax.f32 %v550_v37, 0.0  ;;  %v630_v49 = vmax.f32 %v542_v38, 0.0  ;;  %v554_v53 = vpop.f32.mrb[17].mxu0  ;;  %v886_v56 = vshll.u32 %v5799_v34, 16  ;;  %v1181_v8 = vld [vmem:[#allocation2 + $0x60] sm:$0xf] }
 0x109   : > { %v902_v54 = vrot.slane %v900_v41, 7  ;;  %v885_v55 = vrot.slane %v883_v43, 7  ;;  %v7377_v58 = vcombine.low %v7373_v52, %v7370_v39  ;;  %v6102_v59 = vpop.f32.mrb[18].mxu0  ;;  %v926_v60 = vshrl.u32 %v5804_v46, 16  ;;  %v1252_v19 = vld [vmem:[#allocation2 + $0x20] sm:$0xf] }
 0x10a   : > { %v929_v62 = vshll.u32 %v5804_v46, 16  ;;  %v909_v63 = vshrl.u32 %v5802_v47, 16  ;;  %v912_v0 = vshll.u32 %v5802_v47, 16  ;;  %v557_v1 = vpop.f32.mrb[19].mxu0  ;;  %v5805_v11 = vpack.c.bf16 %v632_v48, %v632_v48  ;;  %v1250_v26 = vld [vmem:[#allocation2 + $0x18] sm:$0xf] }
 0x10b   : > { %8901 = vst [vmem:[#allocation4_spill] sm:$0xff] %v7377_v58  ;;  %v905_v2 = vor.u32 %v903_v42, %v902_v54  ;;  %v907_v4 = vrot.slane %v902_v54, 4  ;;  %v888_v5 = vor.u32 %v886_v56, %v885_v55  ;;  %v890_v6 = vrot.slane %v885_v55, 4  ;;  %6117 = vmatprep.mubr.msk.bf16.mxu0 %vm1422_vm10, %v7377_v58  ;;  %v1253_v43 = vld [vmem:[#allocation2 + $0x24] sm:$0xf] }
 0x10c   : > { %v928_v7 = vrot.slane %v926_v60, 7  ;;  %v911_v9 = vrot.slane %v909_v63, 7  ;;  %v5803_v12 = vpack.c.bf16 %v630_v49, %v630_v49  ;;  %v1254_v28 = vld [vmem:[#allocation2 + $0x28] sm:$0xf]  ;;  %v934_v29 = vshrl.u32 %v5805_v11, 16 }
 0x10d   : > { %v906_v13 = vsel %vm7303_vm8, %v898_v25, %v905_v2  ;;  %v1172_v14 = vsel %vm7309_vm9, %v907_v4, %v1171_v45  ;;  %v889_v15 = vsel %vm7303_vm8, %v881_v40, %v888_v5  ;;  %v1165_v16 = vsel %vm7309_vm9, %v890_v6, %v1164_v57  ;;  %v1185_v46 = vld [vmem:[#allocation2 + $0x68] sm:$0x1]  ;;  %v1178_v47 = vld [vmem:[#allocation2 + $0x5c] sm:$0x1]  ;;  %v1255_v4 = vld [vmem:[#allocation2 + $0x2c] sm:$0xf] }
 0x10e   : > { %1170 = vst.msk [vmem:[#allocation2 + $0x4c] sm:$0xf] %vm665_vm1, %v906_v13  ;;  %1173 = vst [vmem:[#allocation2 + $0x50] sm:$0x1] %v1172_v14  ;;  %v931_v20 = vor.u32 %v929_v62, %v928_v7  ;;  %v932_v22 = vrot.slane %v928_v7, 4  ;;  %v914_v24 = vor.u32 %v912_v0, %v911_v9  ;;  %v915_v25 = vrot.slane %v911_v9, 4 }
 0x10f   : > { %1163 = vst.msk [vmem:[#allocation2 + $0x40] sm:$0xf] %vm665_vm1, %v889_v15  ;;  %1166 = vst [vmem:[#allocation2 + $0x44] sm:$0x1] %v1165_v16  ;;  %v937_v30 = vshll.u32 %v5805_v11, 16  ;;  %v917_v31 = vshrl.u32 %v5803_v12, 16  ;;  %v7398_v35 = vcombine.low %v7389_v17, %v1250_v26  ;;  %v7400_v36 = vcombine.low %v1251_v18, %v1252_v19 }
 0x110   : > { %v920_v50 = vshll.u32 %v5803_v12, 16  ;;  %v6105_v32 = vpop.f32.mrb[20].mxu0  ;;  %v1182_v33 = vsel %vm7294_vm7, %v931_v20, %v1181_v8  ;;  %v1175_v34 = vsel %vm7294_vm7, %v914_v24, %v1174_v10  ;;  %v936_v38 = vrot.slane %v934_v29, 7  ;;  %v7425_v10 = vld [vmem:[#allocation2 + $0x30] sm:$0xf] }
 0x111   : > { %8902 = vst [vmem:[#allocation5_spill] sm:$0xff] %v7398_v35  ;;  %v570_v37 = vpop.f32.mrb[21].mxu0  ;;  %1183 = vst [vmem:[#allocation2 + $0x60] sm:$0xf] %v1182_v33  ;;  %v919_v40 = vrot.slane %v917_v31, 7  ;;  %v7402_v41 = vcombine.low %v1250_v26, %v1251_v18  ;;  %v563_v42 = vadd.f32 %v6101_v44, %v7280_v23  ;;  %6118 = vmatmul.mubr.msk.bf16.vlgmr.msra.gmra.mrb[32].mxu0 %vm1422_vm10, %v7398_v35 }
 0x112   : > { %1176 = vst [vmem:[#allocation2 + $0x54] sm:$0xf] %v1175_v34  ;;  %v6106_v45 = vpop.f32.mrb[22].mxu0  ;;  %v555_v48 = vadd.f32 %v7280_v23, %v554_v53  ;;  %v566_v49 = vadd.f32 %v6102_v59, %v7280_v23  ;;  %v558_v54 = vadd.f32 %v7280_v23, %v557_v1  ;;  %v7410_v55 = vcombine.low %v1253_v43, %v1254_v28  ;;  %v1195_v34 = vld [vmem:[#allocation2 + $0x78] sm:$0xf] }
 0x113   : > { %v573_v56 = vpop.f32.mrb[23].mxu0  ;;  %v939_v57 = vor.u32 %v937_v30, %v936_v38  ;;  %v941_v60 = vrot.slane %v936_v38, 4  ;;  %v922_v62 = vor.u32 %v920_v50, %v919_v40  ;;  %v924_v44 = vrot.slane %v919_v40, 4  ;;  %6121 = vmatprep.mubr.msk.bf16.mxu0 %vm1422_vm10, %v7400_v36  ;;  %6166 = vmatpush3.bf16.msra.mxu0 %v7352_v27  ;;  %v1188_v38 = vld [vmem:[#allocation2 + $0x6c] sm:$0xf] }
 0x114   : > { %8903 = vst [vmem:[#allocation6_spill] sm:$0xff] %v7410_v55  ;;  %v635_v63 = vmax.f32 %v563_v42, 0.0  ;;  %v633_v0 = vmax.f32 %v555_v48, 0.0  ;;  %v636_v2 = vmax.f32 %v566_v49, 0.0  ;;  %v634_v53 = vmax.f32 %v558_v54, 0.0 }
 0x115   : > { %v940_v59 = vsel %vm7303_vm8, %v932_v22, %v939_v57  ;;  %v1186_v1 = vsel %vm7309_vm9, %v941_v60, %v1185_v46  ;;  %v923_v5 = vsel %vm7303_vm8, %v915_v25, %v922_v62  ;;  %v1179_v6 = vsel %vm7309_vm9, %v924_v44, %v1178_v47  ;;  %v1199_v57 = vld [vmem:[#allocation2 + $0x80] sm:$0x1]  ;;  %v1192_v60 = vld [vmem:[#allocation2 + $0x74] sm:$0x1] }
 0x116   : > { %1184 = vst.msk [vmem:[#allocation2 + $0x64] sm:$0xf] %vm665_vm1, %v940_v59  ;;  %1187 = vst [vmem:[#allocation2 + $0x68] sm:$0x1] %v1186_v1  ;;  %v5808_v27 = vpack.c.bf16 %v635_v63, %v635_v63  ;;  %v5806_v7 = vpack.c.bf16 %v633_v0, %v633_v0  ;;  %v5809_v8 = vpack.c.bf16 %v636_v2, %v636_v2  ;;  %v1257_v0 = vld [vmem:[#allocation2 + $0x34] sm:$0xf] }
 0x117   : > { %1177 = vst.msk [vmem:[#allocation2 + $0x58] sm:$0xf] %vm665_vm1, %v923_v5  ;;  %1180 = vst [vmem:[#allocation2 + $0x5c] sm:$0x1] %v1179_v6  ;;  %v5807_v9 = vpack.c.bf16 %v634_v53, %v634_v53  ;;  %v7427_v11 = vcombine.low %v1252_v19, %v1253_v43  ;;  %v7430_v12 = vcombine.low %v1255_v4, %v7425_v10  ;;  %v7435_v15 = vpop.f32.mrb[24].mxu0 }
 0x118   : > { %v7432_v13 = vcombine.low %v1254_v28, %v1255_v4  ;;  %v579_v14 = vadd.f32 %v6105_v32, %v7280_v23  ;;  %v960_v16 = vshrl.u32 %v5808_v27, 16  ;;  %v963_v18 = vshll.u32 %v5808_v27, 16  ;;  %v7437_v24 = vpop.f32.mrb[25].mxu0  ;;  %v7454_v59 = vld [vmem:[#allocation2 + $0x40] sm:$0xf] }
 0x119   : > { %8904 = vst [vmem:[#allocation7_spill] sm:$0xff] %v7430_v12  ;;  %v943_v20 = vshrl.u32 %v5806_v7, 16  ;;  %v946_v22 = vshll.u32 %v5806_v7, 16  ;;  %v968_v25 = vshrl.u32 %v5809_v8, 16  ;;  %v971_v26 = vshll.u32 %v5809_v8, 16  ;;  %v7439_v30 = vpop.f32.mrb[26].mxu0  ;;  %6122 = vmatmul.mubr.msk.bf16.gmra.mrb[36].mxu0 %vm1422_vm10, %v7410_v55 }
 0x11a   : > { %v951_v29 = vshrl.u32 %v5807_v9, 16  ;;  %v954_v19 = vshll.u32 %v5807_v9, 16  ;;  %v962_v31 = vrot.slane %v960_v16, 7  ;;  %v639_v28 = vmax.f32 %v579_v14, 0.0  ;;  %v7444_v33 = vpop.f32.mrb[27].mxu0  ;;  %6125 = vmatprep.mubr.msk.bf16.mxu0 %vm1422_vm10, %v7430_v12 }
 0x11b   : > { %v945_v50 = vrot.slane %v943_v20, 7  ;;  %v571_v32 = vadd.f32 %v7280_v23, %v570_v37  ;;  %v970_v40 = vrot.slane %v968_v25, 7  ;;  %v582_v43 = vadd.f32 %v6106_v45, %v7280_v23 }
 0x11c   : > { %v953_v42 = vrot.slane %v951_v29, 7  ;;  %v574_v46 = vadd.f32 %v7280_v23, %v573_v56  ;;  %v965_v47 = vor.u32 %v963_v18, %v962_v31  ;;  %v966_v48 = vrot.slane %v962_v31, 4  ;;  %v1258_v56 = vld [vmem:[#allocation2 + $0x38] sm:$0xf]  ;;  %v1259_v18 = vld [vmem:[#allocation2 + $0x3c] sm:$0xf] }
 0x11d   : > { %v948_v49 = vor.u32 %v946_v22, %v945_v50  ;;  %v949_v54 = vrot.slane %v945_v50, 4  ;;  %v973_v37 = vor.u32 %v971_v26, %v970_v40  ;;  %v975_v62 = vrot.slane %v970_v40, 4 }
 0x11e   : > { %v956_v44 = vor.u32 %v954_v19, %v953_v42  ;;  %v958_v63 = vrot.slane %v953_v42, 4  ;;  %v1196_v2 = vsel %vm7294_vm7, %v965_v47, %v1195_v34  ;;  %v5812_v45 = vpack.c.bf16 %v639_v28, %v639_v28 }
 0x11f   : > { %v1189_v53 = vsel %vm7294_vm7, %v948_v49, %v1188_v38  ;;  %v637_v4 = vmax.f32 %v571_v32, 0.0  ;;  %1197 = vst [vmem:[#allocation2 + $0x78] sm:$0xf] %v1196_v2  ;;  %v974_v1 = vsel %vm7303_vm8, %v966_v48, %v973_v37  ;;  %v1200_v5 = vsel %vm7309_vm9, %v975_v62, %v1199_v57  ;;  %v7464_v7 = vpop.f32.mrb[28].mxu0  ;;  %v1209_v38 = vld [vmem:[#allocation2 + $0x90] sm:$0xf] }
 0x120   : > { %1190 = vst [vmem:[#allocation2 + $0x6c] sm:$0xf] %v1189_v53  ;;  %v957_v6 = vsel %vm7303_vm8, %v949_v54, %v956_v44  ;;  %v1193_v27 = vsel %vm7309_vm9, %v958_v63, %v1192_v60  ;;  %1198 = vst.msk [vmem:[#allocation2 + $0x7c] sm:$0xf] %vm665_vm1, %v974_v1  ;;  %v994_v8 = vshrl.u32 %v5812_v45, 16  ;;  %v997_v9 = vshll.u32 %v5812_v45, 16 }
 0x121   : > { %1201 = vst [vmem:[#allocation2 + $0x80] sm:$0x1] %v1200_v5  ;;  %1191 = vst.msk [vmem:[#allocation2 + $0x70] sm:$0xf] %vm665_vm1, %v957_v6  ;;  %v5810_v14 = vpack.c.bf16 %v637_v4, %v637_v4  ;;  %v640_v16 = vmax.f32 %v582_v43, 0.0  ;;  %v7468_v20 = vpop.f32.mrb[29].mxu0  ;;  %v7470_v25 = vcombine.low %v1257_v0, %v1258_v56  ;;  %v7473_v26 = vcombine.low %v7425_v10, %v1257_v0 }
 0x122   : > { %1194 = vst [vmem:[#allocation2 + $0x74] sm:$0x1] %v1193_v27  ;;  %v638_v22 = vmax.f32 %v574_v46, 0.0  ;;  %v7476_v29 = vcombine.low %v1259_v18, %v7454_v59  ;;  %v7478_v19 = vpop.f32.mrb[30].mxu0  ;;  %v996_v31 = vrot.slane %v994_v8, 7  ;;  %v7484_v42 = vcombine.low %v1258_v56, %v1259_v18 }
 0x123   : > { %8905 = vst [vmem:[#allocation8_spill] sm:$0xff] %v7470_v25  ;;  %v977_v50 = vshrl.u32 %v5810_v14, 16  ;;  %v980_v28 = vshll.u32 %v5810_v14, 16  ;;  %v5813_v32 = vpack.c.bf16 %v640_v16, %v640_v16  ;;  %v7480_v34 = vpop.f32.mrb[31].mxu0  ;;  %6126 = vmatmul.mubr.msk.bf16.gmra.mrb[40].mxu0 %vm1422_vm10, %v7470_v25  ;;  %v595_v10 = vadd.f32 %v7435_v15, %v7280_v23  ;;  %v1202_v54 = vld [vmem:[#allocation2 + $0x84] sm:$0xf] }
 0x124   : > { %8906 = vst [vmem:[#allocation9_spill] sm:$0xff] %v7476_v29  ;;  %v5811_v40 = vpack.c.bf16 %v638_v22, %v638_v22  ;;  %v587_v43 = vadd.f32 %v7280_v23, %v7437_v24  ;;  %v999_v46 = vor.u32 %v997_v9, %v996_v31  ;;  %v1000_v47 = vrot.slane %v996_v31, 4  ;;  %6129 = vmatprep.mubr.msk.bf16.mxu0 %vm1422_vm10, %v7476_v29  ;;  %v1213_v24 = vld [vmem:[#allocation2 + $0x98] sm:$0x1]  ;;  %v1206_v6 = vld [vmem:[#allocation2 + $0x8c] sm:$0x1] }
 0x125   : > { %v979_v48 = vrot.slane %v977_v50, 7  ;;  %v1002_v49 = vshrl.u32 %v5813_v32, 16  ;;  %v1005_v57 = vshll.u32 %v5813_v32, 16  ;;  %v643_v62 = vmax.f32 %v595_v10, 0.0  ;;  %v1261_v18 = vld [vmem:[#allocation2 + $0x44] sm:$0xf] }
 0x126   : > { %v985_v60 = vshrl.u32 %v5811_v40, 16  ;;  %v988_v37 = vshll.u32 %v5811_v40, 16  ;;  %v1210_v44 = vsel %vm7294_vm7, %v999_v46, %v1209_v38  ;;  %v641_v45 = vmax.f32 %v587_v43, 0.0  ;;  %v1263_v10 = vld [vmem:[#allocation2 + $0x4c] sm:$0xf] }
 0x127   : > { %v982_v63 = vor.u32 %v980_v28, %v979_v48  ;;  %v983_v15 = vrot.slane %v979_v48, 4  ;;  %v1004_v0 = vrot.slane %v1002_v49, 7  ;;  %1211 = vst [vmem:[#allocation2 + $0x90] sm:$0xf] %v1210_v44  ;;  %v5816_v53 = vpack.c.bf16 %v643_v62, %v643_v62  ;;  %v1262_v28 = vld [vmem:[#allocation2 + $0x48] sm:$0xf] }
 0x128   : > { %v987_v2 = vrot.slane %v985_v60, 7  ;;  %v598_v4 = vadd.f32 %v7439_v30, %v7280_v23  ;;  %v590_v27 = vadd.f32 %v7280_v23, %v7444_v33  ;;  %v5814_v31 = vpack.c.bf16 %v641_v45, %v641_v45  ;;  %v7509_v43 = vld [vmem:[#allocation2 + $0x50] sm:$0xf]  ;;  %v1223_v46 = vld [vmem:[#allocation2 + $0xa8] sm:$0xf] }
 0x129   : > { %v1203_v56 = vsel %vm7294_vm7, %v982_v63, %v1202_v54  ;;  %v1007_v1 = vor.u32 %v1005_v57, %v1004_v0  ;;  %v1009_v5 = vrot.slane %v1004_v0, 4  ;;  %v1028_v14 = vshrl.u32 %v5816_v53, 16  ;;  %v1276_v61 = vld [vmem:[#allocation2 + $0x80] sm:$0xf] }
 0x12a   : > { %1204 = vst [vmem:[#allocation2 + $0x84] sm:$0xf] %v1203_v56  ;;  %v990_v8 = vor.u32 %v988_v37, %v987_v2  ;;  %v992_v9 = vrot.slane %v987_v2, 4  ;;  %v1031_v16 = vshll.u32 %v5816_v53, 16  ;;  %v644_v50 = vmax.f32 %v598_v4, 0.0 }
 0x12b   : > { %v1008_v22 = vsel %vm7303_vm8, %v1000_v47, %v1007_v1  ;;  %v1214_v30 = vsel %vm7309_vm9, %v1009_v5, %v1213_v24  ;;  %v1030_v38 = vrot.slane %v1028_v14, 7  ;;  %v642_v40 = vmax.f32 %v590_v27, 0.0  ;;  %v1216_v2 = vld [vmem:[#allocation2 + $0x9c] sm:$0xf] }
 0x12c   : > { %1212 = vst.msk [vmem:[#allocation2 + $0x94] sm:$0xf] %vm665_vm1, %v1008_v22  ;;  %1215 = vst [vmem:[#allocation2 + $0x98] sm:$0x1] %v1214_v30  ;;  %v991_v33 = vsel %vm7303_vm8, %v983_v15, %v990_v8  ;;  %v1207_v32 = vsel %vm7309_vm9, %v992_v9, %v1206_v6  ;;  %v1011_v47 = vshrl.u32 %v5814_v31, 16  ;;  %v1014_v48 = vshll.u32 %v5814_v31, 16 }
 0x12d   : > { %1205 = vst.msk [vmem:[#allocation2 + $0x88] sm:$0xf] %vm665_vm1, %v991_v33  ;;  %1208 = vst [vmem:[#allocation2 + $0x8c] sm:$0x1] %v1207_v32  ;;  %v5817_v49 = vpack.c.bf16 %v644_v50, %v644_v50  ;;  %v7512_v54 = vcombine.low %v1261_v18, %v1262_v28  ;;  %v1033_v57 = vor.u32 %v1031_v16, %v1030_v38  ;;  %v1034_v60 = vrot.slane %v1030_v38, 4 }
 0x12e   : > { %v5815_v37 = vpack.c.bf16 %v642_v40, %v642_v40  ;;  %v7515_v62 = vcombine.low %v7454_v59, %v1261_v18  ;;  %v1013_v44 = vrot.slane %v1011_v47, 7  ;;  %v7520_v0 = vcombine.low %v1263_v10, %v7509_v43  ;;  %v1227_v6 = vld [vmem:[#allocation2 + $0xb0] sm:$0x1]  ;;  %v1220_v30 = vld [vmem:[#allocation2 + $0xa4] sm:$0x1] }
 0x12f   : > { %8907 = vst [vmem:[#allocation10_spill] sm:$0xff] %v7512_v54  ;;  %v1036_v63 = vshrl.u32 %v5817_v49, 16  ;;  %v1039_v15 = vshll.u32 %v5817_v49, 16  ;;  %6130 = vmatmul.mubr.msk.bf16.gmra.mrb[44].mxu0 %vm1422_vm10, %v7512_v54  ;;  %v1224_v24 = vsel %vm7294_vm7, %v1033_v57, %v1223_v46  ;;  %v7524_v4 = vcombine.low %v1262_v28, %v1263_v10  ;;  %v1266_v32 = vld [vmem:[#allocation2 + $0x58] sm:$0xf] }
 0x130   : > { %8908 = vst [vmem:[#allocation11_spill] sm:$0xff] %v7520_v0  ;;  %v1019_v53 = vshrl.u32 %v5815_v37, 16  ;;  %v1022_v45 = vshll.u32 %v5815_v37, 16  ;;  %1225 = vst [vmem:[#allocation2 + $0xa8] sm:$0xf] %v1224_v24  ;;  %v1016_v59 = vor.u32 %v1014_v48, %v1013_v44  ;;  %v1017_v56 = vrot.slane %v1013_v44, 4  ;;  %6133 = vmatprep.mubr.msk.bf16.mxu0 %vm1422_vm10, %v7520_v0 }
 0x131   : > { %v1038_v1 = vrot.slane %v1036_v63, 7  ;;  %v611_v5 = vadd.f32 %v7464_v7, %v7280_v23  ;;  %v603_v8 = vadd.f32 %v7280_v23, %v7468_v20  ;;  %v614_v9 = vadd.f32 %v7478_v19, %v7280_v23  ;;  %v1265_v47 = vld [vmem:[#allocation2 + $0x54] sm:$0xf]  ;;  %v1237_v44 = vld [vmem:[#allocation2 + $0xc0] sm:$0xf] }
 0x132   : > { %v1021_v27 = vrot.slane %v1019_v53, 7  ;;  %v606_v14 = vadd.f32 %v7280_v23, %v7480_v34  ;;  %v1217_v16 = vsel %vm7294_vm7, %v1016_v59, %v1216_v2  ;;  %v7548_v57 = vcombine.low %v1265_v47, %v1266_v32  ;;  %v1230_v53 = vld [vmem:[#allocation2 + $0xb4] sm:$0xf]  ;;  %v1241_v59 = vld [vmem:[#allocation2 + $0xc8] sm:$0x1] }
 0x133   : > { %v1041_v18 = vor.u32 %v1039_v15, %v1038_v1  ;;  %v1043_v22 = vrot.slane %v1038_v1, 4  ;;  %v647_v31 = vmax.f32 %v611_v5, 0.0  ;;  %1218 = vst [vmem:[#allocation2 + $0x9c] sm:$0xf] %v1217_v16  ;;  %v645_v28 = vmax.f32 %v603_v8, 0.0 }
 0x134   : > { %v1024_v7 = vor.u32 %v1022_v45, %v1021_v27  ;;  %v1026_v50 = vrot.slane %v1021_v27, 4  ;;  %v648_v33 = vmax.f32 %v614_v9, 0.0  ;;  %v646_v34 = vmax.f32 %v606_v14, 0.0  ;;  %8909 = vst [vmem:[#allocation12_spill] sm:$0xff] %v7548_v57  ;;  %v1268_v5 = vld [vmem:[#allocation2 + $0x60] sm:$0xf] }
 0x135   : > { %v1042_v20 = vsel %vm7303_vm8, %v1034_v60, %v1041_v18  ;;  %v1228_v19 = vsel %vm7309_vm9, %v1043_v22, %v1227_v6  ;;  %v5820_v23 = vpack.c.bf16 %v647_v31, %v647_v31  ;;  %v5818_v10 = vpack.c.bf16 %v645_v28, %v645_v28  ;;  %v1267_v60 = vld [vmem:[#allocation2 + $0x5c] sm:$0xf]  ;;  %v1269_v16 = vld [vmem:[#allocation2 + $0x64] sm:$0xf]  ;;  %v1270_v18 = vld [vmem:[#allocation2 + $0x68] sm:$0xf] }
 0x136   : > { %1226 = vst.msk [vmem:[#allocation2 + $0xac] sm:$0xf] %vm665_vm1, %v1042_v20  ;;  %1229 = vst [vmem:[#allocation2 + $0xb0] sm:$0x1] %v1228_v19  ;;  %v1025_v38 = vsel %vm7303_vm8, %v1017_v56, %v1024_v7  ;;  %v1221_v40 = vsel %vm7309_vm9, %v1026_v50, %v1220_v30  ;;  %v5821_v46 = vpack.c.bf16 %v648_v33, %v648_v33  ;;  %v1234_v8 = vld [vmem:[#allocation2 + $0xbc] sm:$0x1] }
 0x137   : > { %1219 = vst.msk [vmem:[#allocation2 + $0xa0] sm:$0xf] %vm665_vm1, %v1025_v38  ;;  %1222 = vst [vmem:[#allocation2 + $0xa4] sm:$0x1] %v1221_v40  ;;  %v1062_v48 = vshrl.u32 %v5820_v23, 16  ;;  %v5819_v49 = vpack.c.bf16 %v646_v34, %v646_v34  ;;  %v1065_v37 = vshll.u32 %v5820_v23, 16  ;;  %6134 = vmatmul.mubr.msk.bf16.gmra.mrb[48].mxu0 %vm1422_vm10, %v7548_v57  ;;  %v7553_v1 = vcombine.low %v7509_v43, %v1265_v47 }
 0x138   : > { %v1045_v63 = vshrl.u32 %v5818_v10, 16  ;;  %v1048_v15 = vshll.u32 %v5818_v10, 16  ;;  %v1070_v24 = vshrl.u32 %v5821_v46, 16  ;;  %v1073_v45 = vshll.u32 %v5821_v46, 16  ;;  %v1271_v50 = vld [vmem:[#allocation2 + $0x6c] sm:$0xf] }
 0x139   : > { %v1064_v2 = vrot.slane %v1062_v48, 7  ;;  %v1053_v56 = vshrl.u32 %v5819_v49, 16  ;;  %v7555_v9 = vcombine.low %v1267_v60, %v1268_v5  ;;  %v7557_v14 = vcombine.low %v1266_v32, %v1267_v60  ;;  %v1272_v19 = vld [vmem:[#allocation2 + $0x70] sm:$0xf]  ;;  %v1273_v23 = vld [vmem:[#allocation2 + $0x74] sm:$0xf] }
 0x13a   : > { %v1047_v6 = vrot.slane %v1045_v63, 7  ;;  %v1072_v27 = vrot.slane %v1070_v24, 7  ;;  %v1056_v7 = vshll.u32 %v5819_v49, 16  ;;  %v7563_v40 = vcombine.low %v1268_v5, %v1269_v16  ;;  %v1275_v10 = vld [vmem:[#allocation2 + $0x7c] sm:$0xf] }
 0x13b   : > { %8910 = vst [vmem:[#allocation13_spill] sm:$0xff] %v7555_v9  ;;  %v1067_v22 = vor.u32 %v1065_v37, %v1064_v2  ;;  %v1068_v30 = vrot.slane %v1064_v2, 4  ;;  %v1055_v31 = vrot.slane %v1053_v56, 7  ;;  %6137 = vmatprep.mubr.msk.bf16.mxu0 %vm1422_vm10, %v7555_v9  ;;  %v7565_v46 = vld [vmem:[#allocation2 + $0x84] sm:$0xf]  ;;  %v7586_v24 = vcombine.low %v1270_v18, %v1271_v50 }
 0x13c   : > { %v1050_v28 = vor.u32 %v1048_v15, %v1047_v6  ;;  %v1051_v33 = vrot.slane %v1047_v6, 4  ;;  %v1075_v20 = vor.u32 %v1073_v45, %v1072_v27  ;;  %v1077_v43 = vrot.slane %v1072_v27, 4  ;;  %v1274_v2 = vld [vmem:[#allocation2 + $0x78] sm:$0xf]  ;;  %v7588_v45 = vld [vmem:[#allocation2 + $0x8c] sm:$0xf] }
 0x13d   : > { %v1238_v32 = vsel %vm7294_vm7, %v1067_v22, %v1237_v44  ;;  %v1058_v34 = vor.u32 %v1056_v7, %v1055_v31  ;;  %v1060_v38 = vrot.slane %v1055_v31, 4  ;;  %v7577_v44 = vld [vmem:[#allocation2 + $0xac] sm:$0xf]  ;;  %v7584_v15 = vcombine.low %v1269_v16, %v1270_v18  ;;  %v7597_v3 = vld [vmem:[#allocation2 + $0xa8] sm:$0xf] }
 0x13e   : > { %1239 = vst [vmem:[#allocation2 + $0xc0] sm:$0xf] %v1238_v32  ;;  %v1231_v47 = vsel %vm7294_vm7, %v1050_v28, %v1230_v53  ;;  %v1076_v48 = vsel %vm7303_vm8, %v1068_v30, %v1075_v20  ;;  %v1242_v49 = vsel %vm7309_vm9, %v1077_v43, %v1241_v59  ;;  %v7573_v60 = vld [vmem:[#allocation2 + $0xa0] sm:$0xf]  ;;  %v7575_v37 = vld [vmem:[#allocation2 + $0xa4] sm:$0xf]  ;;  %v7591_v59 = vcombine.low %v1271_v50, %v1272_v19 }
 0x13f   : > { %1232 = vst [vmem:[#allocation2 + $0xb4] sm:$0xf] %v1231_v47  ;;  %1240 = vst.msk [vmem:[#allocation2 + $0xc4] sm:$0xf] %vm665_vm1, %v1076_v48  ;;  %v1059_v51 = vsel %vm7303_vm8, %v1051_v33, %v1058_v34  ;;  %v1235_v63 = vsel %vm7309_vm9, %v1060_v38, %v1234_v8  ;;  %v1278_v53 = vld [vmem:[#allocation2 + $0x88] sm:$0xf]  ;;  %v7593_v56 = vcombine.low %v1272_v19, %v1273_v23  ;;  %6138 = vmatmul.mubr.msk.bf16.gmra.mrb[52].mxu0 %vm1422_vm10, %v7584_v15 }
 0x140   : > { %1243 = vst [vmem:[#allocation2 + $0xc8] sm:$0x1] %v1242_v49  ;;  %8911 = vst [vmem:[#allocation14_spill] sm:$0xff] %v7584_v15  ;;  %v7595_v5 = vcombine.low %v1274_v2, %v1275_v10  ;;  %v7601_v6 = vcombine.low %v7573_v60, %v7575_v37  ;;  %v7603_v27 = vld [vmem:[#allocation2 + $0x94] sm:$0xf]  ;;  %v7609_v8 = vcombine.low %v7597_v3, %v7577_v44  ;;  %6141 = vmatprep.mubr.msk.bf16.mxu0 %vm1422_vm10, %v7591_v59 }
 0x141   : > { %1233 = vst.msk [vmem:[#allocation2 + $0xb8] sm:$0xf] %vm665_vm1, %v1059_v51  ;;  %1236 = vst [vmem:[#allocation2 + $0xbc] sm:$0x1] %v1235_v63  ;;  %v7612_v16 = vcombine.low %v1276_v61, %v7565_v46  ;;  %v7614_v18 = vld [vmem:[#allocation2 + $0x9c] sm:$0xf]  ;;  %v7620_v31 = vcombine.low %v1278_v53, %v7588_v45  ;;  %v7640_v47 = vcombine.low %v1273_v23, %v1274_v2 }
 0x142   : > { %8912 = vst [vmem:[#allocation15_spill] sm:$0xff] %v7591_v59  ;;  %8913 = vst [vmem:[#allocation16_spill] sm:$0xff] %v7601_v6  ;;  %v2493_v22 = vshll.u32 %v7601_v6, 16  ;;  %v1280_v30 = vld [vmem:[#allocation2 + $0x90] sm:$0xf]  ;;  %v2500_v7 = vshll.u32 %v7609_v8, 16  ;;  %v7650_v63 = vcombine.low %v1275_v10, %v1276_v61 }
 0x143   : > { %8914 = vst [vmem:[#allocation17_spill] sm:$0xff] %v7609_v8  ;;  %8915 = vst [vmem:[#allocation18_spill] sm:$0xff] %v7612_v16  ;;  %v7623_v50 = vld [vmem:[#allocation2 + $0x98] sm:$0xf]  ;;  %v7626_v28 = vcombine.low %v1280_v30, %v7603_v27  ;;  %v2497_v20 = vshrl.u32 %v7601_v6, 16  ;;  %v2504_v2 = vshrl.u32 %v7609_v8, 16 }
 0x144   : > { %8916 = vst [vmem:[#allocation19_spill] sm:$0xff] %v7620_v31  ;;  %v7628_v33 = vrot.slane %v2493_v22, 1  ;;  %v7633_v43 = vcombine.low %v7623_v50, %v7614_v18  ;;  %v2502_v32 = vrot.slane %v2500_v7, 1  ;;  %v7636_v34 = vld [vmem:[#allocation2 + $0xb0] sm:$0xf]  ;;  %8920 = vst [vmem:[#allocation23_spill] sm:$0xff] %v7640_v47 }
 0x145   : > { %8917 = vst [vmem:[#allocation20_spill] sm:$0xff] %v7626_v28  ;;  %8922 = vst [vmem:[#allocation25_spill] sm:$0xff] %v7650_v63  ;;  %v7659_v23 = vld [vmem:[#allocation2 + $0xc0] sm:$0xf]  ;;  %v7692_v16 = vld [vmem:[#allocation2 + $0xcc] sm:$0xf] }
 0x146   : > { %8918 = vst [vmem:[#allocation21_spill] sm:$0xff] %v7628_v33  ;;  %8919 = vst [vmem:[#allocation22_spill] sm:$0xff] %v7633_v43  ;;  %v2499_v19 = vor.u32 %v2497_v20, %v7628_v33  ;;  %v7638_v38 = vld [vmem:[#allocation2 + $0xb4] sm:$0xf]  ;;  %v2879_v20 = vshll.u32 %v7377_v58, 16  ;;  %v7674_v6 = vcombine.low %v7659_v23, %v7659_v23 }
 0x147   : > { %v7644_v48 = vcombine.low %v7636_v34, %v7638_v38  ;;  %6142 = vmatmul.mubr.msk.bf16.gmra.mrb[56].mxu0 %vm1422_vm10, %v7640_v47 }
 0x148   : > { %v7646_v49 = vld [vmem:[#allocation2 + $0xb8] sm:$0xf]  ;;  %v7648_v51 = vld [vmem:[#allocation2 + $0xbc] sm:$0xf]  ;;  %v7653_v22 = vsel %vm2353_vm11, %v2499_v19, %v2502_v32  ;;  %6145 = vmatprep.mubr.msk.bf16.mxu0 %vm1422_vm10, %v7650_v63  ;;  %v2506_v19 = vor.u32 %v2504_v2, %v2502_v32  ;;  %8924 = vst [vmem:[#allocation27_spill] sm:$0xff] %v7674_v6 }
 0x149   : > { %8921 = vst [vmem:[#allocation24_spill] sm:$0xff] %v7644_v48  ;;  %8923 = vst [vmem:[#allocation26_spill] sm:$0xff] %v7653_v22  ;;  %v7657_v7 = vcombine.low %v7646_v49, %v7648_v51  ;;  %6307 = vmatprep.mubr.msk.bf16.mxu1 %vm1422_vm10, %v7653_v22  ;;  %v2507_v10 = vshll.u32 %v7644_v48, 16  ;;  %v2511_v21 = vshrl.u32 %v7644_v48, 16  ;;  %v7087_v22 = vld [vmem:[%s8850_s3 + $0x8] sm:$0x3] }
 0x14a   : > { %v3122_v8 = vsel %vm1495_vm2, %v7087_v22, 0  ;;  %v5667_v32 = vld [vmem:[%s8850_s3 + $0xe] sm:$0x3]  ;;  %v7686_v2 = vld [vmem:[#allocation2 + $0xc4] sm:$0xf]  ;;  %v7695_v22 = vcombine.low %v7565_v46, %v1278_v53 }
 0x14b   : > { %v2514_v61 = vshll.u32 %v7657_v7, 16  ;;  %v2509_v33 = vrot.slane %v2507_v10, 1  ;;  %v2881_v10 = vrot.slane %v2879_v20, 1  ;;  %v7690_v48 = vld [vmem:[#allocation2 + $0xc8] sm:$0xf]  ;;  %v2877_v20 = vshrl.u32 %v7377_v58, 16 }
 0x14c   : > { %8926 = vst [vmem:[#allocation29_spill] sm:$0xff] %v7695_v22  ;;  %v7712_v46 = vcombine.low %v7659_v23, %v7686_v2 }
 0x14d   : > { %v2516_v43 = vrot.slane %v2514_v61, 1  ;;  %v7681_v28 = vsel %vm2353_vm11, %v2506_v19, %v2509_v33  ;;  %v2513_v31 = vor.u32 %v2511_v21, %v2509_v33  ;;  %v2518_v33 = vshrl.u32 %v7657_v7, 16 }
 0x14e   : > { %8925 = vst [vmem:[#allocation28_spill] sm:$0xff] %v7681_v28  ;;  %6308 = vmatmul.mubr.msk.bf16.vlgmr.msra.gmra.mrb[0].mxu1 %vm1422_vm10, %v7681_v28  ;;  %v2522_v61 = vshll.u32 %v7674_v6, 16  ;;  %v7703_v19 = vcombine.low %v7588_v45, %v1280_v30  ;;  %v2883_v28 = vshll.u32 %v7398_v35, 16  ;;  %v7720_v45 = vcombine.low %v7690_v48, %v7692_v16  ;;  %v7727_v30 = vld [vmem:[%s8850_s3 + $0xc] sm:$0x3] }
 0x14f   : > { %6316 = vmatpush3.bf16.msra.mxu1 %v3122_v8  ;;  %v7698_v21 = vsel %vm2353_vm11, %v2513_v31, %v2516_v43  ;;  %6146 = vmatmul.mubr.msk.bf16.gmra.mrb[60].mxu0 %vm1422_vm10, %v7695_v22  ;;  %v7716_v53 = vor.u32 %v2518_v33, %v2516_v43  ;;  %v2882_v8 = vor.u32 %v2881_v10, %v2877_v20  ;;  %v2890_v43 = vshll.u32 %v7400_v36, 16 }
 0x150   : > { %8927 = vst [vmem:[#allocation30_spill] sm:$0xff] %v7698_v21  ;;  %8928 = vst [vmem:[#allocation31_spill] sm:$0xff] %v7703_v19  ;;  %6311 = vmatprep.mubr.msk.bf16.mxu1 %vm1422_vm10, %v7698_v21  ;;  %6991 = vmatprep.subr.msk.bf16.mxu1 %vm1495_vm2, %v5667_v32  ;;  %v2524_v31 = vrot.slane %v2522_v61, 1  ;;  %v2885_v6 = vrot.slane %v2883_v28, 1  ;;  %v2897_v10 = vshll.u32 %v7410_v55, 16  ;;  %v7739_v20 = vcombine.low %v7603_v27, %v7623_v50 }
 0x151   : > { %6149 = vmatprep.mubr.msk.bf16.mxu0 %vm1422_vm10, %v7703_v19  ;;  %6987 = vmatprep.subr.msk.bf16.mxu0 %vm1495_vm2, %v7727_v30  ;;  %v2887_v61 = vshrl.u32 %v7398_v35, 16  ;;  %v7745_v28 = vcombine.low %v7614_v18, %v7573_v60  ;;  %v2892_v21 = vrot.slane %v2890_v43, 1  ;;  %v2904_v50 = vshll.u32 %v7430_v12, 16  ;;  %v7758_v60 = vld [vmem:[%s8850_s3 + $0x4] sm:$0x3] }
 0x152   : > { %v2525_v33 = vsel %vm2353_vm11, %v7716_v53, %v2524_v31  ;;  %v2886_v58 = vsel %vm2353_vm11, %v2882_v8, %v2885_v6  ;;  %8929 = vst [vmem:[#allocation32_spill] sm:$0xff] %v7739_v20  ;;  %v2894_v8 = vshrl.u32 %v7400_v36, 16  ;;  %v2899_v27 = vrot.slane %v2897_v10, 1 }
 0x153   : > { %8930 = vst [vmem:[#allocation33_spill] sm:$0xff] %v7745_v28  ;;  %v2889_v31 = vor.u32 %v2887_v61, %v2885_v6  ;;  %v2906_v18 = vrot.slane %v2904_v50, 1  ;;  %v7764_v43 = vcombine.low %v7575_v37, %v7597_v3  ;;  %v2908_v10 = vshrl.u32 %v7430_v12, 16 }
 0x154   : > { %v2918_v61 = vshll.u32 %v7476_v29, 16  ;;  %v7786_v50 = vcombine.low %v7638_v38, %v7646_v49 }
 0x155   : > { %v2893_v35 = vsel %vm2353_vm11, %v2889_v31, %v2892_v21  ;;  %8931 = vst [vmem:[#allocation34_spill] sm:$0xff] %v7764_v43  ;;  %v2910_v3 = vor.u32 %v2908_v10, %v2906_v18  ;;  %v2939_v10 = vshll.u32 %v7548_v57, 16 }
 0x156   : > { %6312 = vmatmul.mubr.msk.bf16.gmra.mrb[4].mxu1 %vm1422_vm10, %v2525_v33  ;;  %v3441_v33 = vsel %vm1495_vm2, %v5667_v32, 0  ;;  %v2901_v32 = vshrl.u32 %v7410_v55, 16 }
 0x157   : > { %6317 = vmatprep.mubr.msk.bf16.mxu1 %vm1422_vm10, %v2886_v58  ;;  %6150 = vmatmul.mubr.msk.bf16.gmra.mrb[64].mxu0 %vm1422_vm10, %v7739_v20  ;;  %v2896_v58 = vor.u32 %v2894_v8, %v2892_v21  ;;  %v7770_v21 = vcombine.low %v7577_v44, %v7636_v34  ;;  %v2920_v8 = vrot.slane %v2918_v61, 1 }
 0x158   : > { %6153 = vmatprep.mubr.msk.bf16.mxu0 %vm1422_vm10, %v7745_v28  ;;  %v2903_v37 = vor.u32 %v2901_v32, %v2899_v27  ;;  %v2932_v32 = vshll.u32 %v7520_v0, 16 }
 0x159   : > { %v2900_v6 = vsel %vm2353_vm11, %v2896_v58, %v2899_v27  ;;  %v7791_v27 = vcombine.low %v7648_v51, %v7659_v23  ;;  %v2925_v58 = vshll.u32 %v7512_v54, 16 }
 0x15a   : > { %v2907_v44 = vsel %vm2353_vm11, %v2903_v37, %v2906_v18  ;;  %v2929_v37 = vshrl.u32 %v7512_v54, 16  ;;  %v2934_v61 = vrot.slane %v2932_v32, 1  ;;  %v7831_v32 = vcombine.low %v7370_v39, %v7389_v17  ;;  %v7088_v39 = vld [vmem:[%s8850_s3 + $0x2] sm:$0x3]  ;;  %v8161_v54 = vld [vmem:[#allocation2 + $0xd8] ss:$0 sps:$4 sm:$0xff]  }
 0x15b   : > { %v2927_v18 = vrot.slane %v2925_v58, 1 }
 0x15e   : > { %6318 = vmatmul.mubr.msk.bf16.vlgmr.msra.gmra.mrb[8].mxu1 %vm1422_vm10, %v2893_v35  ;;  %v2911_v35 = vshll.u32 %v7470_v25, 16 }
 0x15f   : > { %6366 = vmatpush3.bf16.msra.mxu1 %v3441_v33  ;;  %6321 = vmatprep.mubr.msk.bf16.mxu1 %vm1422_vm10, %v2900_v6  ;;  %v2922_v33 = vshrl.u32 %v7476_v29, 16  ;;  %v2915_v6 = vshrl.u32 %v7470_v25, 16  ;;  %v3413_v29 = vshrl.u32 %v7720_v45, 16  ;;  %v3424_v25 = vshll.u32 %v8161_v54, 16 }
 0x160   : > { %6992 = vmatprep.subr.msk.bf16.mxu1 %vm1495_vm2, %v7758_v60  ;;  %6154 = vmatmul.mubr.msk.bf16.gmra.mrb[68].mxu0 %vm1422_vm10, %v7764_v43  ;;  %v2913_v31 = vrot.slane %v2911_v35, 1  ;;  %v7807_v35 = vcombine.low %v7686_v2, %v7690_v48  ;;  %v2946_v48 = vshll.u32 %v7555_v9, 16  ;;  %v1246_v2 = vld [vmem:[#allocation2 + $0x8] sm:$0xf] }
 0x161   : > { %6157 = vmatprep.mubr.msk.bf16.mxu0 %vm1422_vm10, %v7770_v21  ;;  %v2924_v38 = vor.u32 %v2922_v33, %v2920_v8  ;;  %v3426_v55 = vrot.slane %v3424_v25, 1 }
 0x162   : > { %v2914_v34 = vsel %vm2353_vm11, %v2910_v3, %v2913_v31  ;;  %v2917_v49 = vor.u32 %v2915_v6, %v2913_v31  ;;  %v7811_v3 = vld [vmem:[#allocation2] sm:$0xff]   ;;  %v2931_v31 = vor.u32 %v2929_v37, %v2927_v18  ;;  %v2948_v6 = vrot.slane %v2946_v48, 1 }
 0x163   : > { %v2928_v23 = vsel %vm2353_vm11, %v2924_v38, %v2927_v18  ;;  %v7823_v38 = vcombine.low %v1246_v2, %v7373_v52  ;;  %v2075_v18 = vsel %vm1495_vm2, %v7727_v30, 0  ;;  %v2960_v37 = vshll.u32 %v7591_v59, 16 }
 0x164   : > { %v2921_v51 = vsel %vm2353_vm11, %v2917_v49, %v2920_v8  ;;  %v2935_v33 = vsel %vm2353_vm11, %v2931_v31, %v2934_v61  ;;  %v2943_v49 = vshrl.u32 %v7548_v57, 16  ;;  %v2957_v48 = vshrl.u32 %v7584_v15, 16 }
 0x165   : > { %v2962_v31 = vrot.slane %v2960_v37, 1  ;;  %v8874_v2 = vrot.slane %v7823_v38, 1  ;;  %v2981_v37 = vshll.u32 %v7695_v22, 16 }
 0x166   : > { %6322 = vmatmul.mubr.msk.bf16.gmra.mrb[12].mxu1 %vm1422_vm10, %v2907_v44  ;;  %v2936_v44 = vshrl.u32 %v7520_v0, 16  ;;  %v3406_v0 = vshrl.u32 %v7712_v46, 16 }
 0x167   : > { %6325 = vmatprep.mubr.msk.bf16.mxu1 %vm1422_vm10, %v2914_v34  ;;  %v2941_v34 = vrot.slane %v2939_v10, 1 }
 0x168   : > { %6158 = vmatmul.mubr.msk.bf16.gmra.mrb[72].mxu0 %vm1422_vm10, %v7786_v50  ;;  %v2938_v8 = vor.u32 %v2936_v44, %v2934_v61  ;;  %v2964_v44 = vshrl.u32 %v7591_v59, 16 }
 0x169   : > { %6161 = vmatprep.mubr.msk.bf16.mxu0 %vm1422_vm10, %v7791_v27  ;;  %v2945_v52 = vor.u32 %v2943_v49, %v2941_v34 }
 0x16a   : > { %v2942_v58 = vsel %vm2353_vm11, %v2938_v8, %v2941_v34  ;;  %v2967_v34 = vshll.u32 %v7640_v47, 16  ;;  %v8873_v8 = vrot.slane %v7831_v32, 1 }
 0x16b   : > { %v2949_v30 = vsel %vm2353_vm11, %v2945_v52, %v2948_v6 }
 0x16c   : > { %v2969_v49 = vrot.slane %v2967_v34, 1 }
 0x16e   : > { %6326 = vmatmul.mubr.msk.bf16.gmra.mrb[16].mxu1 %vm1422_vm10, %v2921_v51  ;;  %v2950_v51 = vshrl.u32 %v7555_v9, 16 }
 0x16f   : > { %6329 = vmatprep.mubr.msk.bf16.mxu1 %vm1422_vm10, %v2928_v23  ;;  %v2953_v23 = vshll.u32 %v7584_v15, 16 }
 0x170   : > { %6162 = vmatmul.mubr.msk.bf16.gmra.mrb[76].mxu0 %vm1422_vm10, %v7807_v35  ;;  %v2952_v10 = vor.u32 %v2950_v51, %v2948_v6  ;;  %v7862_v6 = vsel %vm3718_vm12, %v8874_v2, %v8873_v8  ;;  %v4161_v2 = vrot.slane %v7791_v27, 1 }
 0x171   : > { %6167 = vmatprep.mubr.msk.bf16.mxu0 %vm1422_vm10, %v7811_v3  ;;  %v2955_v17 = vrot.slane %v2953_v23, 1  ;;  %v2360_v23 = vshll.u32 %v7823_v38, 16 }
 0x173   : > { %v2956_v61 = vsel %vm2353_vm11, %v2952_v10, %v2955_v17  ;;  %v2971_v10 = vshrl.u32 %v7640_v47, 16 }
 0x176   : > { %6330 = vmatmul.mubr.msk.bf16.gmra.mrb[20].mxu1 %vm1422_vm10, %v2935_v33  ;;  %v2966_v33 = vor.u32 %v2964_v44, %v2962_v31  ;;  %v2973_v44 = vor.u32 %v2971_v10, %v2969_v49 }
 0x177   : > { %6333 = vmatprep.mubr.msk.bf16.mxu1 %vm1422_vm10, %v2942_v58  ;;  %v2959_v58 = vor.u32 %v2957_v48, %v2955_v17  ;;  %v7873_v17 = vrot.slane %v2360_v23, 1  ;;  %v2988_v23 = vshll.u32 %v7703_v19, 16 }
 0x178   : > { %6168 = vmatmul.mubr.msk.bf16.vlgmr.msra.gmra.mrb[32].mxu0 %vm1422_vm10, %v7823_v38  ;;  %v2970_v52 = vsel %vm2353_vm11, %v2966_v33, %v2969_v49  ;;  %v2371_v33 = vshrl.u32 %v7831_v32, 16 }
 0x179   : > { %6171 = vmatprep.mubr.msk.bf16.mxu0 %vm1422_vm10, %v7831_v32  ;;  %6216 = vmatpush3.bf16.msra.mxu0 %v2075_v18  ;;  %v2974_v18 = vshll.u32 %v7650_v63, 16  ;;  %v2963_v51 = vsel %vm2353_vm11, %v2959_v58, %v2962_v31  ;;  %v2978_v58 = vshrl.u32 %v7650_v63, 16  ;;  %v2451_v63 = vshll.u32 %v7593_v56, 16 }
 0x17a   : > { %6988 = vmatprep.subr.msk.bf16.mxu0 %vm1495_vm2, %v7088_v39  ;;  %v2374_v39 = vshll.u32 %v7402_v41, 16 }
 0x17b   : > { %v2976_v31 = vrot.slane %v2974_v18, 1 }
 0x17d   : > { %v2980_v49 = vor.u32 %v2978_v58, %v2976_v31  ;;  %v2977_v10 = vsel %vm2353_vm11, %v2973_v44, %v2976_v31  ;;  %v3002_v44 = vshll.u32 %v7745_v28, 16 }
 0x17e   : > { %6334 = vmatmul.mubr.msk.bf16.gmra.mrb[24].mxu1 %vm1422_vm10, %v2949_v30  ;;  %v2364_v30 = vshrl.u32 %v7823_v38, 16 }
 0x17f   : > { %6337 = vmatprep.mubr.msk.bf16.mxu1 %vm1422_vm10, %v2956_v61  ;;  %v2367_v61 = vshll.u32 %v7831_v32, 16 }
 0x180   : > { %6172 = vmatmul.mubr.msk.bf16.gmra.mrb[36].mxu0 %vm1422_vm10, %v7402_v41  ;;  %v2366_v34 = vor.u32 %v2364_v30, %v7873_v17 }
 0x181   : > { %6175 = vmatprep.mubr.msk.bf16.mxu0 %vm1422_vm10, %v7427_v11  ;;  %v2369_v48 = vrot.slane %v2367_v61, 1 }
 0x183   : > { %v7888_v18 = vsel %vm2353_vm11, %v2366_v34, %v2369_v48  ;;  %v2373_v8 = vor.u32 %v2371_v33, %v2369_v48  ;;  %v2992_v34 = vshrl.u32 %v7703_v19, 16  ;;  %v2995_v48 = vshll.u32 %v7739_v20, 16 }
 0x185   : > { %v2997_v33 = vrot.slane %v2995_v48, 1 }
 0x186   : > { %6338 = vmatmul.mubr.msk.bf16.gmra.mrb[28].mxu1 %vm1422_vm10, %v2963_v51  ;;  %v2983_v51 = vrot.slane %v2981_v37, 1  ;;  %v2990_v37 = vrot.slane %v2988_v23, 1 }
 0x187   : > { %6341 = vmatprep.mubr.msk.bf16.mxu1 %vm1422_vm10, %v2970_v52  ;;  %v7885_v52 = vrot.slane %v2374_v39, 1  ;;  %v2985_v39 = vshrl.u32 %v7695_v22, 16 }
 0x188   : > { %6176 = vmatmul.mubr.msk.bf16.gmra.mrb[40].mxu0 %vm1422_vm10, %v7432_v13  ;;  %v2984_v61 = vsel %vm2353_vm11, %v2980_v49, %v2983_v51  ;;  %v3004_v49 = vrot.slane %v3002_v44, 1  ;;  %v4157_v44 = vrot.slane %v7770_v21, 1 }
 0x189   : > { %6179 = vmatprep.mubr.msk.bf16.mxu0 %vm1422_vm10, %v7473_v26  ;;  %v7893_v30 = vsel %vm2353_vm11, %v2373_v8, %v7885_v52  ;;  %v2987_v31 = vor.u32 %v2985_v39, %v2983_v51  ;;  %v2994_v8 = vor.u32 %v2992_v34, %v2990_v37  ;;  %v3009_v51 = vshll.u32 %v7764_v43, 16 }
 0x18a   : > { %v5642_v34 = vcombine.low %v7692_v16, %v7692_v16 }
 0x18b   : > { %v2991_v58 = vsel %vm2353_vm11, %v2987_v31, %v2990_v37  ;;  %v2998_v23 = vsel %vm2353_vm11, %v2994_v8, %v2997_v33  ;;  %v3011_v48 = vrot.slane %v3009_v51, 1  ;;  %v3016_v31 = vshll.u32 %v7770_v21, 16 }
 0x18c   : > { %v8876_v8 = vrot.slane %v7764_v43, 1  ;;  %v4163_v51 = vrot.slane %v7807_v35, 1 }
 0x18e   : > { %6342 = vmatmul.mubr.msk.bf16.gmra.mrb[32].mxu1 %vm1422_vm10, %v2977_v10  ;;  %v3006_v10 = vshrl.u32 %v7745_v28, 16  ;;  %v7931_v16 = vsel %vm3718_vm12, %v8876_v8, %v4157_v44  ;;  %v7943_v28 = vsel %vm3718_vm12, %v4161_v2, %v4163_v51 }
 0x18f   : > { %6345 = vmatprep.mubr.msk.bf16.mxu1 %vm1422_vm10, %v2984_v61  ;;  %v2999_v61 = vshrl.u32 %v7739_v20, 16  ;;  %8932 = vst [vmem:[#allocation35_spill] sm:$0xff] %v7931_v16  ;;  %8935 = vst [vmem:[#allocation38_spill] sm:$0xff] %v7943_v28 }
 0x190   : > { %6180 = vmatmul.mubr.msk.bf16.gmra.mrb[44].mxu0 %vm1422_vm10, %v7484_v42  ;;  %v3008_v37 = vor.u32 %v3006_v10, %v3004_v49  ;;  %v3023_v10 = vshll.u32 %v7786_v50, 16 }
 0x191   : > { %6183 = vmatprep.mubr.msk.bf16.mxu0 %vm1422_vm10, %v7515_v62  ;;  %v3001_v39 = vor.u32 %v2999_v61, %v2997_v33 }
 0x192   : > { %v3012_v33 = vsel %vm2353_vm11, %v3008_v37, %v3011_v48  ;;  %v4165_v37 = vrot.slane %v5642_v34, 1 }
 0x194   : > { %v7948_v16 = vsel %vm3718_vm12, %v4163_v51, %v4165_v37  ;;  %v3034_v51 = vshrl.u32 %v7791_v27, 16  ;;  %v3045_v37 = vshll.u32 %v5642_v34, 16 }
 0x195   : > { %8936 = vst [vmem:[#allocation39_spill] sm:$0xff] %v7948_v16 }
 0x196   : > { %6346 = vmatmul.mubr.msk.bf16.gmra.mrb[36].mxu1 %vm1422_vm10, %v2991_v58  ;;  %v3005_v58 = vsel %vm2353_vm11, %v3001_v39, %v3004_v49  ;;  %v3013_v49 = vshrl.u32 %v7764_v43, 16 }
 0x197   : > { %6349 = vmatprep.mubr.msk.bf16.mxu1 %vm1422_vm10, %v2998_v23  ;;  %v4159_v23 = vrot.slane %v7786_v50, 1 }
 0x198   : > { %6184 = vmatmul.mubr.msk.bf16.gmra.mrb[48].mxu0 %vm1422_vm10, %v7524_v4  ;;  %v3015_v8 = vor.u32 %v3013_v49, %v3011_v48  ;;  %v3027_v48 = vshrl.u32 %v7786_v50, 16  ;;  %v3037_v49 = vshll.u32 %v7807_v35, 16 }
 0x199   : > { %6187 = vmatprep.mubr.msk.bf16.mxu0 %vm1422_vm10, %v7553_v1  ;;  %v7937_v61 = vsel %vm3718_vm12, %v4157_v44, %v4159_v23  ;;  %v7940_v39 = vsel %vm3718_vm12, %v4159_v23, %v4161_v2  ;;  %v3020_v44 = vshrl.u32 %v7770_v21, 16  ;;  %v3030_v23 = vshll.u32 %v7791_v27, 16 }
 0x19a   : > { %8933 = vst [vmem:[#allocation36_spill] sm:$0xff] %v7937_v61  ;;  %8934 = vst [vmem:[#allocation37_spill] sm:$0xff] %v7940_v39  ;;  %v2381_v27 = vshll.u32 %v7427_v11, 16 }
 0x19b   : > { %v3032_v28 = vrot.slane %v3030_v23, 1  ;;  %v8937_v23 = vld [vmem:[#allocation18_spill] sm:$0xff] }
 0x19c   : > { %v2383_v34 = vrot.slane %v2381_v27, 1  ;;  %v3841_v27 = vsel %vm1495_vm2, %v7758_v60, 0  ;;  %v2406_v60 = vshrl.u32 %v7484_v42, 16  ;;  %v2465_v59 = vshll.u32 %v8937_v23, 16 }
 0x19e   : > { %6350 = vmatmul.mubr.msk.bf16.gmra.mrb[40].mxu1 %vm1422_vm10, %v3005_v58  ;;  %v3018_v58 = vrot.slane %v3016_v31, 1 }
 0x19f   : > { %6353 = vmatprep.mubr.msk.bf16.mxu1 %vm1422_vm10, %v3012_v33  ;;  %v3025_v33 = vrot.slane %v3023_v10, 1  ;;  %v3039_v10 = vrot.slane %v3037_v49, 1  ;;  %v2385_v49 = vshrl.u32 %v7427_v11, 16 }
 0x1a0   : > { %6188 = vmatmul.mubr.msk.bf16.gmra.mrb[52].mxu0 %vm1422_vm10, %v7557_v14  ;;  %v3022_v39 = vor.u32 %v3020_v44, %v3018_v58  ;;  %v3019_v31 = vsel %vm2353_vm11, %v3015_v8, %v3018_v58  ;;  %v3036_v8 = vor.u32 %v3034_v51, %v3032_v28  ;;  %v3041_v58 = vshrl.u32 %v7807_v35, 16 }
 0x1a1   : > { %6191 = vmatprep.mubr.msk.bf16.mxu0 %vm1422_vm10, %v7563_v40  ;;  %v3029_v21 = vor.u32 %v3027_v48, %v3025_v33 }
 0x1a2   : > { %v3026_v2 = vsel %vm2353_vm11, %v3022_v39, %v3025_v33  ;;  %v3040_v50 = vsel %vm2353_vm11, %v3036_v8, %v3039_v10  ;;  %v3043_v44 = vor.u32 %v3041_v58, %v3039_v10  ;;  %v3047_v33 = vrot.slane %v3045_v37, 1  ;;  %v8938_v10 = vld [vmem:[#allocation19_spill] sm:$0xff] }
 0x1a3   : > { %v3033_v39 = vsel %vm2353_vm11, %v3029_v21, %v3032_v28  ;;  %v2378_v28 = vshrl.u32 %v7402_v41, 16  ;;  %v2392_v21 = vshrl.u32 %v7432_v13, 16  ;;  %v2395_v8 = vshll.u32 %v7473_v26, 16 }
 0x1a4   : > { %v3048_v48 = vsel %vm2353_vm11, %v3043_v44, %v3047_v33  ;;  %v8001_v33 = vld [vmem:[%s8850_s3 + $0xa] sm:$0x3] }
 0x1a5   : > { %v2397_v58 = vrot.slane %v2395_v8, 1  ;;  %v4240_v25 = vsel %vm1495_vm2, %v8001_v33, 0 }
 0x1a6   : > { %6354 = vmatmul.mubr.msk.bf16.gmra.mrb[44].mxu1 %vm1422_vm10, %v3019_v31  ;;  %v2388_v31 = vshll.u32 %v7432_v13, 16 }
 0x1a7   : > { %6357 = vmatprep.mubr.msk.bf16.mxu1 %vm1422_vm10, %v3026_v2  ;;  %v2380_v2 = vor.u32 %v2378_v28, %v7885_v52  ;;  %v2387_v52 = vor.u32 %v2385_v49, %v2383_v34 }
 0x1a8   : > { %6192 = vmatmul.mubr.msk.bf16.gmra.mrb[56].mxu0 %vm1422_vm10, %v7586_v24  ;;  %v2390_v51 = vrot.slane %v2388_v31, 1  ;;  %v2409_v31 = vshll.u32 %v7515_v62, 16 }
 0x1a9   : > { %6195 = vmatprep.mubr.msk.bf16.mxu0 %vm1422_vm10, %v7593_v56  ;;  %v7981_v35 = vsel %vm2353_vm11, %v2380_v2, %v2383_v34  ;;  %v8940_v2 = vld [vmem:[#allocation22_spill] sm:$0xff] }
 0x1aa   : > { %v2394_v37 = vor.u32 %v2392_v21, %v2390_v51  ;;  %v7996_v44 = vsel %vm2353_vm11, %v2387_v52, %v2390_v51  ;;  %v8941_v51 = vld [vmem:[#allocation16_spill] sm:$0xff]  ;;  %v2411_v21 = vrot.slane %v2409_v31, 1  ;;  %v2416_v52 = vshll.u32 %v7524_v4, 16 }
 0x1ac   : > { %v8006_v28 = vsel %vm2353_vm11, %v2394_v37, %v2397_v58  ;;  %v2418_v31 = vrot.slane %v2416_v52, 1 }
 0x1ae   : > { %6358 = vmatmul.mubr.msk.bf16.gmra.mrb[0].mxu1 %vm1422_vm10, %v3033_v39  ;;  %v8939_v39 = vld [vmem:[#allocation20_spill] sm:$0xff] }
 0x1af   : > { %6361 = vmatprep.mubr.msk.bf16.mxu1 %vm1422_vm10, %v3040_v50  ;;  %v2402_v50 = vshll.u32 %v7484_v42, 16 }
 0x1b0   : > { %6196 = vmatmul.mubr.msk.bf16.gmra.mrb[60].mxu0 %vm1422_vm10, %v7595_v5 }
 0x1b1   : > { %6199 = vmatprep.mubr.msk.bf16.mxu0 %vm1422_vm10, %v8937_v23  ;;  %v2404_v34 = vrot.slane %v2402_v50, 1 }
 0x1b3   : > { %v2408_v49 = vor.u32 %v2406_v60, %v2404_v34  ;;  %v2413_v60 = vshrl.u32 %v7515_v62, 16 }
 0x1b5   : > { %v8026_v50 = vsel %vm2353_vm11, %v2408_v49, %v2411_v21  ;;  %v2430_v49 = vshll.u32 %v7557_v14, 16 }
 0x1b6   : > { %6362 = vmatmul.mubr.msk.bf16.gmra.mrb[4].mxu1 %vm1422_vm10, %v3048_v48  ;;  %v2399_v48 = vshrl.u32 %v7473_v26, 16 }
 0x1b7   : > { %6367 = vmatprep.mubr.msk.bf16.mxu1 %vm1422_vm10, %v7981_v35  ;;  %v2432_v20 = vrot.slane %v2430_v49, 1 }
 0x1b8   : > { %6200 = vmatmul.mubr.msk.bf16.gmra.mrb[64].mxu0 %vm1422_vm10, %v8938_v10  ;;  %v2401_v8 = vor.u32 %v2399_v48, %v2397_v58  ;;  %v8942_v58 = vld [vmem:[#allocation17_spill] sm:$0xff]  ;;  %v2415_v48 = vor.u32 %v2413_v60, %v2411_v21  ;;  %v2427_v21 = vshrl.u32 %v7553_v1, 16  ;;  %v2437_v60 = vshll.u32 %v7563_v40, 16 }
 0x1b9   : > { %6203 = vmatprep.mubr.msk.bf16.mxu0 %vm1422_vm10, %v8939_v39 }
 0x1ba   : > { %v8021_v37 = vsel %vm2353_vm11, %v2401_v8, %v2404_v34  ;;  %v8943_v34 = vld [vmem:[#allocation24_spill] sm:$0xff]  ;;  %v2420_v8 = vshrl.u32 %v7524_v4, 16  ;;  %v8039_v43 = vsel %vm2353_vm11, %v2415_v48, %v2418_v31 }
 0x1bc   : > { %v2422_v61 = vor.u32 %v2420_v8, %v2418_v31  ;;  %v2439_v8 = vrot.slane %v2437_v60, 1  ;;  %v8944_v60 = vld [vmem:[#allocation3_spill] sm:$0xff] }
 0x1be   : > { %6368 = vmatmul.mubr.msk.bf16.vlgmr.msra.gmra.mrb[8].mxu1 %vm1422_vm10, %v7996_v44 }
 0x1bf   : > { %6416 = vmatpush3.bf16.msra.mxu1 %v3841_v27  ;;  %6371 = vmatprep.mubr.msk.bf16.mxu1 %vm1422_vm10, %v8006_v28  ;;  %v2423_v27 = vshll.u32 %v7553_v1, 16 }
 0x1c0   : > { %6993 = vmatprep.subr.msk.bf16.mxu1 %vm1495_vm2, %v8001_v33  ;;  %6204 = vmatmul.mubr.msk.bf16.gmra.mrb[68].mxu0 %vm1422_vm10, %v8940_v2  ;;  %v2356_v33 = vshll.u32 %v7811_v3, 16 }
 0x1c1   : > { %6207 = vmatprep.mubr.msk.bf16.mxu0 %vm1422_vm10, %v8941_v51  ;;  %v2425_v16 = vrot.slane %v2423_v27, 1  ;;  %v2434_v27 = vshrl.u32 %v7557_v14, 16 }
 0x1c3   : > { %v8044_v52 = vsel %vm2353_vm11, %v2422_v61, %v2425_v16  ;;  %v2429_v31 = vor.u32 %v2427_v21, %v2425_v16  ;;  %v2436_v48 = vor.u32 %v2434_v27, %v2432_v20  ;;  %v2444_v61 = vshll.u32 %v7586_v24, 16 }
 0x1c4   : > { %v2448_v16 = vshrl.u32 %v7586_v24, 16  ;;  %v2453_v27 = vrot.slane %v2451_v63, 1  ;;  %v2455_v63 = vshrl.u32 %v7593_v56, 16 }
 0x1c5   : > { %v8057_v49 = vsel %vm2353_vm11, %v2429_v31, %v2432_v20  ;;  %v8062_v19 = vsel %vm2353_vm11, %v2436_v48, %v2439_v8  ;;  %v2446_v22 = vrot.slane %v2444_v61, 1  ;;  %v2441_v20 = vshrl.u32 %v7563_v40, 16 }
 0x1c6   : > { %6372 = vmatmul.mubr.msk.bf16.gmra.mrb[12].mxu1 %vm1422_vm10, %v8021_v37  ;;  %v2458_v48 = vshll.u32 %v7595_v5, 16 }
 0x1c7   : > { %6375 = vmatprep.mubr.msk.bf16.mxu1 %vm1422_vm10, %v8026_v50  ;;  %v2450_v21 = vor.u32 %v2448_v16, %v2446_v22  ;;  %v2443_v31 = vor.u32 %v2441_v20, %v2439_v8  ;;  %v2457_v8 = vor.u32 %v2455_v63, %v2453_v27  ;;  %v2467_v20 = vrot.slane %v2465_v59, 1 }
 0x1c8   : > { %6208 = vmatmul.mubr.msk.bf16.gmra.mrb[72].mxu0 %vm1422_vm10, %v8942_v58  ;;  %v2460_v16 = vrot.slane %v2458_v48, 1  ;;  %v2476_v59 = vshrl.u32 %v8938_v10, 16  ;;  %v2479_v63 = vshll.u32 %v8939_v39, 16 }
 0x1c9   : > { %6211 = vmatprep.mubr.msk.bf16.mxu0 %vm1422_vm10, %v8943_v34  ;;  %v8076_v61 = vsel %vm2353_vm11, %v2443_v31, %v2446_v22  ;;  %v8081_v47 = vsel %vm2353_vm11, %v2450_v21, %v2453_v27  ;;  %v2462_v22 = vshrl.u32 %v7595_v5, 16  ;;  %v2472_v21 = vshll.u32 %v8938_v10, 16 }
 0x1ca   : > { %v8094_v31 = vsel %vm2353_vm11, %v2457_v8, %v2460_v16  ;;  %v2469_v27 = vshrl.u32 %v8937_v23, 16 }
 0x1cb   : > { %v2474_v15 = vrot.slane %v2472_v21, 1  ;;  %v2481_v21 = vrot.slane %v2479_v63, 1 }
 0x1cd   : > { %v2478_v8 = vor.u32 %v2476_v59, %v2474_v15 }
 0x1ce   : > { %6376 = vmatmul.mubr.msk.bf16.gmra.mrb[16].mxu1 %vm1422_vm10, %v8039_v43 }
 0x1cf   : > { %6379 = vmatprep.mubr.msk.bf16.mxu1 %vm1422_vm10, %v8044_v52  ;;  %v8117_v9 = vsel %vm2353_vm11, %v2478_v8, %v2481_v21 }
 0x1d0   : > { %6212 = vmatmul.mubr.msk.bf16.gmra.mrb[76].mxu0 %vm1422_vm10, %v7657_v7 }
 0x1d1   : > { %6217 = vmatprep.mubr.msk.bf16.mxu0 %vm1422_vm10, %v7402_v41 }
 0x1d6   : > { %6380 = vmatmul.mubr.msk.bf16.gmra.mrb[20].mxu1 %vm1422_vm10, %v8057_v49 }
 0x1d7   : > { %6383 = vmatprep.mubr.msk.bf16.mxu1 %vm1422_vm10, %v8062_v19 }
 0x1d8   : > { %6218 = vmatmul.mubr.msk.bf16.vlgmr.msra.gmra.mrb[32].mxu0 %vm1422_vm10, %v7427_v11 }
 0x1d9   : > { %6221 = vmatprep.mubr.msk.bf16.mxu0 %vm1422_vm10, %v7432_v13  ;;  %6266 = vmatpush3.bf16.msra.mxu0 %v8944_v60  ;;  %v2464_v60 = vor.u32 %v2462_v22, %v2460_v16  ;;  %v2471_v16 = vor.u32 %v2469_v27, %v2467_v20  ;;  %v2486_v22 = vshll.u32 %v8940_v2, 16  ;;  %v2483_v27 = vshrl.u32 %v8939_v39, 16 }
 0x1db   : > { %v8099_v48 = vsel %vm2353_vm11, %v2464_v60, %v2467_v20  ;;  %v8112_v60 = vsel %vm2353_vm11, %v2471_v16, %v2474_v15  ;;  %v2488_v57 = vrot.slane %v2486_v22, 1  ;;  %v2490_v20 = vshrl.u32 %v8940_v2, 16  ;;  %v8945_v16 = vld [vmem:[#allocation21_spill] sm:$0xff]  ;;  %v8947_v22 = vld [vmem:[#allocation26_spill] sm:$0xff] }
 0x1dc   : > { %v2485_v59 = vor.u32 %v2483_v27, %v2481_v21  ;;  %v3402_v21 = vshll.u32 %v7712_v46, 16 }
 0x1dd   : > { %v2492_v15 = vor.u32 %v2490_v20, %v2488_v57  ;;  %v3409_v20 = vshll.u32 %v7720_v45, 16 }
 0x1de   : > { %6384 = vmatmul.mubr.msk.bf16.gmra.mrb[24].mxu1 %vm1422_vm10, %v8076_v61  ;;  %v8128_v63 = vsel %vm2353_vm11, %v2485_v59, %v2488_v57  ;;  %v8948_v57 = vld [vmem:[#allocation28_spill] sm:$0xff]  ;;  %v3404_v27 = vrot.slane %v3402_v21, 1  ;;  %v8949_v59 = vld [vmem:[#allocation30_spill] sm:$0xff] }
 0x1df   : > { %6387 = vmatprep.mubr.msk.bf16.mxu1 %vm1422_vm10, %v8081_v47  ;;  %v8134_v8 = vsel %vm2353_vm11, %v2492_v15, %v8945_v16  ;;  %v8152_v15 = vld [vmem:[#allocation2 + $0xd0] sm:$0xff]  }
 0x1e0   : > { %6222 = vmatmul.mubr.msk.bf16.gmra.mrb[36].mxu0 %vm1422_vm10, %v7473_v26  ;;  %8946 = vst [vmem:[#allocation18_spill] sm:$0xff] %v8134_v8  ;;  %v3405_v16 = vsel %vm2353_vm11, %v7716_v53, %v3404_v27  ;;  %v3408_v21 = vor.u32 %v3406_v0, %v3404_v27  ;;  %v8950_v27 = vrot.slane %v7823_v38, 1  ;;  %v8951_v38 = vrot.slane %v7831_v32, 1 }
 0x1e1   : > { %6225 = vmatprep.mubr.msk.bf16.mxu0 %vm1422_vm10, %v7484_v42 }
 0x1e6   : > { %6388 = vmatmul.mubr.msk.bf16.gmra.mrb[28].mxu1 %vm1422_vm10, %v8094_v31 }
 0x1e7   : > { %6391 = vmatprep.mubr.msk.bf16.mxu1 %vm1422_vm10, %v8099_v48 }
 0x1e8   : > { %6226 = vmatmul.mubr.msk.bf16.gmra.mrb[40].mxu0 %vm1422_vm10, %v7515_v62 }
 0x1e9   : > { %6229 = vmatprep.mubr.msk.bf16.mxu0 %vm1422_vm10, %v7524_v4 }
 0x1ee   : > { %6392 = vmatmul.mubr.msk.bf16.gmra.mrb[32].mxu1 %vm1422_vm10, %v8112_v60 }
 0x1ef   : > { %6395 = vmatprep.mubr.msk.bf16.mxu1 %vm1422_vm10, %v8117_v9 }
 0x1f0   : > { %6230 = vmatmul.mubr.msk.bf16.gmra.mrb[44].mxu0 %vm1422_vm10, %v7553_v1 }
 0x1f1   : > { %6233 = vmatprep.mubr.msk.bf16.mxu0 %vm1422_vm10, %v7557_v14 }
 0x1f6   : > { %6396 = vmatmul.mubr.msk.bf16.gmra.mrb[36].mxu1 %vm1422_vm10, %v8128_v63 }
 0x1f7   : > { %6399 = vmatprep.mubr.msk.bf16.mxu1 %vm1422_vm10, %v8134_v8 }
 0x1f8   : > { %6234 = vmatmul.mubr.msk.bf16.gmra.mrb[48].mxu0 %vm1422_vm10, %v7563_v40 }
 0x1f9   : > { %6237 = vmatprep.mubr.msk.bf16.mxu0 %vm1422_vm10, %v7586_v24 }
 0x1fe   : > { %6400 = vmatmul.mubr.msk.bf16.gmra.mrb[40].mxu1 %vm1422_vm10, %v8947_v22  ;;  %v3411_v22 = vrot.slane %v3409_v20, 1  ;;  %v3420_v20 = vshrl.u32 %v8152_v15, 16 }
 0x1ff   : > { %6403 = vmatprep.mubr.msk.bf16.mxu1 %vm1422_vm10, %v8948_v57  ;;  %v3416_v57 = vshll.u32 %v8152_v15, 16 }
 0x200   : > { %6238 = vmatmul.mubr.msk.bf16.gmra.mrb[52].mxu0 %vm1422_vm10, %v7593_v56 }
 0x201   : > { %6241 = vmatprep.mubr.msk.bf16.mxu0 %vm1422_vm10, %v7595_v5  ;;  %v3418_v53 = vrot.slane %v3416_v57, 1 }
 0x203   : > { %v3422_v8 = vor.u32 %v3420_v20, %v3418_v53 }
 0x205   : > { %v3427_v0 = vsel %vm2353_vm11, %v3422_v8, %v3426_v55  ;;  %v8195_v55 = vld [vmem:[%s8850_s3 + $0x10] sm:$0x3] }
 0x206   : > { %6404 = vmatmul.mubr.msk.bf16.gmra.mrb[44].mxu1 %vm1422_vm10, %v8949_v59  ;;  %v3415_v59 = vor.u32 %v3413_v29, %v3411_v22  ;;  %v3719_v29 = vrot.slane %v7811_v3, 1 }
 0x207   : > { %6407 = vmatprep.mubr.msk.bf16.mxu1 %vm1422_vm10, %v3405_v16  ;;  %v3412_v16 = vsel %vm2353_vm11, %v3408_v21, %v3411_v22  ;;  %v3730_v21 = vrot.slane %v7473_v26, 1 }
 0x208   : > { %6242 = vmatmul.mubr.msk.bf16.gmra.mrb[56].mxu0 %vm1422_vm10, %v8937_v23  ;;  %v3419_v12 = vsel %vm2353_vm11, %v3415_v59, %v3418_v53  ;;  %v3721_v22 = vsel %vm3718_vm12, %v3719_v29, %v8950_v27  ;;  %v3732_v59 = vrot.slane %v7484_v42, 1  ;;  %v3734_v42 = vrot.slane %v7515_v62, 1 }
 0x209   : > { %6245 = vmatprep.mubr.msk.bf16.mxu0 %vm1422_vm10, %v8938_v10  ;;  %v3738_v62 = vrot.slane %v7553_v1, 1  ;;  %v3742_v1 = vrot.slane %v7563_v40, 1  ;;  %v3746_v40 = vrot.slane %v7593_v56, 1  ;;  %v3750_v56 = vrot.slane %v8937_v23, 1 }
 0x20a   : > { %v8247_v29 = vsel %vm3718_vm12, %v3732_v59, %v3734_v42  ;;  %v3754_v23 = vrot.slane %v8939_v39, 1 }
 0x20e   : > { %6408 = vmatmul.mubr.msk.bf16.gmra.mrb[0].mxu1 %vm1422_vm10, %v3412_v16  ;;  %v8235_v16 = vsel %vm3718_vm12, %v3730_v21, %v3732_v59  ;;  %v8959_v59 = vld [vmem:[#allocation9_spill] sm:$0xff] }
 0x20f   : > { %6411 = vmatprep.mubr.msk.bf16.mxu1 %vm1422_vm10, %v3419_v12  ;;  %v3724_v12 = vrot.slane %v7402_v41, 1  ;;  %v3726_v41 = vrot.slane %v7427_v11, 1  ;;  %v2354_v11 = vshrl.u32 %v7811_v3, 16  ;;  %v3736_v3 = vrot.slane %v7524_v4, 1 }
 0x210   : > { %6246 = vmatmul.mubr.msk.bf16.gmra.mrb[60].mxu0 %vm1422_vm10, %v8939_v39  ;;  %v3740_v4 = vrot.slane %v7557_v14, 1  ;;  %v3744_v14 = vrot.slane %v7586_v24, 1  ;;  %v3748_v24 = vrot.slane %v7595_v5, 1  ;;  %v3752_v5 = vrot.slane %v8938_v10, 1 }
 0x211   : > { %6249 = vmatprep.mubr.msk.bf16.mxu0 %vm1422_vm10, %v8940_v2  ;;  %v3725_v8 = vsel %vm3718_vm12, %v8951_v38, %v3724_v12  ;;  %v8212_v32 = vsel %vm3718_vm12, %v3724_v12, %v3726_v41  ;;  %v3758_v39 = vrot.slane %v8941_v51, 1 }
 0x212   : > { %v8268_v27 = vsel %vm3718_vm12, %v3738_v62, %v3740_v4  ;;  %v8327_v10 = vsel %vm3718_vm12, %v3752_v5, %v3754_v23 }
 0x216   : > { %6412 = vmatmul.mubr.msk.bf16.gmra.mrb[4].mxu1 %vm1422_vm10, %v3427_v0  ;;  %v8252_v0 = vsel %vm3718_vm12, %v3734_v42, %v3736_v3 }
 0x217   : > { %6417 = vmatprep.mubr.msk.bf16.mxu1 %vm1422_vm10, %v3721_v22  ;;  %v8954_v22 = vld [vmem:[#allocation27_spill] sm:$0xff] }
 0x218   : > { %6250 = vmatmul.mubr.msk.bf16.gmra.mrb[64].mxu0 %vm1422_vm10, %v8941_v51  ;;  %v8358_v51 = vrot.slane %v7657_v7, 1  ;;  %v3766_v12 = vrot.slane %v8954_v22, 1 }
 0x219   : > { %6253 = vmatprep.mubr.msk.bf16.mxu0 %vm1422_vm10, %v8942_v58 }
 0x21e   : > { %6418 = vmatmul.mubr.msk.bf16.vlgmr.msra.gmra.mrb[8].mxu1 %vm1422_vm10, %v7862_v6  ;;  %v3728_v6 = vrot.slane %v7432_v13, 1  ;;  %v2358_v13 = vrot.slane %v2356_v33, 1 }
 0x21f   : > { %6466 = vmatpush3.bf16.msra.mxu1 %v4240_v25  ;;  %6421 = vmatprep.mubr.msk.bf16.mxu1 %vm1422_vm10, %v3725_v8  ;;  %v3767_v25 = vsel %vm3718_vm12, %v8358_v51, %v3766_v12 }
 0x220   : > { %6994 = vmatprep.subr.msk.bf16.mxu1 %vm1495_vm2, %v8195_v55  ;;  %6254 = vmatmul.mubr.msk.bf16.gmra.mrb[68].mxu0 %vm1422_vm10, %v8943_v34  ;;  %v8218_v57 = vsel %vm3718_vm12, %v3726_v41, %v3728_v6  ;;  %v2359_v53 = vor.u32 %v2358_v13, %v2354_v11  ;;  %v8230_v20 = vsel %vm3718_vm12, %v3728_v6, %v3730_v21  ;;  %v4538_v41 = vsel %vm1495_vm2, %v8195_v55, 0 }
 0x221   : > { %6257 = vmatprep.mubr.msk.bf16.mxu0 %vm1422_vm10, %v7657_v7 }
 0x222   : > { %v2363_v26 = vsel %vm2353_vm11, %v2359_v53, %v7873_v17  ;;  %v8263_v17 = vsel %vm3718_vm12, %v3736_v3, %v3738_v62  ;;  %v4129_v53 = vrot.slane %v8959_v59, 1  ;;  %v8972_v59 = vld [vmem:[#allocation34_spill] sm:$0xff] }
 0x226   : > { %6422 = vmatmul.mubr.msk.bf16.gmra.mrb[12].mxu1 %vm1422_vm10, %v8212_v32 }
 0x227   : > { %6425 = vmatprep.mubr.msk.bf16.mxu1 %vm1422_vm10, %v8218_v57 }
 0x228   : > { %6258 = vmatmul.mubr.msk.bf16.gmra.mrb[72].mxu0 %vm1422_vm10, %v7712_v46 }
 0x229   : > { %6261 = vmatprep.mubr.msk.bf16.mxu0 %vm1422_vm10, %v7720_v45 }
 0x22e   : > { %6426 = vmatmul.mubr.msk.bf16.gmra.mrb[16].mxu1 %vm1422_vm10, %v8230_v20 }
 0x22f   : > { %6429 = vmatprep.mubr.msk.bf16.mxu1 %vm1422_vm10, %v8235_v16 }
 0x230   : > { %6262 = vmatmul.mubr.msk.bf16.gmra.mrb[76].mxu0 %vm1422_vm10, %v8152_v15 }
 0x231   : > { %6267 = vmatprep.mubr.msk.bf16.mxu0 %vm1422_vm10, %v2363_v26  ;;  %v8960_v26 = vld [vmem:[#allocation10_spill] sm:$0xff] }
 0x232   : > { %v4131_v42 = vrot.slane %v8960_v26, 1 }
 0x234   : > { %v4132_v62 = vsel %vm3718_vm12, %v4129_v53, %v4131_v42 }
 0x236   : > { %6430 = vmatmul.mubr.msk.bf16.gmra.mrb[20].mxu1 %vm1422_vm10, %v8247_v29 }
 0x237   : > { %6433 = vmatprep.mubr.msk.bf16.mxu1 %vm1422_vm10, %v8252_v0 }
 0x238   : > { %6268 = vmatmul.mubr.msk.bf16.vlgmr.msra.gmra.mrb[32].mxu0 %vm1422_vm10, %v7888_v18  ;;  %v8279_v18 = vsel %vm3718_vm12, %v3740_v4, %v3742_v1  ;;  %v8961_v4 = vld [vmem:[#allocation11_spill] sm:$0xff] }
 0x239   : > { %6271 = vmatprep.mubr.msk.bf16.mxu0 %vm1422_vm10, %v7893_v30  ;;  %v8284_v30 = vsel %vm3718_vm12, %v3742_v1, %v3744_v14  ;;  %v4133_v1 = vrot.slane %v8961_v4, 1  ;;  %v8977_v4 = vld [vmem:[#allocation38_spill] sm:$0xff] }
 0x23e   : > { %6434 = vmatmul.mubr.msk.bf16.gmra.mrb[24].mxu1 %vm1422_vm10, %v8263_v17 }
 0x23f   : > { %6437 = vmatprep.mubr.msk.bf16.mxu1 %vm1422_vm10, %v8268_v27 }
 0x240   : > { %6272 = vmatmul.mubr.msk.bf16.gmra.mrb[36].mxu0 %vm1422_vm10, %v7981_v35  ;;  %v8295_v35 = vsel %vm3718_vm12, %v3744_v14, %v3746_v40  ;;  %v8962_v14 = vld [vmem:[#allocation12_spill] sm:$0xff] }
 0x241   : > { %6275 = vmatprep.mubr.msk.bf16.mxu0 %vm1422_vm10, %v7996_v44  ;;  %v8300_v44 = vsel %vm3718_vm12, %v3746_v40, %v3748_v24  ;;  %v4135_v40 = vrot.slane %v8962_v14, 1  ;;  %v4996_v14 = vld [vmem:[%s8852_s5] sm:$0x3] }
 0x242   : > { %6995 = vmatprep.subr.msk.bf16.mxu0 %vm1495_vm2, %v4996_v14 }
 0x246   : > { %6438 = vmatmul.mubr.msk.bf16.gmra.mrb[28].mxu1 %vm1422_vm10, %v8279_v18 }
 0x247   : > { %6441 = vmatprep.mubr.msk.bf16.mxu1 %vm1422_vm10, %v8284_v30 }
 0x248   : > { %6276 = vmatmul.mubr.msk.bf16.gmra.mrb[40].mxu0 %vm1422_vm10, %v8006_v28  ;;  %v8311_v28 = vsel %vm3718_vm12, %v3748_v24, %v3750_v56  ;;  %v4134_v24 = vsel %vm3718_vm12, %v4131_v42, %v4133_v1  ;;  %v8974_v42 = vld [vmem:[#allocation35_spill] sm:$0xff] }
 0x249   : > { %6279 = vmatprep.mubr.msk.bf16.mxu0 %vm1422_vm10, %v8021_v37  ;;  %v8316_v37 = vsel %vm3718_vm12, %v3750_v56, %v3752_v5  ;;  %v4136_v56 = vsel %vm3718_vm12, %v4133_v1, %v4135_v40  ;;  %v8963_v5 = vld [vmem:[#allocation13_spill] sm:$0xff]  ;;  %v8978_v1 = vld [vmem:[#allocation39_spill] sm:$0xff] }
 0x24e   : > { %6442 = vmatmul.mubr.msk.bf16.gmra.mrb[32].mxu1 %vm1422_vm10, %v8295_v35 }
 0x24f   : > { %6445 = vmatprep.mubr.msk.bf16.mxu1 %vm1422_vm10, %v8300_v44 }
 0x250   : > { %6280 = vmatmul.mubr.msk.bf16.gmra.mrb[44].mxu0 %vm1422_vm10, %v8026_v50 }
 0x251   : > { %6283 = vmatprep.mubr.msk.bf16.mxu0 %vm1422_vm10, %v8039_v43  ;;  %v3756_v43 = vrot.slane %v8940_v2, 1  ;;  %v3760_v2 = vrot.slane %v8942_v58, 1 }
 0x253   : > { %v8332_v50 = vsel %vm3718_vm12, %v3754_v23, %v3756_v43  ;;  %v4137_v23 = vrot.slane %v8963_v5, 1 }
 0x256   : > { %6446 = vmatmul.mubr.msk.bf16.gmra.mrb[36].mxu1 %vm1422_vm10, %v8311_v28 }
 0x257   : > { %6449 = vmatprep.mubr.msk.bf16.mxu1 %vm1422_vm10, %v8316_v37 }
 0x258   : > { %6284 = vmatmul.mubr.msk.bf16.gmra.mrb[48].mxu0 %vm1422_vm10, %v8044_v52  ;;  %v8343_v52 = vsel %vm3718_vm12, %v3756_v43, %v3758_v39  ;;  %v8964_v43 = vld [vmem:[#allocation14_spill] sm:$0xff] }
 0x259   : > { %6287 = vmatprep.mubr.msk.bf16.mxu0 %vm1422_vm10, %v8057_v49  ;;  %v8348_v49 = vsel %vm3718_vm12, %v3758_v39, %v3760_v2  ;;  %v4139_v39 = vrot.slane %v8964_v43, 1 }
 0x25e   : > { %6450 = vmatmul.mubr.msk.bf16.gmra.mrb[40].mxu1 %vm1422_vm10, %v8327_v10 }
 0x25f   : > { %6453 = vmatprep.mubr.msk.bf16.mxu1 %vm1422_vm10, %v8332_v50 }
 0x260   : > { %6288 = vmatmul.mubr.msk.bf16.gmra.mrb[52].mxu0 %vm1422_vm10, %v8062_v19  ;;  %v3762_v19 = vrot.slane %v8943_v34, 1  ;;  %v8953_v34 = vld [vmem:[#allocation5_spill] sm:$0xff] }
 0x261   : > { %6291 = vmatprep.mubr.msk.bf16.mxu0 %vm1422_vm10, %v8076_v61 }
 0x262   : > { %v8361_v58 = vsel %vm3718_vm12, %v3760_v2, %v3762_v19  ;;  %v8367_v61 = vsel %vm3718_vm12, %v3762_v19, %v8358_v51  ;;  %v4138_v2 = vsel %vm3718_vm12, %v4135_v40, %v4137_v23  ;;  %v4140_v19 = vsel %vm3718_vm12, %v4137_v23, %v4139_v39 }
 0x263   : > { %v5069_v40 = vsel %vm1495_vm2, %v4996_v14, 0 }
 0x264   : > { %6566 = vmatpush3.bf16.msra.mxu0 %v5069_v40 }
 0x266   : > { %6454 = vmatmul.mubr.msk.bf16.gmra.mrb[44].mxu1 %vm1422_vm10, %v8343_v52 }
 0x267   : > { %6457 = vmatprep.mubr.msk.bf16.mxu1 %vm1422_vm10, %v8348_v49 }
 0x268   : > { %6292 = vmatmul.mubr.msk.bf16.gmra.mrb[56].mxu0 %vm1422_vm10, %v8081_v47  ;;  %v8952_v47 = vld [vmem:[#allocation4_spill] sm:$0xff] }
 0x269   : > { %6295 = vmatprep.mubr.msk.bf16.mxu0 %vm1422_vm10, %v8094_v31  ;;  %v4118_v7 = vrot.slane %v8952_v47, 1  ;;  %v4119_v31 = vrot.slane %v8953_v34, 1  ;;  %v8965_v47 = vld [vmem:[#allocation15_spill] sm:$0xff] }
 0x26a   : > { %v8966_v34 = vld [vmem:[#allocation23_spill] sm:$0xff] }
 0x26b   : > { %v4120_v38 = vsel %vm3718_vm12, %v4118_v7, %v4119_v31  ;;  %v4141_v7 = vrot.slane %v8965_v47, 1 }
 0x26d   : > { %v4142_v22 = vsel %vm3718_vm12, %v4139_v39, %v4141_v7 }
 0x26e   : > { %6458 = vmatmul.mubr.msk.bf16.gmra.mrb[0].mxu1 %vm1422_vm10, %v8361_v58 }
 0x26f   : > { %6461 = vmatprep.mubr.msk.bf16.mxu1 %vm1422_vm10, %v8367_v61 }
 0x270   : > { %6296 = vmatmul.mubr.msk.bf16.gmra.mrb[60].mxu0 %vm1422_vm10, %v8099_v48  ;;  %v4121_v48 = vrot.slane %v7400_v36, 1  ;;  %v8957_v36 = vld [vmem:[#allocation7_spill] sm:$0xff] }
 0x271   : > { %6299 = vmatprep.mubr.msk.bf16.mxu0 %vm1422_vm10, %v8112_v60  ;;  %v8955_v60 = vld [vmem:[#allocation6_spill] sm:$0xff]  ;;  %v4125_v11 = vrot.slane %v8957_v36, 1 }
 0x272   : > { %v4123_v8 = vrot.slane %v8955_v60, 1  ;;  %v4122_v6 = vsel %vm3718_vm12, %v4119_v31, %v4121_v48  ;;  %v4143_v31 = vrot.slane %v8966_v34, 1 }
 0x274   : > { %v4124_v33 = vsel %vm3718_vm12, %v4121_v48, %v4123_v8  ;;  %v4126_v21 = vsel %vm3718_vm12, %v4123_v8, %v4125_v11  ;;  %v4144_v12 = vsel %vm3718_vm12, %v4141_v7, %v4143_v31  ;;  %v8968_v48 = vld [vmem:[#allocation29_spill] sm:$0xff] }
 0x275   : > { %v4147_v60 = vrot.slane %v8968_v48, 1 }
 0x276   : > { %6462 = vmatmul.mubr.msk.bf16.gmra.mrb[4].mxu1 %vm1422_vm10, %v3767_v25  ;;  %v8967_v25 = vld [vmem:[#allocation25_spill] sm:$0xff] }
 0x277   : > { %6467 = vmatprep.mubr.msk.bf16.mxu1 %vm1422_vm10, %v4120_v38  ;;  %v4145_v38 = vrot.slane %v8967_v25, 1 }
 0x278   : > { %6300 = vmatmul.mubr.msk.bf16.gmra.mrb[64].mxu0 %vm1422_vm10, %v8117_v9  ;;  %v8956_v9 = vld [vmem:[#allocation18_spill] sm:$0xff] }
 0x279   : > { %6303 = vmatprep.mubr.msk.bf16.mxu0 %vm1422_vm10, %v8128_v63  ;;  %v8958_v63 = vld [vmem:[#allocation8_spill] sm:$0xff]  ;;  %v4146_v8 = vsel %vm3718_vm12, %v4143_v31, %v4145_v38 }
 0x27a   : > { %v4127_v13 = vrot.slane %v8958_v63, 1 }
 0x27c   : > { %v4128_v55 = vsel %vm3718_vm12, %v4125_v11, %v4127_v13  ;;  %v4130_v3 = vsel %vm3718_vm12, %v4127_v13, %v4129_v53  ;;  %v8971_v13 = vld [vmem:[#allocation33_spill] sm:$0xff]  ;;  %v8973_v53 = vrot.slane %v8972_v59, 1 }
 0x27e   : > { %6468 = vmatmul.mubr.msk.bf16.vlgmr.msra.gmra.mrb[8].mxu1 %vm1422_vm10, %v4122_v6  ;;  %v8969_v6 = vld [vmem:[#allocation31_spill] sm:$0xff] }
 0x27f   : > { %6516 = vmatpush3.bf16.msra.mxu1 %v4538_v41  ;;  %6471 = vmatprep.mubr.msk.bf16.mxu1 %vm1422_vm10, %v4124_v33  ;;  %v4148_v41 = vsel %vm3718_vm12, %v4145_v38, %v4147_v60  ;;  %v4149_v33 = vrot.slane %v8969_v6, 1 }
 0x280   : > { %6304 = vmatmul.mubr.msk.bf16.gmra.mrb[68].mxu0 %vm1422_vm10, %v8956_v9  ;;  %v8970_v9 = vld [vmem:[#allocation32_spill] sm:$0xff] }
 0x281   : > { %v4151_v36 = vrot.slane %v8970_v9, 1  ;;  %v4150_v11 = vsel %vm3718_vm12, %v4147_v60, %v4149_v33 }
 0x283   : > { %v4152_v63 = vsel %vm3718_vm12, %v4149_v33, %v4151_v36 }
 0x286   : > { %6472 = vmatmul.mubr.msk.bf16.gmra.mrb[12].mxu1 %vm1422_vm10, %v4126_v21  ;;  %v4153_v21 = vrot.slane %v8971_v13, 1 }
 0x287   : > { %6475 = vmatprep.mubr.msk.bf16.mxu1 %vm1422_vm10, %v4128_v55 }
 0x288   : > { %v4154_v55 = vsel %vm3718_vm12, %v4151_v36, %v4153_v21  ;;  %v4156_v26 = vsel %vm3718_vm12, %v4153_v21, %v8973_v53 }
 0x28e   : > { %6476 = vmatmul.mubr.msk.bf16.gmra.mrb[16].mxu1 %vm1422_vm10, %v4130_v3  ;;  %v8975_v3 = vld [vmem:[#allocation36_spill] sm:$0xff] }
 0x28f   : > { %6479 = vmatprep.mubr.msk.bf16.mxu1 %vm1422_vm10, %v4132_v62  ;;  %v8976_v62 = vld [vmem:[#allocation37_spill] sm:$0xff] }
 0x296   : > { %6480 = vmatmul.mubr.msk.bf16.gmra.mrb[20].mxu1 %vm1422_vm10, %v4134_v24 }
 0x297   : > { %6483 = vmatprep.mubr.msk.bf16.mxu1 %vm1422_vm10, %v4136_v56 }
 0x29e   : > { %6484 = vmatmul.mubr.msk.bf16.gmra.mrb[24].mxu1 %vm1422_vm10, %v4138_v2 }
 0x29f   : > { %6487 = vmatprep.mubr.msk.bf16.mxu1 %vm1422_vm10, %v4140_v19 }
 0x2a6   : > { %6488 = vmatmul.mubr.msk.bf16.gmra.mrb[28].mxu1 %vm1422_vm10, %v4142_v22 }
 0x2a7   : > { %6491 = vmatprep.mubr.msk.bf16.mxu1 %vm1422_vm10, %v4144_v12 }
 0x2ae   : > { %6492 = vmatmul.mubr.msk.bf16.gmra.mrb[32].mxu1 %vm1422_vm10, %v4146_v8 }
 0x2af   : > { %6495 = vmatprep.mubr.msk.bf16.mxu1 %vm1422_vm10, %v4148_v41 }
 0x2b6   : > { %6496 = vmatmul.mubr.msk.bf16.gmra.mrb[36].mxu1 %vm1422_vm10, %v4150_v11 }
 0x2b7   : > { %6499 = vmatprep.mubr.msk.bf16.mxu1 %vm1422_vm10, %v4152_v63 }
 0x2be   : > { %6500 = vmatmul.mubr.msk.bf16.gmra.mrb[40].mxu1 %vm1422_vm10, %v4154_v55 }
 0x2bf   : > { %6503 = vmatprep.mubr.msk.bf16.mxu1 %vm1422_vm10, %v4156_v26 }
 0x2c6   : > { %6504 = vmatmul.mubr.msk.bf16.gmra.mrb[44].mxu1 %vm1422_vm10, %v8974_v42  ;;  %v8609_v42 = vld [vmem:[%s8851_s4] ss:$0 sm:$0xff] }
 0x2c7   : > { %6507 = vmatprep.mubr.msk.bf16.mxu1 %vm1422_vm10, %v8975_v3 }
 0x2ce   : > { %6508 = vmatmul.mubr.msk.bf16.gmra.mrb[0].mxu1 %vm1422_vm10, %v8976_v62 }
 0x2cf   : > { %6511 = vmatprep.mubr.msk.bf16.mxu1 %vm1422_vm10, %v8977_v4 }
 0x2d6   : > { %6512 = vmatmul.mubr.msk.bf16.gmra.mrb[4].mxu1 %vm1422_vm10, %v8978_v1 }
 0x2d7   : > { %6517 = vmatprep.mubr.msk.bf16.mxu1 %vm1422_vm10, %v8212_v32 }
 0x2de   : > { %6518 = vmatmul.mubr.msk.bf16.vlgmr.msra.gmra.mrb[8].mxu1 %vm1422_vm10, %v8218_v57 }
 0x2df   : > { %6521 = vmatprep.mubr.msk.bf16.mxu1 %vm1422_vm10, %v8230_v20 }
 0x2e6   : > { %6522 = vmatmul.mubr.msk.bf16.gmra.mrb[12].mxu1 %vm1422_vm10, %v8235_v16 }
 0x2e7   : > { %6525 = vmatprep.mubr.msk.bf16.mxu1 %vm1422_vm10, %v8247_v29 }
 0x2ee   : > { %6526 = vmatmul.mubr.msk.bf16.gmra.mrb[16].mxu1 %vm1422_vm10, %v8252_v0 }
 0x2ef   : > { %6529 = vmatprep.mubr.msk.bf16.mxu1 %vm1422_vm10, %v8263_v17 }
 0x2f6   : > { %6530 = vmatmul.mubr.msk.bf16.gmra.mrb[20].mxu1 %vm1422_vm10, %v8268_v27 }
 0x2f7   : > { %6533 = vmatprep.mubr.msk.bf16.mxu1 %vm1422_vm10, %v8279_v18 }
 0x2fb   : > { %v8479_v32 = vpop.f32.mrb[72].mxu0 }
 0x2fc   : > { %v8481_v57 = vpop.f32.mrb[73].mxu0 }
 0x2fd   : > { %v8483_v20 = vpop.f32.mrb[74].mxu0 }
 0x2fe   : > { %6534 = vmatmul.mubr.msk.bf16.gmra.mrb[24].mxu1 %vm1422_vm10, %v8284_v30  ;;  %v8487_v16 = vpop.f32.mrb[75].mxu0 }
 0x2ff   : > { %6537 = vmatprep.mubr.msk.bf16.mxu1 %vm1422_vm10, %v8295_v35 }
 0x303   : > { %v8491_v29 = vpop.f32.mrb[76].mxu0 }
 0x304   : > { %v8493_v0 = vpop.f32.mrb[77].mxu0 }
 0x305   : > { %v8495_v17 = vpop.f32.mrb[78].mxu0 }
 0x306   : > { %6538 = vmatmul.mubr.msk.bf16.gmra.mrb[28].mxu1 %vm1422_vm10, %v8300_v44  ;;  %v8499_v27 = vpop.f32.mrb[79].mxu0 }
 0x307   : > { %8979 = vst [vmem:[#allocation19_spill] sm:$0xff] %v8499_v27  ;;  %6541 = vmatprep.mubr.msk.bf16.mxu1 %vm1422_vm10, %v8311_v28 }
 0x30b   : > { %v6269_v18 = vpop.f32.mrb[32].mxu0 }
 0x30c   : > { %v2635_v30 = vpop.f32.mrb[33].mxu0 }
 0x30d   : > { %v8503_v24 = vpop.f32.mrb[34].mxu0 }
 0x30e   : > { %6542 = vmatmul.mubr.msk.bf16.gmra.mrb[32].mxu1 %vm1422_vm10, %v8316_v37  ;;  %v8507_v35 = vpop.f32.mrb[35].mxu0 }
 0x30f   : > { %6545 = vmatprep.mubr.msk.bf16.mxu1 %vm1422_vm10, %v8327_v10 }
 0x313   : > { %v8511_v56 = vpop.f32.mrb[36].mxu0 }
 0x314   : > { %v8513_v44 = vpop.f32.mrb[37].mxu0 }
 0x315   : > { %v8515_v5 = vpop.f32.mrb[38].mxu0 }
 0x316   : > { %6546 = vmatmul.mubr.msk.bf16.gmra.mrb[36].mxu1 %vm1422_vm10, %v8332_v50  ;;  %v8519_v28 = vpop.f32.mrb[39].mxu0  ;;  %v4517_v50 = vrot.slane %v7712_v46, 1  ;;  %v4521_v46 = vrot.slane %v8152_v15, 1 }
 0x317   : > { %6549 = vmatprep.mubr.msk.bf16.mxu1 %vm1422_vm10, %v8343_v52 }
 0x318   : > { %v4518_v19 = vsel %vm3718_vm12, %v8358_v51, %v4517_v50 }
 0x31b   : > { %v8523_v37 = vpop.f32.mrb[40].mxu0 }
 0x31c   : > { %v8525_v23 = vpop.f32.mrb[41].mxu0 }
 0x31d   : > { %v8527_v43 = vpop.f32.mrb[42].mxu0 }
 0x31e   : > { %6550 = vmatmul.mubr.msk.bf16.gmra.mrb[40].mxu1 %vm1422_vm10, %v8348_v49  ;;  %v8531_v10 = vpop.f32.mrb[43].mxu0 }
 0x31f   : > { %6553 = vmatprep.mubr.msk.bf16.mxu1 %vm1422_vm10, %v8361_v58  ;;  %v4519_v58 = vrot.slane %v7720_v45, 1  ;;  %v4523_v45 = vrot.slane %v8161_v54, 1 }
 0x321   : > { %v4520_v34 = vsel %vm3718_vm12, %v4517_v50, %v4519_v58  ;;  %v4522_v51 = vsel %vm3718_vm12, %v4519_v58, %v4521_v46  ;;  %v4524_v15 = vsel %vm3718_vm12, %v4521_v46, %v4523_v45 }
 0x323   : > { %v8536_v39 = vpop.f32.mrb[44].mxu0 }
 0x324   : > { %v8538_v2 = vpop.f32.mrb[45].mxu0 }
 0x325   : > { %v8540_v52 = vpop.f32.mrb[46].mxu0 }
 0x326   : > { %6554 = vmatmul.mubr.msk.bf16.gmra.mrb[44].mxu1 %vm1422_vm10, %v8367_v61  ;;  %v8546_v49 = vpop.f32.mrb[47].mxu0 }
 0x327   : > { %6557 = vmatprep.mubr.msk.bf16.mxu1 %vm1422_vm10, %v4518_v19 }
 0x32b   : > { %v8551_v47 = vpop.f32.mrb[48].mxu0 }
 0x32c   : > { %v8553_v7 = vpop.f32.mrb[49].mxu0 }
 0x32d   : > { %v8556_v31 = vpop.f32.mrb[50].mxu0 }
 0x32e   : > { %6558 = vmatmul.mubr.msk.bf16.gmra.mrb[0].mxu1 %vm1422_vm10, %v4520_v34  ;;  %v8560_v61 = vpop.f32.mrb[51].mxu0 }
 0x32f   : > { %6561 = vmatprep.mubr.msk.bf16.mxu1 %vm1422_vm10, %v4522_v51 }
 0x333   : > { %v8565_v22 = vpop.f32.mrb[52].mxu0 }
 0x334   : > { %v8567_v12 = vpop.f32.mrb[53].mxu0 }
 0x335   : > { %v8569_v25 = vpop.f32.mrb[54].mxu0 }
 0x336   : > { %6562 = vmatmul.mubr.msk.bf16.gmra.mrb[4].mxu1 %vm1422_vm10, %v4524_v15  ;;  %v8572_v38 = vpop.f32.mrb[55].mxu0 }
 0x33b   : > { %v8574_v48 = vpop.f32.mrb[56].mxu0 }
 0x33c   : > { %v8576_v60 = vpop.f32.mrb[57].mxu0 }
 0x33d   : > { %v8578_v8 = vpop.f32.mrb[58].mxu0 }
 0x33e   : > { %v8580_v41 = vpop.f32.mrb[59].mxu0 }
 0x343   : > { %v8582_v54 = vpop.f32.mrb[60].mxu0 }
 0x344   : > { %v8584_v6 = vpop.f32.mrb[61].mxu0 }
 0x345   : > { %v8586_v33 = vpop.f32.mrb[62].mxu0 }
 0x346   : > { %v8588_v9 = vpop.f32.mrb[63].mxu0 }
 0x34b   : > { %v8590_v36 = vpop.f32.mrb[64].mxu0 }
 0x34c   : > { %v8592_v11 = vpop.f32.mrb[65].mxu0 }
 0x34d   : > { %v8594_v63 = vpop.f32.mrb[66].mxu0 }
 0x34e   : > { %v8596_v13 = vpop.f32.mrb[67].mxu0 }
 0x353   : > { %v8598_v21 = vpop.f32.mrb[68].mxu0 }
 0x354   : > { %v8600_v55 = vpop.f32.mrb[69].mxu0 }
 0x355   : > { %v8602_v59 = vpop.f32.mrb[70].mxu0 }
 0x356   : > { %v8604_v53 = vpop.f32.mrb[71].mxu0 }
 0x3b1   : > { %v6519_v26 = vpop.f32.mrb[8].mxu1 }
 0x3b2   : > { %v6601_v3 = vadd.f32 %v6519_v26, %v6269_v18  ;;  %v4574_v62 = vpop.f32.mrb[9].mxu1 }
 0x3b3   : > { %v6602_v4 = vadd.f32 %v4574_v62, %v2635_v30  ;;  %v6520_v1 = vpop.f32.mrb[10].mxu1 }
 0x3b4   : > { %v4822_v14 = vadd.f32 %v6601_v3, %v8609_v42  ;;  %v6603_v40 = vadd.f32 %v6520_v1, %v8503_v24  ;;  %v4577_v50 = vpop.f32.mrb[11].mxu1 }
 0x3b5   : > { %v4820_v19 = vadd.f32 %v6602_v4, %v8609_v42  ;;  %v6604_v58 = vadd.f32 %v4577_v50, %v8507_v35 }
 0x3b6   : > { %v4823_v46 = vadd.f32 %v6603_v40, %v8609_v42  ;;  %v4870_v51 = vmax.f32 %v4822_v14, 0.0 }
 0x3b7   : > { %v4821_v34 = vadd.f32 %v6604_v58, %v8609_v42  ;;  %v4868_v15 = vmax.f32 %v4820_v19, 0.0 }
 0x3b8   : > { %v4871_v45 = vmax.f32 %v4823_v46, 0.0 }
 0x3b9   : > { %v4869_v18 = vmax.f32 %v4821_v34, 0.0  ;;  %v6523_v26 = vpop.f32.mrb[12].mxu1 }
 0x3ba   : > { %v4917_v30 = vpack.c.bf16 %v4871_v45, %v4870_v51  ;;  %v6605_v62 = vadd.f32 %v6523_v26, %v8511_v56  ;;  %v4590_v3 = vpop.f32.mrb[13].mxu1 }
 0x3bb   : > { %v4916_v27 = vpack.c.bf16 %v4869_v18, %v4868_v15  ;;  %v6606_v24 = vadd.f32 %v4590_v3, %v8513_v44  ;;  %v6524_v1 = vpop.f32.mrb[14].mxu1 }
 0x3bc   : > { %v4826_v4 = vadd.f32 %v6605_v62, %v8609_v42  ;;  %v6607_v35 = vadd.f32 %v6524_v1, %v8515_v5  ;;  %v4593_v40 = vpop.f32.mrb[15].mxu1 }
 0x3bd   : > { %v4824_v50 = vadd.f32 %v6606_v24, %v8609_v42  ;;  %v6608_v14 = vadd.f32 %v4593_v40, %v8519_v28  ;;  %6567 = vmatprep.mubr.msk.bf16.mxu0 %vm1422_vm10, %v4916_v27  ;;  %v4966_v24 = vunpack.c.h.b16 %v4917_v30 }
 0x3be   : > { %v4827_v19 = vadd.f32 %v6607_v35, %v8609_v42  ;;  %v4874_v58 = vmax.f32 %v4826_v4, 0.0 }
 0x3bf   : > { %v4825_v56 = vadd.f32 %v6608_v14, %v8609_v42  ;;  %v4872_v34 = vmax.f32 %v4824_v50, 0.0 }
 0x3c0   : > { %v4875_v46 = vmax.f32 %v4827_v19, 0.0 }
 0x3c1   : > { %v4873_v44 = vmax.f32 %v4825_v56, 0.0  ;;  %v6527_v51 = vpop.f32.mrb[16].mxu1 }
 0x3c2   : > { %v4919_v45 = vpack.c.bf16 %v4875_v46, %v4874_v58  ;;  %v6609_v15 = vadd.f32 %v6527_v51, %v8523_v37  ;;  %v4606_v5 = vpop.f32.mrb[17].mxu1 }
 0x3c3   : > { %v4918_v18 = vpack.c.bf16 %v4873_v44, %v4872_v34  ;;  %v6610_v26 = vadd.f32 %v4606_v5, %v8525_v23  ;;  %v6528_v62 = vpop.f32.mrb[18].mxu1 }
 0x3c4   : > { %v4830_v28 = vadd.f32 %v6609_v15, %v8609_v42  ;;  %v6611_v27 = vadd.f32 %v6528_v62, %v8527_v43  ;;  %v4609_v3 = vpop.f32.mrb[19].mxu1 }
 0x3c5   : > { %v4967_v1 = vunpack.c.l.b16 %v4918_v18  ;;  %v4828_v4 = vadd.f32 %v6610_v26, %v8609_v42  ;;  %v6612_v35 = vadd.f32 %v4609_v3, %v8531_v10 }
 0x3c6   : > { %v4831_v40 = vadd.f32 %v6611_v27, %v8609_v42  ;;  %v4878_v14 = vmax.f32 %v4830_v28, 0.0 }
 0x3c7   : > { %v5005_v50 = vpack.c.b16 %v4967_v1, %v4966_v24  ;;  %v4829_v37 = vadd.f32 %v6612_v35, %v8609_v42  ;;  %v4876_v23 = vmax.f32 %v4828_v4, 0.0 }
 0x3c8   : > { %v4879_v19 = vmax.f32 %v4831_v40, 0.0 }
 0x3c9   : > { %v4877_v56 = vmax.f32 %v4829_v37, 0.0  ;;  %v6531_v58 = vpop.f32.mrb[20].mxu1  ;;  %6568 = vmatmul.mubr.msk.bf16.vlgmr.msra.gmra.mrb[80].mxu0 %vm1422_vm10, %v5005_v50 }
 0x3ca   : > { %v4921_v43 = vpack.c.bf16 %v4879_v19, %v4878_v14  ;;  %v6613_v30 = vadd.f32 %v6531_v58, %v8536_v39  ;;  %v4622_v46 = vpop.f32.mrb[21].mxu1  ;;  %6571 = vmatprep.mubr.msk.bf16.mxu0 %vm1422_vm10, %v4919_v45 }
 0x3cb   : > { %v4920_v34 = vpack.c.bf16 %v4877_v56, %v4876_v23  ;;  %v6614_v10 = vadd.f32 %v4622_v46, %v8538_v2  ;;  %v6532_v44 = vpop.f32.mrb[22].mxu1 }
 0x3cc   : > { %v4971_v51 = vunpack.c.l.b16 %v4921_v43  ;;  %v4834_v15 = vadd.f32 %v6613_v30, %v8609_v42  ;;  %v6615_v5 = vadd.f32 %v6532_v44, %v8540_v52  ;;  %v4625_v18 = vpop.f32.mrb[23].mxu1 }
 0x3cd   : > { %v4970_v26 = vunpack.c.h.b16 %v4920_v34  ;;  %v4832_v62 = vadd.f32 %v6614_v10, %v8609_v42  ;;  %v6616_v28 = vadd.f32 %v4625_v18, %v8546_v49 }
 0x3ce   : > { %v4835_v39 = vadd.f32 %v6615_v5, %v8609_v42  ;;  %v4882_v3 = vmax.f32 %v4834_v15, 0.0 }
 0x3cf   : > { %v4833_v27 = vadd.f32 %v6616_v28, %v8609_v42  ;;  %v5007_v45 = vpack.c.b16 %v4971_v51, %v4970_v26  ;;  %v4880_v2 = vmax.f32 %v4832_v62, 0.0 }
 0x3d0   : > { %v4883_v24 = vmax.f32 %v4835_v39, 0.0 }
 0x3d1   : > { %v4881_v1 = vmax.f32 %v4833_v27, 0.0  ;;  %v6535_v4 = vpop.f32.mrb[24].mxu1  ;;  %6572 = vmatmul.mubr.msk.bf16.gmra.mrb[84].mxu0 %vm1422_vm10, %v5007_v45 }
 0x3d2   : > { %v4923_v35 = vpack.c.bf16 %v4883_v24, %v4882_v3  ;;  %v6617_v52 = vadd.f32 %v6535_v4, %v8551_v47  ;;  %v4638_v40 = vpop.f32.mrb[25].mxu1 }
 0x3d3   : > { %v4922_v50 = vpack.c.bf16 %v4881_v1, %v4880_v2  ;;  %v6618_v37 = vadd.f32 %v4638_v40, %v8553_v7  ;;  %v6536_v49 = vpop.f32.mrb[26].mxu1 }
 0x3d4   : > { %v4838_v14 = vadd.f32 %v6617_v52, %v8609_v42  ;;  %v6619_v19 = vadd.f32 %v6536_v49, %v8556_v31  ;;  %v4641_v23 = vpop.f32.mrb[27].mxu1  ;;  %v4974_v28 = vunpack.c.h.b16 %v4923_v35 }
 0x3d5   : > { %v4836_v56 = vadd.f32 %v6618_v37, %v8609_v42  ;;  %v6620_v58 = vadd.f32 %v4641_v23, %v8560_v61  ;;  %6575 = vmatprep.mubr.msk.bf16.mxu0 %vm1422_vm10, %v4922_v50 }
 0x3d6   : > { %v4839_v43 = vadd.f32 %v6619_v19, %v8609_v42  ;;  %v4886_v30 = vmax.f32 %v4838_v14, 0.0 }
 0x3d7   : > { %v4837_v47 = vadd.f32 %v6620_v58, %v8609_v42  ;;  %v4884_v34 = vmax.f32 %v4836_v56, 0.0 }
 0x3d8   : > { %v4887_v46 = vmax.f32 %v4839_v43, 0.0 }
 0x3d9   : > { %v4885_v7 = vmax.f32 %v4837_v47, 0.0  ;;  %v6539_v10 = vpop.f32.mrb[28].mxu1 }
 0x3da   : > { %v4925_v44 = vpack.c.bf16 %v4887_v46, %v4886_v30  ;;  %v6621_v51 = vadd.f32 %v6539_v10, %v8565_v22  ;;  %v4654_v31 = vpop.f32.mrb[29].mxu1 }
 0x3db   : > { %v4924_v15 = vpack.c.bf16 %v4885_v7, %v4884_v34  ;;  %v6622_v5 = vadd.f32 %v4654_v31, %v8567_v12  ;;  %v6540_v18 = vpop.f32.mrb[30].mxu1 }
 0x3dc   : > { %v4842_v61 = vadd.f32 %v6621_v51, %v8609_v42  ;;  %v6623_v26 = vadd.f32 %v6540_v18, %v8569_v25  ;;  %v4657_v62 = vpop.f32.mrb[31].mxu1 }
 0x3dd   : > { %v4975_v39 = vunpack.c.l.b16 %v4924_v15  ;;  %v4840_v27 = vadd.f32 %v6622_v5, %v8609_v42  ;;  %v6624_v45 = vadd.f32 %v4657_v62, %v8572_v38 }
 0x3de   : > { %v4843_v3 = vadd.f32 %v6623_v26, %v8609_v42  ;;  %v4890_v2 = vmax.f32 %v4842_v61, 0.0 }
 0x3df   : > { %v4841_v22 = vadd.f32 %v6624_v45, %v8609_v42  ;;  %v5009_v24 = vpack.c.b16 %v4975_v39, %v4974_v28  ;;  %v4888_v12 = vmax.f32 %v4840_v27, 0.0 }
 0x3e0   : > { %v4891_v1 = vmax.f32 %v4843_v3, 0.0 }
 0x3e1   : > { %v4889_v4 = vmax.f32 %v4841_v22, 0.0  ;;  %v6543_v52 = vpop.f32.mrb[32].mxu1  ;;  %6576 = vmatmul.mubr.msk.bf16.gmra.mrb[88].mxu0 %vm1422_vm10, %v5009_v24 }
 0x3e2   : > { %v4927_v25 = vpack.c.bf16 %v4891_v1, %v4890_v2  ;;  %v6625_v35 = vadd.f32 %v6543_v52, %v8574_v48  ;;  %v4670_v40 = vpop.f32.mrb[33].mxu1  ;;  %6579 = vmatprep.mubr.msk.bf16.mxu0 %vm1422_vm10, %v4925_v44 }
 0x3e3   : > { %v4926_v50 = vpack.c.bf16 %v4889_v4, %v4888_v12  ;;  %v6626_v38 = vadd.f32 %v4670_v40, %v8576_v60  ;;  %v6544_v37 = vpop.f32.mrb[34].mxu1 }
 0x3e4   : > { %v4979_v49 = vunpack.c.l.b16 %v4927_v25  ;;  %v4846_v14 = vadd.f32 %v6625_v35, %v8609_v42  ;;  %v6627_v19 = vadd.f32 %v6544_v37, %v8578_v8  ;;  %v4673_v23 = vpop.f32.mrb[35].mxu1 }
 0x3e5   : > { %v4978_v56 = vunpack.c.h.b16 %v4926_v50  ;;  %v4844_v58 = vadd.f32 %v6626_v38, %v8609_v42  ;;  %v6628_v43 = vadd.f32 %v4673_v23, %v8580_v41 }
 0x3e6   : > { %v4847_v48 = vadd.f32 %v6627_v19, %v8609_v42  ;;  %v4894_v46 = vmax.f32 %v4846_v14, 0.0 }
 0x3e7   : > { %v4845_v47 = vadd.f32 %v6628_v43, %v8609_v42  ;;  %v5011_v30 = vpack.c.b16 %v4979_v49, %v4978_v56  ;;  %v4892_v60 = vmax.f32 %v4844_v58, 0.0 }
 0x3e8   : > { %v4895_v34 = vmax.f32 %v4847_v48, 0.0 }
 0x3e9   : > { %v4893_v7 = vmax.f32 %v4845_v47, 0.0  ;;  %v6547_v10 = vpop.f32.mrb[36].mxu1  ;;  %6580 = vmatmul.mubr.msk.bf16.gmra.mrb[92].mxu0 %vm1422_vm10, %v5011_v30 }
 0x3ea   : > { %v4929_v44 = vpack.c.bf16 %v4895_v34, %v4894_v46  ;;  %v6629_v8 = vadd.f32 %v6547_v10, %v8582_v54  ;;  %v4686_v51 = vpop.f32.mrb[37].mxu1 }
 0x3eb   : > { %v4928_v31 = vpack.c.bf16 %v4893_v7, %v4892_v60  ;;  %v6630_v15 = vadd.f32 %v4686_v51, %v8584_v6  ;;  %v6548_v41 = vpop.f32.mrb[38].mxu1 }
 0x3ec   : > { %v4850_v5 = vadd.f32 %v6629_v8, %v8609_v42  ;;  %v6631_v18 = vadd.f32 %v6548_v41, %v8586_v33  ;;  %v4689_v61 = vpop.f32.mrb[39].mxu1  ;;  %v4982_v25 = vunpack.c.h.b16 %v4929_v44 }
 0x3ed   : > { %v4848_v26 = vadd.f32 %v6630_v15, %v8609_v42  ;;  %v6632_v62 = vadd.f32 %v4689_v61, %v8588_v9  ;;  %6583 = vmatprep.mubr.msk.bf16.mxu0 %vm1422_vm10, %v4928_v31 }
 0x3ee   : > { %v4851_v28 = vadd.f32 %v6631_v18, %v8609_v42  ;;  %v4898_v39 = vmax.f32 %v4850_v5, 0.0 }
 0x3ef   : > { %v4849_v54 = vadd.f32 %v6632_v62, %v8609_v42  ;;  %v4896_v45 = vmax.f32 %v4848_v26, 0.0 }
 0x3f0   : > { %v4899_v27 = vmax.f32 %v4851_v28, 0.0 }
 0x3f1   : > { %v4897_v6 = vmax.f32 %v4849_v54, 0.0  ;;  %v6551_v3 = vpop.f32.mrb[40].mxu1 }
 0x3f2   : > { %v4931_v22 = vpack.c.bf16 %v4899_v27, %v4898_v39  ;;  %v6633_v24 = vadd.f32 %v6551_v3, %v8590_v36  ;;  %v4702_v33 = vpop.f32.mrb[41].mxu1 }
 0x3f3   : > { %v4930_v2 = vpack.c.bf16 %v4897_v6, %v4896_v45  ;;  %v6634_v1 = vadd.f32 %v4702_v33, %v8592_v11  ;;  %v6552_v12 = vpop.f32.mrb[42].mxu1 }
 0x3f4   : > { %v4854_v9 = vadd.f32 %v6633_v24, %v8609_v42  ;;  %v6635_v4 = vadd.f32 %v6552_v12, %v8594_v63  ;;  %v4705_v52 = vpop.f32.mrb[43].mxu1 }
 0x3f5   : > { %v4983_v35 = vunpack.c.l.b16 %v4930_v2  ;;  %v4852_v40 = vadd.f32 %v6634_v1, %v8609_v42  ;;  %v6636_v50 = vadd.f32 %v4705_v52, %v8596_v13 }
 0x3f6   : > { %v4855_v38 = vadd.f32 %v6635_v4, %v8609_v42  ;;  %v4902_v49 = vmax.f32 %v4854_v9, 0.0 }
 0x3f7   : > { %v4853_v36 = vadd.f32 %v6636_v50, %v8609_v42  ;;  %v5013_v37 = vpack.c.b16 %v4983_v35, %v4982_v25  ;;  %v4900_v11 = vmax.f32 %v4852_v40, 0.0  ;;  %v8980_v50 = vld [vmem:[#allocation19_spill] sm:$0xff] }
 0x3f8   : > { %v4903_v14 = vmax.f32 %v4855_v38, 0.0 }
 0x3f9   : > { %v4901_v19 = vmax.f32 %v4853_v36, 0.0  ;;  %v6555_v23 = vpop.f32.mrb[44].mxu1  ;;  %6584 = vmatmul.mubr.msk.bf16.gmra.mrb[96].mxu0 %vm1422_vm10, %v5013_v37 }
 0x3fa   : > { %v4933_v63 = vpack.c.bf16 %v4903_v14, %v4902_v49  ;;  %v6637_v56 = vadd.f32 %v6555_v23, %v8598_v21  ;;  %v4718_v58 = vpop.f32.mrb[45].mxu1  ;;  %6587 = vmatprep.mubr.msk.bf16.mxu0 %vm1422_vm10, %v4931_v22 }
 0x3fb   : > { %v4932_v43 = vpack.c.bf16 %v4901_v19, %v4900_v11  ;;  %v6638_v13 = vadd.f32 %v4718_v58, %v8600_v55  ;;  %v6556_v48 = vpop.f32.mrb[46].mxu1  ;;  %v7089_v58 = vld [vmem:[%s7171_s8 + $0x8] sm:$0xff]  }
 0x3fc   : > { %v4987_v47 = vunpack.c.l.b16 %v4933_v63  ;;  %v4858_v30 = vadd.f32 %v6637_v56, %v8609_v42  ;;  %v6639_v46 = vadd.f32 %v6556_v48, %v8602_v59  ;;  %v4721_v34 = vpop.f32.mrb[47].mxu1 }
 0x3fd   : > { %v4986_v60 = vunpack.c.h.b16 %v4932_v43  ;;  %v4856_v7 = vadd.f32 %v6638_v13, %v8609_v42  ;;  %v6640_v10 = vadd.f32 %v4721_v34, %v8604_v53  ;;  %v5234_v43 = vunpack.c.l.bf16 %v7089_v58  ;;  %v7090_v13 = vld [vmem:[%s7171_s8] sm:$0xff]  }
 0x3fe   : > { %v4859_v21 = vadd.f32 %v6639_v46, %v8609_v42  ;;  %v4906_v51 = vmax.f32 %v4858_v30, 0.0  ;;  %v5232_v48 = vunpack.c.l.bf16 %v7090_v13  ;;  %v5235_v34 = vunpack.c.h.bf16 %v7089_v58 }
 0x3ff   : > { %v4857_v44 = vadd.f32 %v6640_v10, %v8609_v42  ;;  %v5015_v8 = vpack.c.b16 %v4987_v47, %v4986_v60  ;;  %v4904_v55 = vmax.f32 %v4856_v7, 0.0  ;;  %v5233_v60 = vunpack.c.h.bf16 %v7090_v13  ;;  %v7095_v13 = vld [vmem:[%s7171_s8 + $0x38] sm:$0xff]  }
 0x400   : > { %v4907_v31 = vmax.f32 %v4859_v21, 0.0 }
 0x401   : > { %v4905_v15 = vmax.f32 %v4857_v44, 0.0  ;;  %v6559_v41 = vpop.f32.mrb[0].mxu1  ;;  %6588 = vmatmul.mubr.msk.bf16.gmra.mrb[100].mxu0 %vm1422_vm10, %v5015_v8 }
 0x402   : > { %v4935_v5 = vpack.c.bf16 %v4907_v31, %v4906_v51  ;;  %v6641_v59 = vadd.f32 %v6559_v41, %v8479_v32  ;;  %v4734_v18 = vpop.f32.mrb[1].mxu1 }
 0x403   : > { %v4934_v61 = vpack.c.bf16 %v4905_v15, %v4904_v55  ;;  %v6642_v26 = vadd.f32 %v4734_v18, %v8481_v57  ;;  %v6560_v53 = vpop.f32.mrb[2].mxu1  ;;  %v7091_v18 = vld [vmem:[%s7171_s8 + $0x18] sm:$0xff]  }
 0x404   : > { %v4862_v62 = vadd.f32 %v6641_v59, %v8609_v42  ;;  %v6643_v28 = vadd.f32 %v6560_v53, %v8483_v20  ;;  %v4737_v54 = vpop.f32.mrb[3].mxu1  ;;  %v4990_v25 = vunpack.c.h.b16 %v4935_v5 }
 0x405   : > { %v4860_v39 = vadd.f32 %v6642_v26, %v8609_v42  ;;  %v6644_v27 = vadd.f32 %v4737_v54, %v8487_v16  ;;  %6591 = vmatprep.mubr.msk.bf16.mxu0 %vm1422_vm10, %v4934_v61  ;;  %v5238_v61 = vunpack.c.l.bf16 %v7091_v18 }
 0x406   : > { %v4863_v45 = vadd.f32 %v6643_v28, %v8609_v42  ;;  %v4910_v6 = vmax.f32 %v4862_v62, 0.0  ;;  %v7092_v62 = vld [vmem:[%s7171_s8 + $0x10] sm:$0xff]  }
 0x407   : > { %v4861_v32 = vadd.f32 %v6644_v27, %v8609_v42  ;;  %v4908_v22 = vmax.f32 %v4860_v39, 0.0  ;;  %v5236_v28 = vunpack.c.l.bf16 %v7092_v62  ;;  %v5239_v27 = vunpack.c.h.bf16 %v7091_v18 }
 0x408   : > { %v4911_v3 = vmax.f32 %v4863_v45, 0.0 }
 0x409   : > { %v4909_v57 = vmax.f32 %v4861_v32, 0.0  ;;  %v6563_v24 = vpop.f32.mrb[4].mxu1 }
 0x40a   : > { %v4937_v33 = vpack.c.bf16 %v4911_v3, %v4910_v6  ;;  %v6645_v2 = vadd.f32 %v6563_v24, %v8491_v29  ;;  %v4750_v20 = vpop.f32.mrb[5].mxu1  ;;  %v5237_v6 = vunpack.c.h.bf16 %v7092_v62  ;;  %v7097_v62 = vld [vmem:[%s7171_s8 + $0x48] sm:$0xff]  }
 0x40b   : > { %v4936_v1 = vpack.c.bf16 %v4909_v57, %v4908_v22  ;;  %v6646_v12 = vadd.f32 %v4750_v20, %v8493_v0  ;;  %v6564_v9 = vpop.f32.mrb[6].mxu1 }
 0x40c   : > { %v4866_v16 = vadd.f32 %v6645_v2, %v8609_v42  ;;  %v6647_v4 = vadd.f32 %v6564_v9, %v8495_v17  ;;  %v4753_v52 = vpop.f32.mrb[7].mxu1 }
 0x40d   : > { %v4991_v35 = vunpack.c.l.b16 %v4936_v1  ;;  %v4864_v40 = vadd.f32 %v6646_v12, %v8609_v42  ;;  %v6648_v38 = vadd.f32 %v4753_v52, %v8980_v50 }
 0x40e   : > { %v4867_v36 = vadd.f32 %v6647_v4, %v8609_v42  ;;  %v4914_v0 = vmax.f32 %v4866_v16, 0.0  ;;  %v7093_v4 = vld [vmem:[%s7171_s8 + $0x28] sm:$0xff]  }
 0x40f   : > { %v4865_v29 = vadd.f32 %v6648_v38, %v8609_v42  ;;  %v5017_v37 = vpack.c.b16 %v4991_v35, %v4990_v25  ;;  %v4912_v14 = vmax.f32 %v4864_v40, 0.0  ;;  %v8724_v42 = vld [vmem:[%s8853_s6] ss:$0 sm:$0xff]  ;;  %v5242_v52 = vunpack.c.l.bf16 %v7093_v4 }
 0x410   : > { %v4915_v49 = vmax.f32 %v4867_v36, 0.0  ;;  %v7094_v35 = vld [vmem:[%s7171_s8 + $0x20] sm:$0xff]   ;;  %v5243_v36 = vunpack.c.h.bf16 %v7093_v4 }
 0x411   : > { %v4913_v11 = vmax.f32 %v4865_v29, 0.0  ;;  %6592 = vmatmul.mubr.msk.bf16.gmra.mrb[104].mxu0 %vm1422_vm10, %v5017_v37  ;;  %v5240_v40 = vunpack.c.l.bf16 %v7094_v35 }
 0x412   : > { %v4939_v17 = vpack.c.bf16 %v4915_v49, %v4914_v0  ;;  %6595 = vmatprep.mubr.msk.bf16.mxu0 %vm1422_vm10, %v4937_v33  ;;  %v5241_v0 = vunpack.c.h.bf16 %v7094_v35 }
 0x413   : > { %v4938_v19 = vpack.c.bf16 %v4913_v11, %v4912_v14 }
 0x414   : > { %v4995_v23 = vunpack.c.l.b16 %v4939_v17 }
 0x415   : > { %v4994_v63 = vunpack.c.h.b16 %v4938_v19 }
 0x417   : > { %v5019_v56 = vpack.c.b16 %v4995_v23, %v4994_v63 }
 0x419   : > { %6596 = vmatmul.mubr.msk.bf16.gmra.mrb[108].mxu0 %vm1422_vm10, %v5019_v56 }
 0x49c   : > { %v6569_v47 = vpop.f32.mrb[80].mxu0 }
 0x49d   : > { %v5114_v30 = vadd.f32 %v6569_v47, %v8724_v42  ;;  %v5105_v46 = vpop.f32.mrb[81].mxu0 }
 0x49e   : > { %v5106_v7 = vadd.f32 %v8724_v42, %v5105_v46  ;;  %v6570_v10 = vpop.f32.mrb[82].mxu0  ;;  %v7096_v46 = vld [vmem:[%s7171_s8 + $0x30] sm:$0xff]  }
 0x49f   : > { %v5266_v21 = vadd.f32 %v5234_v43, %v5114_v30  ;;  %v5117_v44 = vadd.f32 %v6570_v10, %v8724_v42  ;;  %v5108_v8 = vpop.f32.mrb[83].mxu0  ;;  %v5247_v10 = vunpack.c.h.bf16 %v7095_v13 }
 0x4a0   : > { %v5264_v51 = vadd.f32 %v5232_v48, %v5106_v7  ;;  %v5109_v31 = vadd.f32 %v8724_v42, %v5108_v8  ;;  %v5246_v48 = vunpack.c.l.bf16 %v7095_v13  ;;  %v5245_v8 = vunpack.c.h.bf16 %v7096_v46 }
 0x4a1   : > { %v5298_v55 = vmax.f32 %v5266_v21, 0.0  ;;  %v5267_v15 = vadd.f32 %v5235_v34, %v5117_v44  ;;  %v5244_v34 = vunpack.c.l.bf16 %v7096_v46  ;;  %v7101_v46 = vld [vmem:[%s7171_s8 + $0x68] sm:$0xff]  }
 0x4a2   : > { %v5296_v41 = vmax.f32 %v5264_v51, 0.0  ;;  %v5265_v5 = vadd.f32 %v5233_v60, %v5109_v31 }
 0x4a3   : > { %5330 = vst.msk [vmem:[%s8735_s22 + $0x10] sm:$0xff] %vm407_vm0, %v5298_v55  ;;  %v5299_v59 = vmax.f32 %v5267_v15, 0.0 }
 0x4a4   : > { %5328 = vst.msk [vmem:[%s8735_s22] sm:$0xff] %vm407_vm0, %v5296_v41  ;;  %v5297_v26 = vmax.f32 %v5265_v5, 0.0  ;;  %v6573_v53 = vpop.f32.mrb[84].mxu0 }
 0x4a5   : > { %5331 = vst.msk [vmem:[%s8735_s22 + $0x18] sm:$0xff] %vm407_vm0, %v5299_v59  ;;  %v5130_v54 = vadd.f32 %v6573_v53, %v8724_v42  ;;  %v5121_v39 = vpop.f32.mrb[85].mxu0 }
 0x4a6   : > { %5329 = vst.msk [vmem:[%s8735_s22 + $0x8] sm:$0xff] %vm407_vm0, %v5297_v26  ;;  %v5122_v45 = vadd.f32 %v8724_v42, %v5121_v39  ;;  %v6574_v32 = vpop.f32.mrb[86].mxu0  ;;  %v7098_v39 = vld [vmem:[%s7171_s8 + $0x40] sm:$0xff]  }
 0x4a7   : > { %v5270_v3 = vadd.f32 %v5238_v61, %v5130_v54  ;;  %v5133_v22 = vadd.f32 %v6574_v32, %v8724_v42  ;;  %v5124_v57 = vpop.f32.mrb[87].mxu0 }
 0x4a8   : > { %v5268_v24 = vadd.f32 %v5236_v28, %v5122_v45  ;;  %v5125_v33 = vadd.f32 %v8724_v42, %v5124_v57  ;;  %v5250_v28 = vunpack.c.l.bf16 %v7097_v62  ;;  %v5249_v57 = vunpack.c.h.bf16 %v7098_v39 }
 0x4a9   : > { %v5302_v2 = vmax.f32 %v5270_v3, 0.0  ;;  %v5271_v20 = vadd.f32 %v5239_v27, %v5133_v22  ;;  %v5248_v27 = vunpack.c.l.bf16 %v7098_v39 }
 0x4aa   : > { %v5300_v1 = vmax.f32 %v5268_v24, 0.0  ;;  %v5269_v12 = vadd.f32 %v5237_v6, %v5125_v33  ;;  %v5251_v6 = vunpack.c.h.bf16 %v7097_v62 }
 0x4ab   : > { %5334 = vst.msk [vmem:[%s8735_s22 + $0x30] sm:$0xff] %vm407_vm0, %v5302_v2  ;;  %v5303_v9 = vmax.f32 %v5271_v20, 0.0 }
 0x4ac   : > { %5332 = vst.msk [vmem:[%s8735_s22 + $0x20] sm:$0xff] %vm407_vm0, %v5300_v1  ;;  %v5301_v16 = vmax.f32 %v5269_v12, 0.0 }
 0x4ad   : > { %5335 = vst.msk [vmem:[%s8735_s22 + $0x38] sm:$0xff] %vm407_vm0, %v5303_v9 }
 0x4ae   : > { %5333 = vst.msk [vmem:[%s8735_s22 + $0x28] sm:$0xff] %vm407_vm0, %v5301_v16 }
 0x4b4   : > { %v6577_v25 = vpop.f32.mrb[88].mxu0 }
 0x4b5   : > { %v5146_v50 = vadd.f32 %v6577_v25, %v8724_v42  ;;  %v5137_v38 = vpop.f32.mrb[89].mxu0  ;;  %v7099_v25 = vld [vmem:[%s7171_s8 + $0x58] sm:$0xff]  }
 0x4b6   : > { %v5138_v29 = vadd.f32 %v8724_v42, %v5137_v38  ;;  %v6578_v37 = vpop.f32.mrb[90].mxu0  ;;  %v5254_v35 = vunpack.c.l.bf16 %v7099_v25  ;;  %v7100_v38 = vld [vmem:[%s7171_s8 + $0x50] sm:$0xff]  }
 0x4b7   : > { %v5274_v49 = vadd.f32 %v5242_v52, %v5146_v50  ;;  %v5149_v14 = vadd.f32 %v6578_v37, %v8724_v42  ;;  %v5140_v11 = vpop.f32.mrb[91].mxu0 }
 0x4b8   : > { %v5272_v17 = vadd.f32 %v5240_v40, %v5138_v29  ;;  %v5141_v19 = vadd.f32 %v8724_v42, %v5140_v11  ;;  %v5253_v11 = vunpack.c.h.bf16 %v7100_v38 }
 0x4b9   : > { %v5306_v23 = vmax.f32 %v5274_v49, 0.0  ;;  %v5275_v63 = vadd.f32 %v5243_v36, %v5149_v14  ;;  %v5252_v36 = vunpack.c.l.bf16 %v7100_v38 }
 0x4ba   : > { %v5304_v56 = vmax.f32 %v5272_v17, 0.0  ;;  %v5273_v58 = vadd.f32 %v5241_v0, %v5141_v19  ;;  %v5255_v0 = vunpack.c.h.bf16 %v7099_v25 }
 0x4bb   : > { %5338 = vst.msk [vmem:[%s8735_s22 + $0x50] sm:$0xff] %vm407_vm0, %v5306_v23  ;;  %v5307_v43 = vmax.f32 %v5275_v63, 0.0 }
 0x4bc   : > { %5336 = vst.msk [vmem:[%s8735_s22 + $0x40] sm:$0xff] %vm407_vm0, %v5304_v56  ;;  %v5305_v47 = vmax.f32 %v5273_v58, 0.0  ;;  %v6581_v30 = vpop.f32.mrb[92].mxu0 }
 0x4bd   : > { %5339 = vst.msk [vmem:[%s8735_s22 + $0x58] sm:$0xff] %vm407_vm0, %v5307_v43  ;;  %v5162_v60 = vadd.f32 %v6581_v30, %v8724_v42  ;;  %v5153_v7 = vpop.f32.mrb[93].mxu0 }
 0x4be   : > { %5337 = vst.msk [vmem:[%s8735_s22 + $0x48] sm:$0xff] %vm407_vm0, %v5305_v47  ;;  %v5154_v21 = vadd.f32 %v8724_v42, %v5153_v7  ;;  %v6582_v44 = vpop.f32.mrb[94].mxu0  ;;  %v7102_v7 = vld [vmem:[%s7171_s8 + $0x60] sm:$0xff]  }
 0x4bf   : > { %v5278_v51 = vadd.f32 %v5246_v48, %v5162_v60  ;;  %v5165_v31 = vadd.f32 %v6582_v44, %v8724_v42  ;;  %v5156_v55 = vpop.f32.mrb[95].mxu0 }
 0x4c0   : > { %v5276_v15 = vadd.f32 %v5244_v34, %v5154_v21  ;;  %v5157_v41 = vadd.f32 %v8724_v42, %v5156_v55  ;;  %v5258_v34 = vunpack.c.l.bf16 %v7101_v46  ;;  %v5257_v55 = vunpack.c.h.bf16 %v7102_v7 }
 0x4c1   : > { %v5310_v5 = vmax.f32 %v5278_v51, 0.0  ;;  %v5279_v59 = vadd.f32 %v5247_v10, %v5165_v31  ;;  %v5256_v10 = vunpack.c.l.bf16 %v7102_v7 }
 0x4c2   : > { %v5308_v18 = vmax.f32 %v5276_v15, 0.0  ;;  %v5277_v61 = vadd.f32 %v5245_v8, %v5157_v41  ;;  %v5259_v8 = vunpack.c.h.bf16 %v7101_v46 }
 0x4c3   : > { %5342 = vst.msk [vmem:[%s8735_s22 + $0x70] sm:$0xff] %vm407_vm0, %v5310_v5  ;;  %v5311_v26 = vmax.f32 %v5279_v59, 0.0 }
 0x4c4   : > { %5340 = vst.msk [vmem:[%s8735_s22 + $0x60] sm:$0xff] %vm407_vm0, %v5308_v18  ;;  %v5309_v53 = vmax.f32 %v5277_v61, 0.0 }
 0x4c5   : > { %5343 = vst.msk [vmem:[%s8735_s22 + $0x78] sm:$0xff] %vm407_vm0, %v5311_v26 }
 0x4c6   : > { %5341 = vst.msk [vmem:[%s8735_s22 + $0x68] sm:$0xff] %vm407_vm0, %v5309_v53 }
 0x4cc   : > { %v6585_v54 = vpop.f32.mrb[96].mxu0 }
 0x4cd   : > { %v5178_v45 = vadd.f32 %v6585_v54, %v8724_v42  ;;  %v5169_v32 = vpop.f32.mrb[97].mxu0  ;;  %v7103_v54 = vld [vmem:[%s7171_s8 + $0x78] sm:$0xff]  }
 0x4ce   : > { %v5170_v3 = vadd.f32 %v8724_v42, %v5169_v32  ;;  %v6586_v22 = vpop.f32.mrb[98].mxu0  ;;  %v5262_v39 = vunpack.c.l.bf16 %v7103_v54  ;;  %v7104_v32 = vld [vmem:[%s7171_s8 + $0x70] sm:$0xff]  }
 0x4cf   : > { %v5282_v24 = vadd.f32 %v5250_v28, %v5178_v45  ;;  %v5181_v33 = vadd.f32 %v6586_v22, %v8724_v42  ;;  %v5172_v2 = vpop.f32.mrb[99].mxu0 }
 0x4d0   : > { %v5280_v20 = vadd.f32 %v5248_v27, %v5170_v3  ;;  %v5173_v1 = vadd.f32 %v8724_v42, %v5172_v2  ;;  %v5261_v2 = vunpack.c.h.bf16 %v7104_v32 }
 0x4d1   : > { %v5314_v12 = vmax.f32 %v5282_v24, 0.0  ;;  %v5283_v9 = vadd.f32 %v5251_v6, %v5181_v33  ;;  %v5260_v6 = vunpack.c.l.bf16 %v7104_v32 }
 0x4d2   : > { %v5312_v16 = vmax.f32 %v5280_v20, 0.0  ;;  %v5281_v4 = vadd.f32 %v5249_v57, %v5173_v1  ;;  %v5263_v57 = vunpack.c.h.bf16 %v7103_v54 }
 0x4d3   : > { %5346 = vst.msk [vmem:[%s8735_s22 + $0x90] sm:$0xff] %vm407_vm0, %v5314_v12  ;;  %v5315_v52 = vmax.f32 %v5283_v9, 0.0 }
 0x4d4   : > { %5344 = vst.msk [vmem:[%s8735_s22 + $0x80] sm:$0xff] %vm407_vm0, %v5312_v16  ;;  %v5313_v40 = vmax.f32 %v5281_v4, 0.0  ;;  %v6589_v50 = vpop.f32.mrb[100].mxu0 }
 0x4d5   : > { %5347 = vst.msk [vmem:[%s8735_s22 + $0x98] sm:$0xff] %vm407_vm0, %v5315_v52  ;;  %v5194_v29 = vadd.f32 %v6589_v50, %v8724_v42  ;;  %v5185_v37 = vpop.f32.mrb[101].mxu0 }
 0x4d6   : > { %5345 = vst.msk [vmem:[%s8735_s22 + $0x88] sm:$0xff] %vm407_vm0, %v5313_v40  ;;  %v5186_v49 = vadd.f32 %v8724_v42, %v5185_v37  ;;  %v6590_v14 = vpop.f32.mrb[102].mxu0 }
 0x4d7   : > { %v5286_v17 = vadd.f32 %v5254_v35, %v5194_v29  ;;  %v5197_v19 = vadd.f32 %v6590_v14, %v8724_v42  ;;  %v5188_v23 = vpop.f32.mrb[103].mxu0 }
 0x4d8   : > { %v5284_v63 = vadd.f32 %v5252_v36, %v5186_v49  ;;  %v5189_v56 = vadd.f32 %v8724_v42, %v5188_v23 }
 0x4d9   : > { %v5318_v58 = vmax.f32 %v5286_v17, 0.0  ;;  %v5287_v43 = vadd.f32 %v5255_v0, %v5197_v19 }
 0x4da   : > { %v5316_v13 = vmax.f32 %v5284_v63, 0.0  ;;  %v5285_v48 = vadd.f32 %v5253_v11, %v5189_v56 }
 0x4db   : > { %5350 = vst.msk [vmem:[%s8735_s22 + $0xb0] sm:$0xff] %vm407_vm0, %v5318_v58  ;;  %v5319_v47 = vmax.f32 %v5287_v43, 0.0 }
 0x4dc   : > { %5348 = vst.msk [vmem:[%s8735_s22 + $0xa0] sm:$0xff] %vm407_vm0, %v5316_v13  ;;  %v5317_v30 = vmax.f32 %v5285_v48, 0.0 }
 0x4dd   : > { %5351 = vst.msk [vmem:[%s8735_s22 + $0xb8] sm:$0xff] %vm407_vm0, %v5319_v47 }
 0x4de   : > { %5349 = vst.msk [vmem:[%s8735_s22 + $0xa8] sm:$0xff] %vm407_vm0, %v5317_v30 }
 0x4e4   : > { %v6593_v60 = vpop.f32.mrb[104].mxu0 }
 0x4e5   : > { %v5210_v21 = vadd.f32 %v6593_v60, %v8724_v42  ;;  %v5201_v44 = vpop.f32.mrb[105].mxu0 }
 0x4e6   : > { %v5202_v51 = vadd.f32 %v8724_v42, %v5201_v44  ;;  %v6594_v31 = vpop.f32.mrb[106].mxu0 }
 0x4e7   : > { %v5290_v15 = vadd.f32 %v5258_v34, %v5210_v21  ;;  %v5213_v41 = vadd.f32 %v6594_v31, %v8724_v42  ;;  %v5204_v5 = vpop.f32.mrb[107].mxu0 }
 0x4e8   : > { %v5288_v59 = vadd.f32 %v5256_v10, %v5202_v51  ;;  %v5205_v18 = vadd.f32 %v8724_v42, %v5204_v5 }
 0x4e9   : > { %v5322_v61 = vmax.f32 %v5290_v15, 0.0  ;;  %v5291_v26 = vadd.f32 %v5259_v8, %v5213_v41 }
 0x4ea   : > { %v5320_v53 = vmax.f32 %v5288_v59, 0.0  ;;  %v5289_v62 = vadd.f32 %v5257_v55, %v5205_v18 }
 0x4eb   : > { %5354 = vst.msk [vmem:[%s8735_s22 + $0xd0] sm:$0xff] %vm407_vm0, %v5322_v61  ;;  %v5323_v28 = vmax.f32 %v5291_v26, 0.0 }
 0x4ec   : > { %5352 = vst.msk [vmem:[%s8735_s22 + $0xc0] sm:$0xff] %vm407_vm0, %v5320_v53  ;;  %v5321_v27 = vmax.f32 %v5289_v62, 0.0  ;;  %v6597_v45 = vpop.f32.mrb[108].mxu0 }
 0x4ed   : > { %5355 = vst.msk [vmem:[%s8735_s22 + $0xd8] sm:$0xff] %vm407_vm0, %v5323_v28  ;;  %v5226_v3 = vadd.f32 %v6597_v45, %v8724_v42  ;;  %v5217_v22 = vpop.f32.mrb[109].mxu0 }
 0x4ee   : > { %5353 = vst.msk [vmem:[%s8735_s22 + $0xc8] sm:$0xff] %vm407_vm0, %v5321_v27  ;;  %v5218_v24 = vadd.f32 %v8724_v42, %v5217_v22  ;;  %v6598_v33 = vpop.f32.mrb[110].mxu0 }
 0x4ef   : > { %v5294_v20 = vadd.f32 %v5262_v39, %v5226_v3  ;;  %v5229_v1 = vadd.f32 %v6598_v33, %v8724_v42  ;;  %v5220_v12 = vpop.f32.mrb[111].mxu0 }
 0x4f0   : > { %v5292_v9 = vadd.f32 %v5260_v6, %v5218_v24  ;;  %v5221_v16 = vadd.f32 %v8724_v42, %v5220_v12 }
 0x4f1   : > { %v5326_v4 = vmax.f32 %v5294_v20, 0.0  ;;  %v5295_v52 = vadd.f32 %v5263_v57, %v5229_v1 }
 0x4f2   : > { %v5324_v25 = vmax.f32 %v5292_v9, 0.0  ;;  %v5293_v35 = vadd.f32 %v5261_v2, %v5221_v16 }
 0x4f3   : > { %5358 = vst.msk [vmem:[%s8735_s22 + $0xf0] sm:$0xff] %vm407_vm0, %v5326_v4  ;;  %v5327_v40 = vmax.f32 %v5295_v52, 0.0 }
 0x4f4   : > { %5356 = vst.msk [vmem:[%s8735_s22 + $0xe0] sm:$0xff] %vm407_vm0, %v5324_v25  ;;  %v5325_v50 = vmax.f32 %v5293_v35, 0.0 }
 0x4f5   : > { %5359 = vst.msk [vmem:[%s8735_s22 + $0xf8] sm:$0xff] %vm407_vm0, %v5327_v40 }
 0x4f6   : > { %5357 = vst.msk [vmem:[%s8735_s22 + $0xe8] sm:$0xff] %vm407_vm0, %v5325_v50 }
 0x4f7 PF: > { %s17_s24 = sadd.s32 1, %s7111_s24  }
 0x4f8   : > { %p14_p4 = scmp.ge.s32.totalorder %s17_s24, 4  }
 0x4fa   :  { %16 = sbr.rel (!%p14_p4) target bundleno = 1 (0x1), region = 87 }

</bundles_post_ra>
